<compile_context>
chip_gen: v6e
topology: v6e:2x2x1
jax: 0.10.0
libtpu: 0.0.40
codegen_flags: <defaults>
</compile_context>

<pallas_src>
import functools

import jax
import jax.numpy as jnp
from jax import lax
from jax.experimental import pallas as pl
from jax.experimental.pallas import tpu as pltpu


# ---------------------------------------------------------------------------
# In-kernel helpers
# ---------------------------------------------------------------------------
def _gru_cell(gi_t, gh, bhh_n, h, H):
    """One GRU step.

    gi_t : (B, 3H) input projection; already contains b_ih (all gates) and
           b_hh for the r/z gates (folded once, outside the loop).
    gh   : (B, 3H) recurrent projection h @ W_hh^T (no bias).
    bhh_n: (B, H)  the n-gate b_hh (must stay inside r * (h@W_hn + b_hn)).
    """
    r = jax.nn.sigmoid(gi_t[:, :H] + gh[:, :H])
    z = jax.nn.sigmoid(gi_t[:, H:2 * H] + gh[:, H:2 * H])
    n = jnp.tanh(gi_t[:, 2 * H:] + r * (gh[:, 2 * H:] + bhh_n))
    return (1.0 - z) * n + z * h


def _bigru_layer_kernel(x_ref,
                        wih_f_ref, whh_f_ref, bi_f_ref, bhn_f_ref,
                        wih_b_ref, whh_b_ref, bi_b_ref, bhn_b_ref,
                        out_ref,
                        gif_sc, gib_sc, outf_sc, outb_sc,
                        *, T, B):
    """One full bidirectional GRU layer (both directions, all timesteps)."""
    H = whh_f_ref.shape[0]
    x = x_ref[...]                                      # (T*B, D), time-major

    # Hoisted input projections for every timestep: one MXU matmul/direction.
    gif_sc[...] = (jnp.dot(x, wih_f_ref[...], preferred_element_type=jnp.float32)
                   + bi_f_ref[...])
    gib_sc[...] = (jnp.dot(x, wih_b_ref[...], preferred_element_type=jnp.float32)
                   + bi_b_ref[...])

    # Hoist constant operands out of the sequential loop.
    whh_f = whh_f_ref[...]
    whh_b = whh_b_ref[...]
    bhn_f = jnp.broadcast_to(bhn_f_ref[...], (B, H))
    bhn_b = jnp.broadcast_to(bhn_b_ref[...], (B, H))

    def step(i, carry):
        # Advance both independent recurrences in the same iteration so their
        # matmuls/gate math overlap on the sequential (latency-bound) chain.
        h_f, h_b = carry
        tf = i
        tb = T - 1 - i
        gi_f = gif_sc[pl.ds(tf * B, B), :]              # (B, 3H)
        gi_b = gib_sc[pl.ds(tb * B, B), :]              # (B, 3H)
        gh_f = jnp.dot(h_f, whh_f, preferred_element_type=jnp.float32)
        gh_b = jnp.dot(h_b, whh_b, preferred_element_type=jnp.float32)
        h_f = _gru_cell(gi_f, gh_f, bhn_f, h_f, H)
        h_b = _gru_cell(gi_b, gh_b, bhn_b, h_b, H)
        outf_sc[tf] = h_f
        outb_sc[tb] = h_b
        return h_f, h_b

    h0 = jnp.zeros((B, H), jnp.float32)
    lax.fori_loop(0, T, step, (h0, h0), unroll=True)

    # Bulk output store (whole (T, B, 2H) slab at once; fwd half / bwd half).
    out_ref[:, :, :H] = outf_sc[...]
    out_ref[:, :, H:] = outb_sc[...]


def _bigru_last_head_kernel(x_ref,
                            wih_f_ref, whh_f_ref, bi_f_ref, bhn_f_ref,
                            wih_b_ref, bi_b_ref, bhn_b_ref,
                            w1_ref, b1_ref, w2_ref, b2_ref,
                            out_ref,
                            gif_sc,
                            *, T, B):
    """Last BiGRU layer fused with the dense head.

    The head only consumes h_fwd(T-1) (full forward recurrence) and
    h_bwd(T-1) (the backward GRU's *first* step, on x[T-1]), so per-step
    output writebacks and the remaining T-1 backward steps are skipped.
    """
    H = whh_f_ref.shape[0]
    x = x_ref[...]                                      # (T*B, D)

    # Forward direction: hoisted input projection + sequential recurrence.
    gif_sc[...] = (jnp.dot(x, wih_f_ref[...], preferred_element_type=jnp.float32)
                   + bi_f_ref[...])
    whh_f = whh_f_ref[...]
    bhn_f = jnp.broadcast_to(bhn_f_ref[...], (B, H))

    def step(i, h):
        gi_t = gif_sc[pl.ds(i * B, B), :]
        gh = jnp.dot(h, whh_f, preferred_element_type=jnp.float32)
        return _gru_cell(gi_t, gh, bhn_f, h, H)

    h_f = lax.fori_loop(0, T, step, jnp.zeros((B, H), jnp.float32), unroll=True)

    # Backward direction: only its first step; initial hidden state is zero,
    # so the recurrent matmul contributes nothing (gh == 0).
    x_last = x_ref[pl.ds((T - 1) * B, B), :]            # == x[:, T-1, :]
    gi_b = (jnp.dot(x_last, wih_b_ref[...], preferred_element_type=jnp.float32)
            + bi_b_ref[...])
    bhn_b = jnp.broadcast_to(bhn_b_ref[...], (B, H))
    h_b = _gru_cell(gi_b, jnp.zeros((B, 3 * H), jnp.float32), bhn_b,
                    jnp.zeros((B, H), jnp.float32), H)

    # Dense head on the resident hidden states:
    #   Linear(2H -> 10) -> ReLU -> Linear(10 -> O)
    # feat = [h_f, h_b]; split the first matmul instead of a lane concat.
    hid = (jnp.dot(h_f, w1_ref[:H, :], preferred_element_type=jnp.float32)
           + jnp.dot(h_b, w1_ref[H:, :], preferred_element_type=jnp.float32)
           + b1_ref[...])
    hid = jnp.maximum(hid, 0.0)
    out = jnp.dot(hid, w2_ref[...], preferred_element_type=jnp.float32) + b2_ref[...]
    out_ref[...] = out.astype(out_ref.dtype)


# ---------------------------------------------------------------------------
# pallas_call wrappers
# ---------------------------------------------------------------------------
def _full_spec(shape):
    # Single-step grid: every operand is its full array (satisfies the (8,128)
    # rule because block shape == full array dims).
    return pl.BlockSpec(shape, lambda i: (0,) * len(shape))


def _fold_biases(direction_params):
    """Fold b_hh into the r/z input biases (done once, in XLA, per call).

    Returns (b_gi, b_hn):
      b_gi (1, 3H): added once to the hoisted input projection.
      b_hn (1, H) : n-gate b_hh (stays inside r * (h@W_hn + b_hn)).
    """
    bih, bhh = direction_params["bih"], direction_params["bhh"]
    H = bih.shape[1] // 3
    b_gi = jnp.concatenate([bih[:, :2 * H] + bhh[:, :2 * H], bih[:, 2 * H:]], axis=-1)
    return b_gi, bhh[:, 2 * H:]


def bigru_layer(x_flat, fwd, bwd, *, T, B):
    """One bidirectional GRU layer. x_flat: (T*B, D) time-major. -> (T, B, 2H)."""
    TB, D = x_flat.shape
    H = fwd["whh_t"].shape[0]
    bi_f, bhn_f = _fold_biases(fwd)
    bi_b, bhn_b = _fold_biases(bwd)
    return pl.pallas_call(
        functools.partial(_bigru_layer_kernel, T=T, B=B),
        out_shape=jax.ShapeDtypeStruct((T, B, 2 * H), jnp.float32),
        grid_spec=pltpu.PrefetchScalarGridSpec(
            num_scalar_prefetch=0,
            grid=(1,),
            in_specs=[
                _full_spec((TB, D)),                                   # x
                _full_spec((D, 3 * H)), _full_spec((H, 3 * H)),        # fwd W
                _full_spec((1, 3 * H)), _full_spec((1, H)),            # fwd b
                _full_spec((D, 3 * H)), _full_spec((H, 3 * H)),        # bwd W
                _full_spec((1, 3 * H)), _full_spec((1, H)),            # bwd b
            ],
            out_specs=_full_spec((T, B, 2 * H)),
            scratch_shapes=[
                pltpu.VMEM((TB, 3 * H), jnp.float32),   # gi (fwd, all t)
                pltpu.VMEM((TB, 3 * H), jnp.float32),   # gi (bwd, all t)
                pltpu.VMEM((T, B, H), jnp.float32),     # per-step h (fwd)
                pltpu.VMEM((T, B, H), jnp.float32),     # per-step h (bwd)
            ],
        ),
        compiler_params=pltpu.CompilerParams(
            dimension_semantics=("arbitrary",)),
    )(x_flat, fwd["wih_t"], fwd["whh_t"], bi_f, bhn_f,
      bwd["wih_t"], bwd["whh_t"], bi_b, bhn_b)


def bigru_last_layer_with_head(x_flat, fwd, bwd, w1_t, b1, w2_t, b2, *, T, B):
    """Last BiGRU layer fused with Linear->ReLU->Linear head. -> (B, O)."""
    TB, D = x_flat.shape
    H = fwd["whh_t"].shape[0]
    O = w2_t.shape[1]
    bi_f, bhn_f = _fold_biases(fwd)
    bi_b, bhn_b = _fold_biases(bwd)
    return pl.pallas_call(
        functools.partial(_bigru_last_head_kernel, T=T, B=B),
        out_shape=jax.ShapeDtypeStruct((B, O), jnp.float32),
        grid_spec=pltpu.PrefetchScalarGridSpec(
            num_scalar_prefetch=0,
            grid=(1,),
            in_specs=[
                _full_spec((TB, D)),                                   # x
                _full_spec((D, 3 * H)), _full_spec((H, 3 * H)),        # fwd W
                _full_spec((1, 3 * H)), _full_spec((1, H)),            # fwd b
                _full_spec((D, 3 * H)),                                # bwd W_ih
                _full_spec((1, 3 * H)), _full_spec((1, H)),            # bwd b
                _full_spec((2 * H, 10)), _full_spec((1, 10)),          # head L1
                _full_spec((10, O)), _full_spec((1, O)),               # head L2
            ],
            out_specs=_full_spec((B, O)),
            scratch_shapes=[pltpu.VMEM((TB, 3 * H), jnp.float32)],
        ),
        compiler_params=pltpu.CompilerParams(
            dimension_semantics=("arbitrary",)),
    )(x_flat, fwd["wih_t"], fwd["whh_t"], bi_f, bhn_f,
      bwd["wih_t"], bi_b, bhn_b,
      w1_t, b1, w2_t, b2)


# ---------------------------------------------------------------------------
# Parameter initialization (deterministic, PyTorch-style uniform fan-in init)
# ---------------------------------------------------------------------------
def init_params(key, input_size, hidden_sizes, output_size):
    params = {"layers": []}
    for layer_idx, H in enumerate(hidden_sizes):
        D = input_size if layer_idx == 0 else hidden_sizes[layer_idx - 1] * 2
        k = 1.0 / jnp.sqrt(jnp.float32(H))
        layer = {}
        for direction in ("fwd", "bwd"):
            key, k0, k1, k2, k3 = jax.random.split(key, 5)
            layer[direction] = {
                "wih_t": jax.random.uniform(k0, (D, 3 * H), jnp.float32, -k, k),
                "whh_t": jax.random.uniform(k1, (H, 3 * H), jnp.float32, -k, k),
                "bih": jax.random.uniform(k2, (1, 3 * H), jnp.float32, -k, k),
                "bhh": jax.random.uniform(k3, (1, 3 * H), jnp.float32, -k, k),
            }
        params["layers"].append(layer)

    F = hidden_sizes[-1] * 2
    k1v = 1.0 / jnp.sqrt(jnp.float32(F))
    k2v = 1.0 / jnp.sqrt(jnp.float32(10))
    key, a, b, c, d = jax.random.split(key, 5)
    params["w1_t"] = jax.random.uniform(a, (F, 10), jnp.float32, -k1v, k1v)
    params["b1"] = jax.random.uniform(b, (1, 10), jnp.float32, -k1v, k1v)
    params["w2_t"] = jax.random.uniform(c, (10, output_size), jnp.float32, -k2v, k2v)
    params["b2"] = jax.random.uniform(d, (1, output_size), jnp.float32, -k2v, k2v)
    return params


# ---------------------------------------------------------------------------
# Forward pass (mirrors ForecastingBiGRUModel.forward in eval mode)
# ---------------------------------------------------------------------------
@jax.jit
def forecasting_bigru_forward(params, x_btd):
    B, T, D = x_btd.shape
    # Flattened time-major layout: row t*B + b holds x[b, t, :].  This is the
    # only XLA-side layout op; all per-layer tensors stay in this layout.
    x = jnp.transpose(x_btd, (1, 0, 2)).reshape(T * B, D)
    layers = params["layers"]
    for layer in layers[:-1]:
        y = bigru_layer(x, layer["fwd"], layer["bwd"], T=T, B=B)   # (T, B, 2H)
        x = y.reshape(T * B, y.shape[-1])
        # TODO(synk): __tensor_dropout is identity in eval mode (self.training
        # is False); training-time dropout between layers is not implemented.
    last = layers[-1]
    return bigru_last_layer_with_head(
        x, last["fwd"], last["bwd"],
        params["w1_t"], params["b1"], params["w2_t"], params["b2"], T=T, B=B)


# ---------------------------------------------------------------------------
# Pure-JAX reference (for a built-in numerical check)
# ---------------------------------------------------------------------------
def _ref_gru_direction(x_tbd, p, reverse):
    T, B, _ = x_tbd.shape
    H = p["whh_t"].shape[0]
    h = jnp.zeros((B, H), jnp.float32)
    outs = []
    ts = range(T - 1, -1, -1) if reverse else range(T)
    for t in ts:
        gi = x_tbd[t] @ p["wih_t"] + p["bih"]
        gh = h @ p["whh_t"] + p["bhh"]
        r = jax.nn.sigmoid(gi[:, :H] + gh[:, :H])
        z = jax.nn.sigmoid(gi[:, H:2 * H] + gh[:, H:2 * H])
        n = jnp.tanh(gi[:, 2 * H:] + r * gh[:, 2 * H:])
        h = (1.0 - z) * n + z * h
        outs.append(h)
    if reverse:
        outs = outs[::-1]
    return jnp.stack(outs, axis=0)


def forecasting_bigru_reference(params, x_btd):
    x = jnp.transpose(x_btd, (1, 0, 2))
    for layer in params["layers"]:
        f = _ref_gru_direction(x, layer["fwd"], reverse=False)
        b = _ref_gru_direction(x, layer["bwd"], reverse=True)
        x = jnp.concatenate([f, b], axis=-1)
    last = x[-1]
    hid = jnp.maximum(last @ params["w1_t"] + params["b1"], 0.0)
    return hid @ params["w2_t"] + params["b2"]


if __name__ == "__main__":
    B, T = 2, 8
    input_size = 16
    hidden_sizes = [32, 32]
    output_size = 4

    key = jax.random.PRNGKey(0)
    key, pkey, xkey = jax.random.split(key, 3)
    params = init_params(pkey, input_size, hidden_sizes, output_size)
    x = jax.random.normal(xkey, (B, T, input_size), jnp.float32)

    out = forecasting_bigru_forward(params, x)
    out = jax.block_until_ready(out)
    assert out.shape == (B, output_size), out.shape

    ref = forecasting_bigru_reference(params, x)
    assert bool(jnp.allclose(out, ref, rtol=2e-3, atol=2e-3)), (
        "mismatch vs reference: max abs err = "
        f"{float(jnp.max(jnp.abs(out - ref)))}")

    print("KERNEL_OK")
</pallas_src>

<mosaic_0001>
module attributes {stable_mosaic.version = 11 : i64} {
  func.func @_bigru_last_head_kernel(%arg0: i32, %arg1: memref<16x64xf32, #tpu.memory_space<vmem>>, %arg2: memref<64x96xf32, #tpu.memory_space<vmem>>, %arg3: memref<32x96xf32, #tpu.memory_space<vmem>>, %arg4: memref<1x96xf32, #tpu.memory_space<vmem>>, %arg5: memref<1x32xf32, #tpu.memory_space<vmem>>, %arg6: memref<64x96xf32, #tpu.memory_space<vmem>>, %arg7: memref<1x96xf32, #tpu.memory_space<vmem>>, %arg8: memref<1x32xf32, #tpu.memory_space<vmem>>, %arg9: memref<64x10xf32, #tpu.memory_space<vmem>>, %arg10: memref<1x10xf32, #tpu.memory_space<vmem>>, %arg11: memref<10x4xf32, #tpu.memory_space<vmem>>, %arg12: memref<1x4xf32, #tpu.memory_space<vmem>>, %arg13: memref<2x4xf32, #tpu.memory_space<vmem>>, %arg14: memref<16x96xf32, #tpu.memory_space<vmem>>) attributes {dimension_semantics = [#tpu.dimension_semantics<arbitrary>], iteration_bounds = array<i64: 1>, scalar_prefetch = 0 : i64, scratch_operands = 1 : i64, tpu.core_type = #tpu.core_type<tc>, window_params = [{pipeline_mode = #tpu.pipeline_mode<synchronous>, transform_indices = @transform_0, window_bounds = array<i64: 16, 64>}, {pipeline_mode = #tpu.pipeline_mode<synchronous>, transform_indices = @transform_1, window_bounds = array<i64: 64, 96>}, {pipeline_mode = #tpu.pipeline_mode<synchronous>, transform_indices = @transform_2, window_bounds = array<i64: 32, 96>}, {pipeline_mode = #tpu.pipeline_mode<synchronous>, transform_indices = @transform_3, window_bounds = array<i64: 1, 96>}, {pipeline_mode = #tpu.pipeline_mode<synchronous>, transform_indices = @transform_4, window_bounds = array<i64: 1, 32>}, {pipeline_mode = #tpu.pipeline_mode<synchronous>, transform_indices = @transform_5, window_bounds = array<i64: 64, 96>}, {pipeline_mode = #tpu.pipeline_mode<synchronous>, transform_indices = @transform_6, window_bounds = array<i64: 1, 96>}, {pipeline_mode = #tpu.pipeline_mode<synchronous>, transform_indices = @transform_7, window_bounds = array<i64: 1, 32>}, {pipeline_mode = #tpu.pipeline_mode<synchronous>, transform_indices = @transform_8, window_bounds = array<i64: 64, 10>}, {pipeline_mode = #tpu.pipeline_mode<synchronous>, transform_indices = @transform_9, window_bounds = array<i64: 1, 10>}, {pipeline_mode = #tpu.pipeline_mode<synchronous>, transform_indices = @transform_10, window_bounds = array<i64: 10, 4>}, {pipeline_mode = #tpu.pipeline_mode<synchronous>, transform_indices = @transform_11, window_bounds = array<i64: 1, 4>}, {pipeline_mode = #tpu.pipeline_mode<synchronous>, transform_indices = @transform_12, window_bounds = array<i64: 2, 4>}]} {
    %c0 = arith.constant 0 : index
    %c0_0 = arith.constant 0 : index
    %0 = vector.load %arg1[%c0, %c0_0] : memref<16x64xf32, #tpu.memory_space<vmem>>, vector<16x64xf32>
    %c0_1 = arith.constant 0 : index
    %c0_2 = arith.constant 0 : index
    %1 = vector.load %arg2[%c0_1, %c0_2] : memref<64x96xf32, #tpu.memory_space<vmem>>, vector<64x96xf32>
    %cst = arith.constant dense<0.000000e+00> : vector<16x96xf32>
    %2 = tpu.matmul %0, %1, %cst {dimension_numbers = #tpu.dot_dimension_numbers<[1], [0], [0], [1], [0, 0, 1, 1], [], []>} : vector<16x64xf32>, vector<64x96xf32>, vector<16x96xf32> -> vector<16x96xf32>
    %c0_3 = arith.constant 0 : index
    %c0_4 = arith.constant 0 : index
    %3 = vector.load %arg4[%c0_3, %c0_4] : memref<1x96xf32, #tpu.memory_space<vmem>>, vector<1x96xf32>
    %4 = vector.broadcast %3 : vector<1x96xf32> to vector<16x96xf32>
    %5 = arith.addf %2, %4 : vector<16x96xf32>
    %c0_5 = arith.constant 0 : index
    %c0_6 = arith.constant 0 : index
    %6 = vector.load %arg14[%c0_5, %c0_6] : memref<16x96xf32, #tpu.memory_space<vmem>>, vector<16x96xf32>
    tpu.vector_store %arg14[%c0_5, %c0_6], %5 {strides = array<i32>} : memref<16x96xf32, #tpu.memory_space<vmem>>, vector<16x96xf32>,
    %c0_7 = arith.constant 0 : index
    %c0_8 = arith.constant 0 : index
    %7 = vector.load %arg3[%c0_7, %c0_8] : memref<32x96xf32, #tpu.memory_space<vmem>>, vector<32x96xf32>
    %c0_9 = arith.constant 0 : index
    %c0_10 = arith.constant 0 : index
    %8 = vector.load %arg5[%c0_9, %c0_10] : memref<1x32xf32, #tpu.memory_space<vmem>>, vector<1x32xf32>
    %9 = vector.shape_cast %8 : vector<1x32xf32> to vector<1x32xf32>
    %10 = vector.broadcast %9 : vector<1x32xf32> to vector<2x32xf32>
    %cst_11 = arith.constant 0.000000e+00 : f32
    %11 = vector.broadcast %cst_11 : f32 to vector<2x32xf32>
    %c0_i32 = arith.constant 0 : i32
    %c2_i32 = arith.constant 2 : i32
    %12 = arith.muli %c0_i32, %c2_i32 : i32
    %13 = arith.index_cast %12 : i32 to index
    %c0_12 = arith.constant 0 : index
    %14 = vector.load %arg14[%13, %c0_12] : memref<16x96xf32, #tpu.memory_space<vmem>>, vector<2x96xf32>
    %cst_13 = arith.constant dense<0.000000e+00> : vector<2x96xf32>
    %15 = tpu.matmul %11, %7, %cst_13 {dimension_numbers = #tpu.dot_dimension_numbers<[1], [0], [0], [1], [0, 0, 1, 1], [], []>} : vector<2x32xf32>, vector<32x96xf32>, vector<2x96xf32> -> vector<2x96xf32>
    %16 = vector.extract_strided_slice %14 {offsets = [0, 0], sizes = [2, 32], strides = [1, 1]} : vector<2x96xf32> to vector<2x32xf32>
    %17 = vector.extract_strided_slice %15 {offsets = [0, 0], sizes = [2, 32], strides = [1, 1]} : vector<2x96xf32> to vector<2x32xf32>
    %18 = arith.addf %16, %17 : vector<2x32xf32>
    %19 = arith.negf %18 : vector<2x32xf32>
    %20 = math.exp %19 : vector<2x32xf32>
    %cst_14 = arith.constant 1.000000e+00 : f32
    %21 = vector.broadcast %cst_14 : f32 to vector<2x32xf32>
    %22 = arith.addf %21, %20 : vector<2x32xf32>
    %23 = arith.divf %21, %22 : vector<2x32xf32>
    %24 = vector.extract_strided_slice %14 {offsets = [0, 32], sizes = [2, 32], strides = [1, 1]} : vector<2x96xf32> to vector<2x32xf32>
    %25 = vector.extract_strided_slice %15 {offsets = [0, 32], sizes = [2, 32], strides = [1, 1]} : vector<2x96xf32> to vector<2x32xf32>
    %26 = arith.addf %24, %25 : vector<2x32xf32>
    %27 = arith.negf %26 : vector<2x32xf32>
    %28 = math.exp %27 : vector<2x32xf32>
    %cst_15 = arith.constant 1.000000e+00 : f32
    %29 = vector.broadcast %cst_15 : f32 to vector<2x32xf32>
    %30 = arith.addf %29, %28 : vector<2x32xf32>
    %31 = arith.divf %29, %30 : vector<2x32xf32>
    %32 = vector.extract_strided_slice %14 {offsets = [0, 64], sizes = [2, 32], strides = [1, 1]} : vector<2x96xf32> to vector<2x32xf32>
    %33 = vector.extract_strided_slice %15 {offsets = [0, 64], sizes = [2, 32], strides = [1, 1]} : vector<2x96xf32> to vector<2x32xf32>
    %34 = arith.addf %33, %10 : vector<2x32xf32>
    %35 = arith.mulf %23, %34 : vector<2x32xf32>
    %36 = arith.addf %32, %35 : vector<2x32xf32>
    %37 = math.tanh %36 : vector<2x32xf32>
    %cst_16 = arith.constant 1.000000e+00 : f32
    %38 = vector.broadcast %cst_16 : f32 to vector<2x32xf32>
    %39 = arith.subf %38, %31 : vector<2x32xf32>
    %40 = arith.mulf %39, %37 : vector<2x32xf32>
    %41 = arith.mulf %31, %11 : vector<2x32xf32>
    %42 = arith.addf %40, %41 : vector<2x32xf32>
    %c1_i32 = arith.constant 1 : i32
    %c2_i32_17 = arith.constant 2 : i32
    %43 = arith.muli %c1_i32, %c2_i32_17 : i32
    %44 = arith.index_cast %43 : i32 to index
    %c0_18 = arith.constant 0 : index
    %45 = vector.load %arg14[%44, %c0_18] : memref<16x96xf32, #tpu.memory_space<vmem>>, vector<2x96xf32>
    %cst_19 = arith.constant dense<0.000000e+00> : vector<2x96xf32>
    %46 = tpu.matmul %42, %7, %cst_19 {dimension_numbers = #tpu.dot_dimension_numbers<[1], [0], [0], [1], [0, 0, 1, 1], [], []>} : vector<2x32xf32>, vector<32x96xf32>, vector<2x96xf32> -> vector<2x96xf32>
    %47 = vector.extract_strided_slice %45 {offsets = [0, 0], sizes = [2, 32], strides = [1, 1]} : vector<2x96xf32> to vector<2x32xf32>
    %48 = vector.extract_strided_slice %46 {offsets = [0, 0], sizes = [2, 32], strides = [1, 1]} : vector<2x96xf32> to vector<2x32xf32>
    %49 = arith.addf %47, %48 : vector<2x32xf32>
    %50 = arith.negf %49 : vector<2x32xf32>
    %51 = math.exp %50 : vector<2x32xf32>
    %cst_20 = arith.constant 1.000000e+00 : f32
    %52 = vector.broadcast %cst_20 : f32 to vector<2x32xf32>
    %53 = arith.addf %52, %51 : vector<2x32xf32>
    %54 = arith.divf %52, %53 : vector<2x32xf32>
    %55 = vector.extract_strided_slice %45 {offsets = [0, 32], sizes = [2, 32], strides = [1, 1]} : vector<2x96xf32> to vector<2x32xf32>
    %56 = vector.extract_strided_slice %46 {offsets = [0, 32], sizes = [2, 32], strides = [1, 1]} : vector<2x96xf32> to vector<2x32xf32>
    %57 = arith.addf %55, %56 : vector<2x32xf32>
    %58 = arith.negf %57 : vector<2x32xf32>
    %59 = math.exp %58 : vector<2x32xf32>
    %cst_21 = arith.constant 1.000000e+00 : f32
    %60 = vector.broadcast %cst_21 : f32 to vector<2x32xf32>
    %61 = arith.addf %60, %59 : vector<2x32xf32>
    %62 = arith.divf %60, %61 : vector<2x32xf32>
    %63 = vector.extract_strided_slice %45 {offsets = [0, 64], sizes = [2, 32], strides = [1, 1]} : vector<2x96xf32> to vector<2x32xf32>
    %64 = vector.extract_strided_slice %46 {offsets = [0, 64], sizes = [2, 32], strides = [1, 1]} : vector<2x96xf32> to vector<2x32xf32>
    %65 = arith.addf %64, %10 : vector<2x32xf32>
    %66 = arith.mulf %54, %65 : vector<2x32xf32>
    %67 = arith.addf %63, %66 : vector<2x32xf32>
    %68 = math.tanh %67 : vector<2x32xf32>
    %cst_22 = arith.constant 1.000000e+00 : f32
    %69 = vector.broadcast %cst_22 : f32 to vector<2x32xf32>
    %70 = arith.subf %69, %62 : vector<2x32xf32>
    %71 = arith.mulf %70, %68 : vector<2x32xf32>
    %72 = arith.mulf %62, %42 : vector<2x32xf32>
    %73 = arith.addf %71, %72 : vector<2x32xf32>
    %c2_i32_23 = arith.constant 2 : i32
    %c2_i32_24 = arith.constant 2 : i32
    %74 = arith.muli %c2_i32_23, %c2_i32_24 : i32
    %75 = arith.index_cast %74 : i32 to index
    %c0_25 = arith.constant 0 : index
    %76 = vector.load %arg14[%75, %c0_25] : memref<16x96xf32, #tpu.memory_space<vmem>>, vector<2x96xf32>
    %cst_26 = arith.constant dense<0.000000e+00> : vector<2x96xf32>
    %77 = tpu.matmul %73, %7, %cst_26 {dimension_numbers = #tpu.dot_dimension_numbers<[1], [0], [0], [1], [0, 0, 1, 1], [], []>} : vector<2x32xf32>, vector<32x96xf32>, vector<2x96xf32> -> vector<2x96xf32>
    %78 = vector.extract_strided_slice %76 {offsets = [0, 0], sizes = [2, 32], strides = [1, 1]} : vector<2x96xf32> to vector<2x32xf32>
    %79 = vector.extract_strided_slice %77 {offsets = [0, 0], sizes = [2, 32], strides = [1, 1]} : vector<2x96xf32> to vector<2x32xf32>
    %80 = arith.addf %78, %79 : vector<2x32xf32>
    %81 = arith.negf %80 : vector<2x32xf32>
    %82 = math.exp %81 : vector<2x32xf32>
    %cst_27 = arith.constant 1.000000e+00 : f32
    %83 = vector.broadcast %cst_27 : f32 to vector<2x32xf32>
    %84 = arith.addf %83, %82 : vector<2x32xf32>
    %85 = arith.divf %83, %84 : vector<2x32xf32>
    %86 = vector.extract_strided_slice %76 {offsets = [0, 32], sizes = [2, 32], strides = [1, 1]} : vector<2x96xf32> to vector<2x32xf32>
    %87 = vector.extract_strided_slice %77 {offsets = [0, 32], sizes = [2, 32], strides = [1, 1]} : vector<2x96xf32> to vector<2x32xf32>
    %88 = arith.addf %86, %87 : vector<2x32xf32>
    %89 = arith.negf %88 : vector<2x32xf32>
    %90 = math.exp %89 : vector<2x32xf32>
    %cst_28 = arith.constant 1.000000e+00 : f32
    %91 = vector.broadcast %cst_28 : f32 to vector<2x32xf32>
    %92 = arith.addf %91, %90 : vector<2x32xf32>
    %93 = arith.divf %91, %92 : vector<2x32xf32>
    %94 = vector.extract_strided_slice %76 {offsets = [0, 64], sizes = [2, 32], strides = [1, 1]} : vector<2x96xf32> to vector<2x32xf32>
    %95 = vector.extract_strided_slice %77 {offsets = [0, 64], sizes = [2, 32], strides = [1, 1]} : vector<2x96xf32> to vector<2x32xf32>
    %96 = arith.addf %95, %10 : vector<2x32xf32>
    %97 = arith.mulf %85, %96 : vector<2x32xf32>
    %98 = arith.addf %94, %97 : vector<2x32xf32>
    %99 = math.tanh %98 : vector<2x32xf32>
    %cst_29 = arith.constant 1.000000e+00 : f32
    %100 = vector.broadcast %cst_29 : f32 to vector<2x32xf32>
    %101 = arith.subf %100, %93 : vector<2x32xf32>
    %102 = arith.mulf %101, %99 : vector<2x32xf32>
    %103 = arith.mulf %93, %73 : vector<2x32xf32>
    %104 = arith.addf %102, %103 : vector<2x32xf32>
    %c3_i32 = arith.constant 3 : i32
    %c2_i32_30 = arith.constant 2 : i32
    %105 = arith.muli %c3_i32, %c2_i32_30 : i32
    %106 = arith.index_cast %105 : i32 to index
    %c0_31 = arith.constant 0 : index
    %107 = vector.load %arg14[%106, %c0_31] : memref<16x96xf32, #tpu.memory_space<vmem>>, vector<2x96xf32>
    %cst_32 = arith.constant dense<0.000000e+00> : vector<2x96xf32>
    %108 = tpu.matmul %104, %7, %cst_32 {dimension_numbers = #tpu.dot_dimension_numbers<[1], [0], [0], [1], [0, 0, 1, 1], [], []>} : vector<2x32xf32>, vector<32x96xf32>, vector<2x96xf32> -> vector<2x96xf32>
    %109 = vector.extract_strided_slice %107 {offsets = [0, 0], sizes = [2, 32], strides = [1, 1]} : vector<2x96xf32> to vector<2x32xf32>
    %110 = vector.extract_strided_slice %108 {offsets = [0, 0], sizes = [2, 32], strides = [1, 1]} : vector<2x96xf32> to vector<2x32xf32>
    %111 = arith.addf %109, %110 : vector<2x32xf32>
    %112 = arith.negf %111 : vector<2x32xf32>
    %113 = math.exp %112 : vector<2x32xf32>
    %cst_33 = arith.constant 1.000000e+00 : f32
    %114 = vector.broadcast %cst_33 : f32 to vector<2x32xf32>
    %115 = arith.addf %114, %113 : vector<2x32xf32>
    %116 = arith.divf %114, %115 : vector<2x32xf32>
    %117 = vector.extract_strided_slice %107 {offsets = [0, 32], sizes = [2, 32], strides = [1, 1]} : vector<2x96xf32> to vector<2x32xf32>
    %118 = vector.extract_strided_slice %108 {offsets = [0, 32], sizes = [2, 32], strides = [1, 1]} : vector<2x96xf32> to vector<2x32xf32>
    %119 = arith.addf %117, %118 : vector<2x32xf32>
    %120 = arith.negf %119 : vector<2x32xf32>
    %121 = math.exp %120 : vector<2x32xf32>
    %cst_34 = arith.constant 1.000000e+00 : f32
    %122 = vector.broadcast %cst_34 : f32 to vector<2x32xf32>
    %123 = arith.addf %122, %121 : vector<2x32xf32>
    %124 = arith.divf %122, %123 : vector<2x32xf32>
    %125 = vector.extract_strided_slice %107 {offsets = [0, 64], sizes = [2, 32], strides = [1, 1]} : vector<2x96xf32> to vector<2x32xf32>
    %126 = vector.extract_strided_slice %108 {offsets = [0, 64], sizes = [2, 32], strides = [1, 1]} : vector<2x96xf32> to vector<2x32xf32>
    %127 = arith.addf %126, %10 : vector<2x32xf32>
    %128 = arith.mulf %116, %127 : vector<2x32xf32>
    %129 = arith.addf %125, %128 : vector<2x32xf32>
    %130 = math.tanh %129 : vector<2x32xf32>
    %cst_35 = arith.constant 1.000000e+00 : f32
    %131 = vector.broadcast %cst_35 : f32 to vector<2x32xf32>
    %132 = arith.subf %131, %124 : vector<2x32xf32>
    %133 = arith.mulf %132, %130 : vector<2x32xf32>
    %134 = arith.mulf %124, %104 : vector<2x32xf32>
    %135 = arith.addf %133, %134 : vector<2x32xf32>
    %c4_i32 = arith.constant 4 : i32
    %c2_i32_36 = arith.constant 2 : i32
    %136 = arith.muli %c4_i32, %c2_i32_36 : i32
    %137 = arith.index_cast %136 : i32 to index
    %c0_37 = arith.constant 0 : index
    %138 = vector.load %arg14[%137, %c0_37] : memref<16x96xf32, #tpu.memory_space<vmem>>, vector<2x96xf32>
    %cst_38 = arith.constant dense<0.000000e+00> : vector<2x96xf32>
    %139 = tpu.matmul %135, %7, %cst_38 {dimension_numbers = #tpu.dot_dimension_numbers<[1], [0], [0], [1], [0, 0, 1, 1], [], []>} : vector<2x32xf32>, vector<32x96xf32>, vector<2x96xf32> -> vector<2x96xf32>
    %140 = vector.extract_strided_slice %138 {offsets = [0, 0], sizes = [2, 32], strides = [1, 1]} : vector<2x96xf32> to vector<2x32xf32>
    %141 = vector.extract_strided_slice %139 {offsets = [0, 0], sizes = [2, 32], strides = [1, 1]} : vector<2x96xf32> to vector<2x32xf32>
    %142 = arith.addf %140, %141 : vector<2x32xf32>
    %143 = arith.negf %142 : vector<2x32xf32>
    %144 = math.exp %143 : vector<2x32xf32>
    %cst_39 = arith.constant 1.000000e+00 : f32
    %145 = vector.broadcast %cst_39 : f32 to vector<2x32xf32>
    %146 = arith.addf %145, %144 : vector<2x32xf32>
    %147 = arith.divf %145, %146 : vector<2x32xf32>
    %148 = vector.extract_strided_slice %138 {offsets = [0, 32], sizes = [2, 32], strides = [1, 1]} : vector<2x96xf32> to vector<2x32xf32>
    %149 = vector.extract_strided_slice %139 {offsets = [0, 32], sizes = [2, 32], strides = [1, 1]} : vector<2x96xf32> to vector<2x32xf32>
    %150 = arith.addf %148, %149 : vector<2x32xf32>
    %151 = arith.negf %150 : vector<2x32xf32>
    %152 = math.exp %151 : vector<2x32xf32>
    %cst_40 = arith.constant 1.000000e+00 : f32
    %153 = vector.broadcast %cst_40 : f32 to vector<2x32xf32>
    %154 = arith.addf %153, %152 : vector<2x32xf32>
    %155 = arith.divf %153, %154 : vector<2x32xf32>
    %156 = vector.extract_strided_slice %138 {offsets = [0, 64], sizes = [2, 32], strides = [1, 1]} : vector<2x96xf32> to vector<2x32xf32>
    %157 = vector.extract_strided_slice %139 {offsets = [0, 64], sizes = [2, 32], strides = [1, 1]} : vector<2x96xf32> to vector<2x32xf32>
    %158 = arith.addf %157, %10 : vector<2x32xf32>
    %159 = arith.mulf %147, %158 : vector<2x32xf32>
    %160 = arith.addf %156, %159 : vector<2x32xf32>
    %161 = math.tanh %160 : vector<2x32xf32>
    %cst_41 = arith.constant 1.000000e+00 : f32
    %162 = vector.broadcast %cst_41 : f32 to vector<2x32xf32>
    %163 = arith.subf %162, %155 : vector<2x32xf32>
    %164 = arith.mulf %163, %161 : vector<2x32xf32>
    %165 = arith.mulf %155, %135 : vector<2x32xf32>
    %166 = arith.addf %164, %165 : vector<2x32xf32>
    %c5_i32 = arith.constant 5 : i32
    %c2_i32_42 = arith.constant 2 : i32
    %167 = arith.muli %c5_i32, %c2_i32_42 : i32
    %168 = arith.index_cast %167 : i32 to index
    %c0_43 = arith.constant 0 : index
    %169 = vector.load %arg14[%168, %c0_43] : memref<16x96xf32, #tpu.memory_space<vmem>>, vector<2x96xf32>
    %cst_44 = arith.constant dense<0.000000e+00> : vector<2x96xf32>
    %170 = tpu.matmul %166, %7, %cst_44 {dimension_numbers = #tpu.dot_dimension_numbers<[1], [0], [0], [1], [0, 0, 1, 1], [], []>} : vector<2x32xf32>, vector<32x96xf32>, vector<2x96xf32> -> vector<2x96xf32>
    %171 = vector.extract_strided_slice %169 {offsets = [0, 0], sizes = [2, 32], strides = [1, 1]} : vector<2x96xf32> to vector<2x32xf32>
    %172 = vector.extract_strided_slice %170 {offsets = [0, 0], sizes = [2, 32], strides = [1, 1]} : vector<2x96xf32> to vector<2x32xf32>
    %173 = arith.addf %171, %172 : vector<2x32xf32>
    %174 = arith.negf %173 : vector<2x32xf32>
    %175 = math.exp %174 : vector<2x32xf32>
    %cst_45 = arith.constant 1.000000e+00 : f32
    %176 = vector.broadcast %cst_45 : f32 to vector<2x32xf32>
    %177 = arith.addf %176, %175 : vector<2x32xf32>
    %178 = arith.divf %176, %177 : vector<2x32xf32>
    %179 = vector.extract_strided_slice %169 {offsets = [0, 32], sizes = [2, 32], strides = [1, 1]} : vector<2x96xf32> to vector<2x32xf32>
    %180 = vector.extract_strided_slice %170 {offsets = [0, 32], sizes = [2, 32], strides = [1, 1]} : vector<2x96xf32> to vector<2x32xf32>
    %181 = arith.addf %179, %180 : vector<2x32xf32>
    %182 = arith.negf %181 : vector<2x32xf32>
    %183 = math.exp %182 : vector<2x32xf32>
    %cst_46 = arith.constant 1.000000e+00 : f32
    %184 = vector.broadcast %cst_46 : f32 to vector<2x32xf32>
    %185 = arith.addf %184, %183 : vector<2x32xf32>
    %186 = arith.divf %184, %185 : vector<2x32xf32>
    %187 = vector.extract_strided_slice %169 {offsets = [0, 64], sizes = [2, 32], strides = [1, 1]} : vector<2x96xf32> to vector<2x32xf32>
    %188 = vector.extract_strided_slice %170 {offsets = [0, 64], sizes = [2, 32], strides = [1, 1]} : vector<2x96xf32> to vector<2x32xf32>
    %189 = arith.addf %188, %10 : vector<2x32xf32>
    %190 = arith.mulf %178, %189 : vector<2x32xf32>
    %191 = arith.addf %187, %190 : vector<2x32xf32>
    %192 = math.tanh %191 : vector<2x32xf32>
    %cst_47 = arith.constant 1.000000e+00 : f32
    %193 = vector.broadcast %cst_47 : f32 to vector<2x32xf32>
    %194 = arith.subf %193, %186 : vector<2x32xf32>
    %195 = arith.mulf %194, %192 : vector<2x32xf32>
    %196 = arith.mulf %186, %166 : vector<2x32xf32>
    %197 = arith.addf %195, %196 : vector<2x32xf32>
    %c6_i32 = arith.constant 6 : i32
    %c2_i32_48 = arith.constant 2 : i32
    %198 = arith.muli %c6_i32, %c2_i32_48 : i32
    %199 = arith.index_cast %198 : i32 to index
    %c0_49 = arith.constant 0 : index
    %200 = vector.load %arg14[%199, %c0_49] : memref<16x96xf32, #tpu.memory_space<vmem>>, vector<2x96xf32>
    %cst_50 = arith.constant dense<0.000000e+00> : vector<2x96xf32>
    %201 = tpu.matmul %197, %7, %cst_50 {dimension_numbers = #tpu.dot_dimension_numbers<[1], [0], [0], [1], [0, 0, 1, 1], [], []>} : vector<2x32xf32>, vector<32x96xf32>, vector<2x96xf32> -> vector<2x96xf32>
    %202 = vector.extract_strided_slice %200 {offsets = [0, 0], sizes = [2, 32], strides = [1, 1]} : vector<2x96xf32> to vector<2x32xf32>
    %203 = vector.extract_strided_slice %201 {offsets = [0, 0], sizes = [2, 32], strides = [1, 1]} : vector<2x96xf32> to vector<2x32xf32>
    %204 = arith.addf %202, %203 : vector<2x32xf32>
    %205 = arith.negf %204 : vector<2x32xf32>
    %206 = math.exp %205 : vector<2x32xf32>
    %cst_51 = arith.constant 1.000000e+00 : f32
    %207 = vector.broadcast %cst_51 : f32 to vector<2x32xf32>
    %208 = arith.addf %207, %206 : vector<2x32xf32>
    %209 = arith.divf %207, %208 : vector<2x32xf32>
    %210 = vector.extract_strided_slice %200 {offsets = [0, 32], sizes = [2, 32], strides = [1, 1]} : vector<2x96xf32> to vector<2x32xf32>
    %211 = vector.extract_strided_slice %201 {offsets = [0, 32], sizes = [2, 32], strides = [1, 1]} : vector<2x96xf32> to vector<2x32xf32>
    %212 = arith.addf %210, %211 : vector<2x32xf32>
    %213 = arith.negf %212 : vector<2x32xf32>
    %214 = math.exp %213 : vector<2x32xf32>
    %cst_52 = arith.constant 1.000000e+00 : f32
    %215 = vector.broadcast %cst_52 : f32 to vector<2x32xf32>
    %216 = arith.addf %215, %214 : vector<2x32xf32>
    %217 = arith.divf %215, %216 : vector<2x32xf32>
    %218 = vector.extract_strided_slice %200 {offsets = [0, 64], sizes = [2, 32], strides = [1, 1]} : vector<2x96xf32> to vector<2x32xf32>
    %219 = vector.extract_strided_slice %201 {offsets = [0, 64], sizes = [2, 32], strides = [1, 1]} : vector<2x96xf32> to vector<2x32xf32>
    %220 = arith.addf %219, %10 : vector<2x32xf32>
    %221 = arith.mulf %209, %220 : vector<2x32xf32>
    %222 = arith.addf %218, %221 : vector<2x32xf32>
    %223 = math.tanh %222 : vector<2x32xf32>
    %cst_53 = arith.constant 1.000000e+00 : f32
    %224 = vector.broadcast %cst_53 : f32 to vector<2x32xf32>
    %225 = arith.subf %224, %217 : vector<2x32xf32>
    %226 = arith.mulf %225, %223 : vector<2x32xf32>
    %227 = arith.mulf %217, %197 : vector<2x32xf32>
    %228 = arith.addf %226, %227 : vector<2x32xf32>
    %c7_i32 = arith.constant 7 : i32
    %c2_i32_54 = arith.constant 2 : i32
    %229 = arith.muli %c7_i32, %c2_i32_54 : i32
    %230 = arith.index_cast %229 : i32 to index
    %c0_55 = arith.constant 0 : index
    %231 = vector.load %arg14[%230, %c0_55] : memref<16x96xf32, #tpu.memory_space<vmem>>, vector<2x96xf32>
    %cst_56 = arith.constant dense<0.000000e+00> : vector<2x96xf32>
    %232 = tpu.matmul %228, %7, %cst_56 {dimension_numbers = #tpu.dot_dimension_numbers<[1], [0], [0], [1], [0, 0, 1, 1], [], []>} : vector<2x32xf32>, vector<32x96xf32>, vector<2x96xf32> -> vector<2x96xf32>
    %233 = vector.extract_strided_slice %231 {offsets = [0, 0], sizes = [2, 32], strides = [1, 1]} : vector<2x96xf32> to vector<2x32xf32>
    %234 = vector.extract_strided_slice %232 {offsets = [0, 0], sizes = [2, 32], strides = [1, 1]} : vector<2x96xf32> to vector<2x32xf32>
    %235 = arith.addf %233, %234 : vector<2x32xf32>
    %236 = arith.negf %235 : vector<2x32xf32>
    %237 = math.exp %236 : vector<2x32xf32>
    %cst_57 = arith.constant 1.000000e+00 : f32
    %238 = vector.broadcast %cst_57 : f32 to vector<2x32xf32>
    %239 = arith.addf %238, %237 : vector<2x32xf32>
    %240 = arith.divf %238, %239 : vector<2x32xf32>
    %241 = vector.extract_strided_slice %231 {offsets = [0, 32], sizes = [2, 32], strides = [1, 1]} : vector<2x96xf32> to vector<2x32xf32>
    %242 = vector.extract_strided_slice %232 {offsets = [0, 32], sizes = [2, 32], strides = [1, 1]} : vector<2x96xf32> to vector<2x32xf32>
    %243 = arith.addf %241, %242 : vector<2x32xf32>
    %244 = arith.negf %243 : vector<2x32xf32>
    %245 = math.exp %244 : vector<2x32xf32>
    %cst_58 = arith.constant 1.000000e+00 : f32
    %246 = vector.broadcast %cst_58 : f32 to vector<2x32xf32>
    %247 = arith.addf %246, %245 : vector<2x32xf32>
    %248 = arith.divf %246, %247 : vector<2x32xf32>
    %249 = vector.extract_strided_slice %231 {offsets = [0, 64], sizes = [2, 32], strides = [1, 1]} : vector<2x96xf32> to vector<2x32xf32>
    %250 = vector.extract_strided_slice %232 {offsets = [0, 64], sizes = [2, 32], strides = [1, 1]} : vector<2x96xf32> to vector<2x32xf32>
    %251 = arith.addf %250, %10 : vector<2x32xf32>
    %252 = arith.mulf %240, %251 : vector<2x32xf32>
    %253 = arith.addf %249, %252 : vector<2x32xf32>
    %254 = math.tanh %253 : vector<2x32xf32>
    %cst_59 = arith.constant 1.000000e+00 : f32
    %255 = vector.broadcast %cst_59 : f32 to vector<2x32xf32>
    %256 = arith.subf %255, %248 : vector<2x32xf32>
    %257 = arith.mulf %256, %254 : vector<2x32xf32>
    %258 = arith.mulf %248, %228 : vector<2x32xf32>
    %259 = arith.addf %257, %258 : vector<2x32xf32>
    %c8_i32 = arith.constant 8 : i32
    %c14 = arith.constant 14 : index
    %c0_60 = arith.constant 0 : index
    %260 = vector.load %arg1[%c14, %c0_60] : memref<16x64xf32, #tpu.memory_space<vmem>>, vector<2x64xf32>
    %c0_61 = arith.constant 0 : index
    %c0_62 = arith.constant 0 : index
    %261 = vector.load %arg6[%c0_61, %c0_62] : memref<64x96xf32, #tpu.memory_space<vmem>>, vector<64x96xf32>
    %cst_63 = arith.constant dense<0.000000e+00> : vector<2x96xf32>
    %262 = tpu.matmul %260, %261, %cst_63 {dimension_numbers = #tpu.dot_dimension_numbers<[1], [0], [0], [1], [0, 0, 1, 1], [], []>} : vector<2x64xf32>, vector<64x96xf32>, vector<2x96xf32> -> vector<2x96xf32>
    %c0_64 = arith.constant 0 : index
    %c0_65 = arith.constant 0 : index
    %263 = vector.load %arg7[%c0_64, %c0_65] : memref<1x96xf32, #tpu.memory_space<vmem>>, vector<1x96xf32>
    %264 = vector.broadcast %263 : vector<1x96xf32> to vector<2x96xf32>
    %265 = arith.addf %262, %264 : vector<2x96xf32>
    %c0_66 = arith.constant 0 : index
    %c0_67 = arith.constant 0 : index
    %266 = vector.load %arg8[%c0_66, %c0_67] : memref<1x32xf32, #tpu.memory_space<vmem>>, vector<1x32xf32>
    %267 = vector.shape_cast %266 : vector<1x32xf32> to vector<1x32xf32>
    %268 = vector.broadcast %267 : vector<1x32xf32> to vector<2x32xf32>
    %cst_68 = arith.constant 0.000000e+00 : f32
    %269 = vector.broadcast %cst_68 : f32 to vector<2x96xf32>
    %cst_69 = arith.constant 0.000000e+00 : f32
    %270 = vector.broadcast %cst_69 : f32 to vector<2x32xf32>
    %271 = vector.extract_strided_slice %265 {offsets = [0, 0], sizes = [2, 32], strides = [1, 1]} : vector<2x96xf32> to vector<2x32xf32>
    %272 = vector.extract_strided_slice %269 {offsets = [0, 0], sizes = [2, 32], strides = [1, 1]} : vector<2x96xf32> to vector<2x32xf32>
    %273 = arith.addf %271, %272 : vector<2x32xf32>
    %274 = arith.negf %273 : vector<2x32xf32>
    %275 = math.exp %274 : vector<2x32xf32>
    %cst_70 = arith.constant 1.000000e+00 : f32
    %276 = vector.broadcast %cst_70 : f32 to vector<2x32xf32>
    %277 = arith.addf %276, %275 : vector<2x32xf32>
    %278 = arith.divf %276, %277 : vector<2x32xf32>
    %279 = vector.extract_strided_slice %265 {offsets = [0, 32], sizes = [2, 32], strides = [1, 1]} : vector<2x96xf32> to vector<2x32xf32>
    %280 = vector.extract_strided_slice %269 {offsets = [0, 32], sizes = [2, 32], strides = [1, 1]} : vector<2x96xf32> to vector<2x32xf32>
    %281 = arith.addf %279, %280 : vector<2x32xf32>
    %282 = arith.negf %281 : vector<2x32xf32>
    %283 = math.exp %282 : vector<2x32xf32>
    %cst_71 = arith.constant 1.000000e+00 : f32
    %284 = vector.broadcast %cst_71 : f32 to vector<2x32xf32>
    %285 = arith.addf %284, %283 : vector<2x32xf32>
    %286 = arith.divf %284, %285 : vector<2x32xf32>
    %287 = vector.extract_strided_slice %265 {offsets = [0, 64], sizes = [2, 32], strides = [1, 1]} : vector<2x96xf32> to vector<2x32xf32>
    %288 = vector.extract_strided_slice %269 {offsets = [0, 64], sizes = [2, 32], strides = [1, 1]} : vector<2x96xf32> to vector<2x32xf32>
    %289 = arith.addf %288, %268 : vector<2x32xf32>
    %290 = arith.mulf %278, %289 : vector<2x32xf32>
    %291 = arith.addf %287, %290 : vector<2x32xf32>
    %292 = math.tanh %291 : vector<2x32xf32>
    %cst_72 = arith.constant 1.000000e+00 : f32
    %293 = vector.broadcast %cst_72 : f32 to vector<2x32xf32>
    %294 = arith.subf %293, %286 : vector<2x32xf32>
    %295 = arith.mulf %294, %292 : vector<2x32xf32>
    %296 = arith.mulf %286, %270 : vector<2x32xf32>
    %297 = arith.addf %295, %296 : vector<2x32xf32>
    %c0_73 = arith.constant 0 : index
    %c0_74 = arith.constant 0 : index
    %298 = vector.load %arg9[%c0_73, %c0_74] : memref<64x10xf32, #tpu.memory_space<vmem>>, vector<32x10xf32>
    %cst_75 = arith.constant dense<0.000000e+00> : vector<2x10xf32>
    %299 = tpu.matmul %259, %298, %cst_75 {dimension_numbers = #tpu.dot_dimension_numbers<[1], [0], [0], [1], [0, 0, 1, 1], [], []>} : vector<2x32xf32>, vector<32x10xf32>, vector<2x10xf32> -> vector<2x10xf32>
    %c32 = arith.constant 32 : index
    %c0_76 = arith.constant 0 : index
    %300 = vector.load %arg9[%c32, %c0_76] : memref<64x10xf32, #tpu.memory_space<vmem>>, vector<32x10xf32>
    %cst_77 = arith.constant dense<0.000000e+00> : vector<2x10xf32>
    %301 = tpu.matmul %297, %300, %cst_77 {dimension_numbers = #tpu.dot_dimension_numbers<[1], [0], [0], [1], [0, 0, 1, 1], [], []>} : vector<2x32xf32>, vector<32x10xf32>, vector<2x10xf32> -> vector<2x10xf32>
    %302 = arith.addf %299, %301 : vector<2x10xf32>
    %c0_78 = arith.constant 0 : index
    %c0_79 = arith.constant 0 : index
    %303 = vector.load %arg10[%c0_78, %c0_79] : memref<1x10xf32, #tpu.memory_space<vmem>>, vector<1x10xf32>
    %304 = vector.broadcast %303 : vector<1x10xf32> to vector<2x10xf32>
    %305 = arith.addf %302, %304 : vector<2x10xf32>
    %cst_80 = arith.constant 0.000000e+00 : f32
    %306 = vector.broadcast %cst_80 : f32 to vector<2x10xf32>
    %307 = arith.maximumf %305, %306 : vector<2x10xf32>
    %c0_81 = arith.constant 0 : index
    %c0_82 = arith.constant 0 : index
    %308 = vector.load %arg11[%c0_81, %c0_82] : memref<10x4xf32, #tpu.memory_space<vmem>>, vector<10x4xf32>
    %cst_83 = arith.constant dense<0.000000e+00> : vector<2x4xf32>
    %309 = tpu.matmul %307, %308, %cst_83 {dimension_numbers = #tpu.dot_dimension_numbers<[1], [0], [0], [1], [0, 0, 1, 1], [], []>} : vector<2x10xf32>, vector<10x4xf32>, vector<2x4xf32> -> vector<2x4xf32>
    %c0_84 = arith.constant 0 : index
    %c0_85 = arith.constant 0 : index
    %310 = vector.load %arg12[%c0_84, %c0_85] : memref<1x4xf32, #tpu.memory_space<vmem>>, vector<1x4xf32>
    %311 = vector.broadcast %310 : vector<1x4xf32> to vector<2x4xf32>
    %312 = arith.addf %309, %311 : vector<2x4xf32>
    %c0_86 = arith.constant 0 : index
    %c0_87 = arith.constant 0 : index
    %313 = vector.load %arg13[%c0_86, %c0_87] : memref<2x4xf32, #tpu.memory_space<vmem>>, vector<2x4xf32>
    tpu.vector_store %arg13[%c0_86, %c0_87], %312 {strides = array<i32>} : memref<2x4xf32, #tpu.memory_space<vmem>>, vector<2x4xf32>,
    return
  }
  func.func @transform_0(%arg0: i32) -> (i32, i32) {
    %c0_i32 = arith.constant 0 : i32
    %c0_i32_0 = arith.constant 0 : i32
    %c0_i32_1 = arith.constant 0 : i32
    return %c0_i32, %c0_i32_0 : i32, i32
  }
  func.func @transform_1(%arg0: i32) -> (i32, i32) {
    %c0_i32 = arith.constant 0 : i32
    %c0_i32_0 = arith.constant 0 : i32
    %c0_i32_1 = arith.constant 0 : i32
    return %c0_i32, %c0_i32_0 : i32, i32
  }
  func.func @transform_2(%arg0: i32) -> (i32, i32) {
    %c0_i32 = arith.constant 0 : i32
    %c0_i32_0 = arith.constant 0 : i32
    %c0_i32_1 = arith.constant 0 : i32
    return %c0_i32, %c0_i32_0 : i32, i32
  }
  func.func @transform_3(%arg0: i32) -> (i32, i32) {
    %c0_i32 = arith.constant 0 : i32
    %c0_i32_0 = arith.constant 0 : i32
    %c0_i32_1 = arith.constant 0 : i32
    return %c0_i32, %c0_i32_0 : i32, i32
  }
  func.func @transform_4(%arg0: i32) -> (i32, i32) {
    %c0_i32 = arith.constant 0 : i32
    %c0_i32_0 = arith.constant 0 : i32
    %c0_i32_1 = arith.constant 0 : i32
    return %c0_i32, %c0_i32_0 : i32, i32
  }
  func.func @transform_5(%arg0: i32) -> (i32, i32) {
    %c0_i32 = arith.constant 0 : i32
    %c0_i32_0 = arith.constant 0 : i32
    %c0_i32_1 = arith.constant 0 : i32
    return %c0_i32, %c0_i32_0 : i32, i32
  }
  func.func @transform_6(%arg0: i32) -> (i32, i32) {
    %c0_i32 = arith.constant 0 : i32
    %c0_i32_0 = arith.constant 0 : i32
    %c0_i32_1 = arith.constant 0 : i32
    return %c0_i32, %c0_i32_0 : i32, i32
  }
  func.func @transform_7(%arg0: i32) -> (i32, i32) {
    %c0_i32 = arith.constant 0 : i32
    %c0_i32_0 = arith.constant 0 : i32
    %c0_i32_1 = arith.constant 0 : i32
    return %c0_i32, %c0_i32_0 : i32, i32
  }
  func.func @transform_8(%arg0: i32) -> (i32, i32) {
    %c0_i32 = arith.constant 0 : i32
    %c0_i32_0 = arith.constant 0 : i32
    %c0_i32_1 = arith.constant 0 : i32
    return %c0_i32, %c0_i32_0 : i32, i32
  }
  func.func @transform_9(%arg0: i32) -> (i32, i32) {
    %c0_i32 = arith.constant 0 : i32
    %c0_i32_0 = arith.constant 0 : i32
    %c0_i32_1 = arith.constant 0 : i32
    return %c0_i32, %c0_i32_0 : i32, i32
  }
  func.func @transform_10(%arg0: i32) -> (i32, i32) {
    %c0_i32 = arith.constant 0 : i32
    %c0_i32_0 = arith.constant 0 : i32
    %c0_i32_1 = arith.constant 0 : i32
    return %c0_i32, %c0_i32_0 : i32, i32
  }
  func.func @transform_11(%arg0: i32) -> (i32, i32) {
    %c0_i32 = arith.constant 0 : i32
    %c0_i32_0 = arith.constant 0 : i32
    %c0_i32_1 = arith.constant 0 : i32
    return %c0_i32, %c0_i32_0 : i32, i32
  }
  func.func @transform_12(%arg0: i32) -> (i32, i32) {
    %c0_i32 = arith.constant 0 : i32
    %c0_i32_0 = arith.constant 0 : i32
    %c0_i32_1 = arith.constant 0 : i32
    return %c0_i32, %c0_i32_0 : i32, i32
  }
}

module attributes {stable_mosaic.version = 11 : i64} {
  func.func @_bigru_layer_kernel(%arg0: i32, %arg1: memref<16x16xf32, #tpu.memory_space<vmem>>, %arg2: memref<16x96xf32, #tpu.memory_space<vmem>>, %arg3: memref<32x96xf32, #tpu.memory_space<vmem>>, %arg4: memref<1x96xf32, #tpu.memory_space<vmem>>, %arg5: memref<1x32xf32, #tpu.memory_space<vmem>>, %arg6: memref<16x96xf32, #tpu.memory_space<vmem>>, %arg7: memref<32x96xf32, #tpu.memory_space<vmem>>, %arg8: memref<1x96xf32, #tpu.memory_space<vmem>>, %arg9: memref<1x32xf32, #tpu.memory_space<vmem>>, %arg10: memref<8x2x64xf32, #tpu.memory_space<vmem>>, %arg11: memref<16x96xf32, #tpu.memory_space<vmem>>, %arg12: memref<16x96xf32, #tpu.memory_space<vmem>>, %arg13: memref<8x2x32xf32, #tpu.memory_space<vmem>>, %arg14: memref<8x2x32xf32, #tpu.memory_space<vmem>>) attributes {dimension_semantics = [#tpu.dimension_semantics<arbitrary>], iteration_bounds = array<i64: 1>, scalar_prefetch = 0 : i64, scratch_operands = 4 : i64, tpu.core_type = #tpu.core_type<tc>, window_params = [{pipeline_mode = #tpu.pipeline_mode<synchronous>, transform_indices = @transform_0, window_bounds = array<i64: 16, 16>}, {pipeline_mode = #tpu.pipeline_mode<synchronous>, transform_indices = @transform_1, window_bounds = array<i64: 16, 96>}, {pipeline_mode = #tpu.pipeline_mode<synchronous>, transform_indices = @transform_2, window_bounds = array<i64: 32, 96>}, {pipeline_mode = #tpu.pipeline_mode<synchronous>, transform_indices = @transform_3, window_bounds = array<i64: 1, 96>}, {pipeline_mode = #tpu.pipeline_mode<synchronous>, transform_indices = @transform_4, window_bounds = array<i64: 1, 32>}, {pipeline_mode = #tpu.pipeline_mode<synchronous>, transform_indices = @transform_5, window_bounds = array<i64: 16, 96>}, {pipeline_mode = #tpu.pipeline_mode<synchronous>, transform_indices = @transform_6, window_bounds = array<i64: 32, 96>}, {pipeline_mode = #tpu.pipeline_mode<synchronous>, transform_indices = @transform_7, window_bounds = array<i64: 1, 96>}, {pipeline_mode = #tpu.pipeline_mode<synchronous>, transform_indices = @transform_8, window_bounds = array<i64: 1, 32>}, {pipeline_mode = #tpu.pipeline_mode<synchronous>, transform_indices = @transform_9, window_bounds = array<i64: 8, 2, 64>}]} {
    %c0 = arith.constant 0 : index
    %c0_0 = arith.constant 0 : index
    %0 = vector.load %arg1[%c0, %c0_0] : memref<16x16xf32, #tpu.memory_space<vmem>>, vector<16x16xf32>
    %c0_1 = arith.constant 0 : index
    %c0_2 = arith.constant 0 : index
    %1 = vector.load %arg2[%c0_1, %c0_2] : memref<16x96xf32, #tpu.memory_space<vmem>>, vector<16x96xf32>
    %cst = arith.constant dense<0.000000e+00> : vector<16x96xf32>
    %2 = tpu.matmul %0, %1, %cst {dimension_numbers = #tpu.dot_dimension_numbers<[1], [0], [0], [1], [0, 0, 1, 1], [], []>} : vector<16x16xf32>, vector<16x96xf32>, vector<16x96xf32> -> vector<16x96xf32>
    %c0_3 = arith.constant 0 : index
    %c0_4 = arith.constant 0 : index
    %3 = vector.load %arg4[%c0_3, %c0_4] : memref<1x96xf32, #tpu.memory_space<vmem>>, vector<1x96xf32>
    %4 = vector.broadcast %3 : vector<1x96xf32> to vector<16x96xf32>
    %5 = arith.addf %2, %4 : vector<16x96xf32>
    %c0_5 = arith.constant 0 : index
    %c0_6 = arith.constant 0 : index
    %6 = vector.load %arg11[%c0_5, %c0_6] : memref<16x96xf32, #tpu.memory_space<vmem>>, vector<16x96xf32>
    tpu.vector_store %arg11[%c0_5, %c0_6], %5 {strides = array<i32>} : memref<16x96xf32, #tpu.memory_space<vmem>>, vector<16x96xf32>,
    %c0_7 = arith.constant 0 : index
    %c0_8 = arith.constant 0 : index
    %7 = vector.load %arg6[%c0_7, %c0_8] : memref<16x96xf32, #tpu.memory_space<vmem>>, vector<16x96xf32>
    %cst_9 = arith.constant dense<0.000000e+00> : vector<16x96xf32>
    %8 = tpu.matmul %0, %7, %cst_9 {dimension_numbers = #tpu.dot_dimension_numbers<[1], [0], [0], [1], [0, 0, 1, 1], [], []>} : vector<16x16xf32>, vector<16x96xf32>, vector<16x96xf32> -> vector<16x96xf32>
    %c0_10 = arith.constant 0 : index
    %c0_11 = arith.constant 0 : index
    %9 = vector.load %arg8[%c0_10, %c0_11] : memref<1x96xf32, #tpu.memory_space<vmem>>, vector<1x96xf32>
    %10 = vector.broadcast %9 : vector<1x96xf32> to vector<16x96xf32>
    %11 = arith.addf %8, %10 : vector<16x96xf32>
    %c0_12 = arith.constant 0 : index
    %c0_13 = arith.constant 0 : index
    %12 = vector.load %arg12[%c0_12, %c0_13] : memref<16x96xf32, #tpu.memory_space<vmem>>, vector<16x96xf32>
    tpu.vector_store %arg12[%c0_12, %c0_13], %11 {strides = array<i32>} : memref<16x96xf32, #tpu.memory_space<vmem>>, vector<16x96xf32>,
    %c0_14 = arith.constant 0 : index
    %c0_15 = arith.constant 0 : index
    %13 = vector.load %arg3[%c0_14, %c0_15] : memref<32x96xf32, #tpu.memory_space<vmem>>, vector<32x96xf32>
    %c0_16 = arith.constant 0 : index
    %c0_17 = arith.constant 0 : index
    %14 = vector.load %arg7[%c0_16, %c0_17] : memref<32x96xf32, #tpu.memory_space<vmem>>, vector<32x96xf32>
    %c0_18 = arith.constant 0 : index
    %c0_19 = arith.constant 0 : index
    %15 = vector.load %arg5[%c0_18, %c0_19] : memref<1x32xf32, #tpu.memory_space<vmem>>, vector<1x32xf32>
    %16 = vector.shape_cast %15 : vector<1x32xf32> to vector<1x32xf32>
    %17 = vector.broadcast %16 : vector<1x32xf32> to vector<2x32xf32>
    %c0_20 = arith.constant 0 : index
    %c0_21 = arith.constant 0 : index
    %18 = vector.load %arg9[%c0_20, %c0_21] : memref<1x32xf32, #tpu.memory_space<vmem>>, vector<1x32xf32>
    %19 = vector.shape_cast %18 : vector<1x32xf32> to vector<1x32xf32>
    %20 = vector.broadcast %19 : vector<1x32xf32> to vector<2x32xf32>
    %cst_22 = arith.constant 0.000000e+00 : f32
    %21 = vector.broadcast %cst_22 : f32 to vector<2x32xf32>
    %c0_i32 = arith.constant 0 : i32
    %c7_i32 = arith.constant 7 : i32
    %22 = arith.subi %c7_i32, %c0_i32 : i32
    %c2_i32 = arith.constant 2 : i32
    %23 = arith.muli %c0_i32, %c2_i32 : i32
    %24 = arith.index_cast %23 : i32 to index
    %c0_23 = arith.constant 0 : index
    %25 = vector.load %arg11[%24, %c0_23] : memref<16x96xf32, #tpu.memory_space<vmem>>, vector<2x96xf32>
    %c2_i32_24 = arith.constant 2 : i32
    %26 = arith.muli %22, %c2_i32_24 : i32
    %27 = arith.index_cast %26 : i32 to index
    %c0_25 = arith.constant 0 : index
    %28 = vector.load %arg12[%27, %c0_25] : memref<16x96xf32, #tpu.memory_space<vmem>>, vector<2x96xf32>
    %cst_26 = arith.constant dense<0.000000e+00> : vector<2x96xf32>
    %29 = tpu.matmul %21, %13, %cst_26 {dimension_numbers = #tpu.dot_dimension_numbers<[1], [0], [0], [1], [0, 0, 1, 1], [], []>} : vector<2x32xf32>, vector<32x96xf32>, vector<2x96xf32> -> vector<2x96xf32>
    %cst_27 = arith.constant dense<0.000000e+00> : vector<2x96xf32>
    %30 = tpu.matmul %21, %14, %cst_27 {dimension_numbers = #tpu.dot_dimension_numbers<[1], [0], [0], [1], [0, 0, 1, 1], [], []>} : vector<2x32xf32>, vector<32x96xf32>, vector<2x96xf32> -> vector<2x96xf32>
    %31 = vector.extract_strided_slice %25 {offsets = [0, 0], sizes = [2, 32], strides = [1, 1]} : vector<2x96xf32> to vector<2x32xf32>
    %32 = vector.extract_strided_slice %29 {offsets = [0, 0], sizes = [2, 32], strides = [1, 1]} : vector<2x96xf32> to vector<2x32xf32>
    %33 = arith.addf %31, %32 : vector<2x32xf32>
    %34 = arith.negf %33 : vector<2x32xf32>
    %35 = math.exp %34 : vector<2x32xf32>
    %cst_28 = arith.constant 1.000000e+00 : f32
    %36 = vector.broadcast %cst_28 : f32 to vector<2x32xf32>
    %37 = arith.addf %36, %35 : vector<2x32xf32>
    %38 = arith.divf %36, %37 : vector<2x32xf32>
    %39 = vector.extract_strided_slice %25 {offsets = [0, 32], sizes = [2, 32], strides = [1, 1]} : vector<2x96xf32> to vector<2x32xf32>
    %40 = vector.extract_strided_slice %29 {offsets = [0, 32], sizes = [2, 32], strides = [1, 1]} : vector<2x96xf32> to vector<2x32xf32>
    %41 = arith.addf %39, %40 : vector<2x32xf32>
    %42 = arith.negf %41 : vector<2x32xf32>
    %43 = math.exp %42 : vector<2x32xf32>
    %cst_29 = arith.constant 1.000000e+00 : f32
    %44 = vector.broadcast %cst_29 : f32 to vector<2x32xf32>
    %45 = arith.addf %44, %43 : vector<2x32xf32>
    %46 = arith.divf %44, %45 : vector<2x32xf32>
    %47 = vector.extract_strided_slice %25 {offsets = [0, 64], sizes = [2, 32], strides = [1, 1]} : vector<2x96xf32> to vector<2x32xf32>
    %48 = vector.extract_strided_slice %29 {offsets = [0, 64], sizes = [2, 32], strides = [1, 1]} : vector<2x96xf32> to vector<2x32xf32>
    %49 = arith.addf %48, %17 : vector<2x32xf32>
    %50 = arith.mulf %38, %49 : vector<2x32xf32>
    %51 = arith.addf %47, %50 : vector<2x32xf32>
    %52 = math.tanh %51 : vector<2x32xf32>
    %cst_30 = arith.constant 1.000000e+00 : f32
    %53 = vector.broadcast %cst_30 : f32 to vector<2x32xf32>
    %54 = arith.subf %53, %46 : vector<2x32xf32>
    %55 = arith.mulf %54, %52 : vector<2x32xf32>
    %56 = arith.mulf %46, %21 : vector<2x32xf32>
    %57 = arith.addf %55, %56 : vector<2x32xf32>
    %58 = vector.extract_strided_slice %28 {offsets = [0, 0], sizes = [2, 32], strides = [1, 1]} : vector<2x96xf32> to vector<2x32xf32>
    %59 = vector.extract_strided_slice %30 {offsets = [0, 0], sizes = [2, 32], strides = [1, 1]} : vector<2x96xf32> to vector<2x32xf32>
    %60 = arith.addf %58, %59 : vector<2x32xf32>
    %61 = arith.negf %60 : vector<2x32xf32>
    %62 = math.exp %61 : vector<2x32xf32>
    %cst_31 = arith.constant 1.000000e+00 : f32
    %63 = vector.broadcast %cst_31 : f32 to vector<2x32xf32>
    %64 = arith.addf %63, %62 : vector<2x32xf32>
    %65 = arith.divf %63, %64 : vector<2x32xf32>
    %66 = vector.extract_strided_slice %28 {offsets = [0, 32], sizes = [2, 32], strides = [1, 1]} : vector<2x96xf32> to vector<2x32xf32>
    %67 = vector.extract_strided_slice %30 {offsets = [0, 32], sizes = [2, 32], strides = [1, 1]} : vector<2x96xf32> to vector<2x32xf32>
    %68 = arith.addf %66, %67 : vector<2x32xf32>
    %69 = arith.negf %68 : vector<2x32xf32>
    %70 = math.exp %69 : vector<2x32xf32>
    %cst_32 = arith.constant 1.000000e+00 : f32
    %71 = vector.broadcast %cst_32 : f32 to vector<2x32xf32>
    %72 = arith.addf %71, %70 : vector<2x32xf32>
    %73 = arith.divf %71, %72 : vector<2x32xf32>
    %74 = vector.extract_strided_slice %28 {offsets = [0, 64], sizes = [2, 32], strides = [1, 1]} : vector<2x96xf32> to vector<2x32xf32>
    %75 = vector.extract_strided_slice %30 {offsets = [0, 64], sizes = [2, 32], strides = [1, 1]} : vector<2x96xf32> to vector<2x32xf32>
    %76 = arith.addf %75, %20 : vector<2x32xf32>
    %77 = arith.mulf %65, %76 : vector<2x32xf32>
    %78 = arith.addf %74, %77 : vector<2x32xf32>
    %79 = math.tanh %78 : vector<2x32xf32>
    %cst_33 = arith.constant 1.000000e+00 : f32
    %80 = vector.broadcast %cst_33 : f32 to vector<2x32xf32>
    %81 = arith.subf %80, %73 : vector<2x32xf32>
    %82 = arith.mulf %81, %79 : vector<2x32xf32>
    %83 = arith.mulf %73, %21 : vector<2x32xf32>
    %84 = arith.addf %82, %83 : vector<2x32xf32>
    %85 = arith.index_cast %c0_i32 : i32 to index
    %c0_34 = arith.constant 0 : index
    %c0_35 = arith.constant 0 : index
    %86 = vector.load %arg13[%85, %c0_34, %c0_35] : memref<8x2x32xf32, #tpu.memory_space<vmem>>, vector<1x2x32xf32>
    %87 = vector.shape_cast %86 : vector<1x2x32xf32> to vector<2x32xf32>
    %88 = vector.shape_cast %57 : vector<2x32xf32> to vector<1x2x32xf32>
    tpu.vector_store %arg13[%85, %c0_34, %c0_35], %88 {strides = array<i32>} : memref<8x2x32xf32, #tpu.memory_space<vmem>>, vector<1x2x32xf32>,
    %89 = arith.index_cast %22 : i32 to index
    %c0_36 = arith.constant 0 : index
    %c0_37 = arith.constant 0 : index
    %90 = vector.load %arg14[%89, %c0_36, %c0_37] : memref<8x2x32xf32, #tpu.memory_space<vmem>>, vector<1x2x32xf32>
    %91 = vector.shape_cast %90 : vector<1x2x32xf32> to vector<2x32xf32>
    %92 = vector.shape_cast %84 : vector<2x32xf32> to vector<1x2x32xf32>
    tpu.vector_store %arg14[%89, %c0_36, %c0_37], %92 {strides = array<i32>} : memref<8x2x32xf32, #tpu.memory_space<vmem>>, vector<1x2x32xf32>,
    %c1_i32 = arith.constant 1 : i32
    %c7_i32_38 = arith.constant 7 : i32
    %93 = arith.subi %c7_i32_38, %c1_i32 : i32
    %c2_i32_39 = arith.constant 2 : i32
    %94 = arith.muli %c1_i32, %c2_i32_39 : i32
    %95 = arith.index_cast %94 : i32 to index
    %c0_40 = arith.constant 0 : index
    %96 = vector.load %arg11[%95, %c0_40] : memref<16x96xf32, #tpu.memory_space<vmem>>, vector<2x96xf32>
    %c2_i32_41 = arith.constant 2 : i32
    %97 = arith.muli %93, %c2_i32_41 : i32
    %98 = arith.index_cast %97 : i32 to index
    %c0_42 = arith.constant 0 : index
    %99 = vector.load %arg12[%98, %c0_42] : memref<16x96xf32, #tpu.memory_space<vmem>>, vector<2x96xf32>
    %cst_43 = arith.constant dense<0.000000e+00> : vector<2x96xf32>
    %100 = tpu.matmul %57, %13, %cst_43 {dimension_numbers = #tpu.dot_dimension_numbers<[1], [0], [0], [1], [0, 0, 1, 1], [], []>} : vector<2x32xf32>, vector<32x96xf32>, vector<2x96xf32> -> vector<2x96xf32>
    %cst_44 = arith.constant dense<0.000000e+00> : vector<2x96xf32>
    %101 = tpu.matmul %84, %14, %cst_44 {dimension_numbers = #tpu.dot_dimension_numbers<[1], [0], [0], [1], [0, 0, 1, 1], [], []>} : vector<2x32xf32>, vector<32x96xf32>, vector<2x96xf32> -> vector<2x96xf32>
    %102 = vector.extract_strided_slice %96 {offsets = [0, 0], sizes = [2, 32], strides = [1, 1]} : vector<2x96xf32> to vector<2x32xf32>
    %103 = vector.extract_strided_slice %100 {offsets = [0, 0], sizes = [2, 32], strides = [1, 1]} : vector<2x96xf32> to vector<2x32xf32>
    %104 = arith.addf %102, %103 : vector<2x32xf32>
    %105 = arith.negf %104 : vector<2x32xf32>
    %106 = math.exp %105 : vector<2x32xf32>
    %cst_45 = arith.constant 1.000000e+00 : f32
    %107 = vector.broadcast %cst_45 : f32 to vector<2x32xf32>
    %108 = arith.addf %107, %106 : vector<2x32xf32>
    %109 = arith.divf %107, %108 : vector<2x32xf32>
    %110 = vector.extract_strided_slice %96 {offsets = [0, 32], sizes = [2, 32], strides = [1, 1]} : vector<2x96xf32> to vector<2x32xf32>
    %111 = vector.extract_strided_slice %100 {offsets = [0, 32], sizes = [2, 32], strides = [1, 1]} : vector<2x96xf32> to vector<2x32xf32>
    %112 = arith.addf %110, %111 : vector<2x32xf32>
    %113 = arith.negf %112 : vector<2x32xf32>
    %114 = math.exp %113 : vector<2x32xf32>
    %cst_46 = arith.constant 1.000000e+00 : f32
    %115 = vector.broadcast %cst_46 : f32 to vector<2x32xf32>
    %116 = arith.addf %115, %114 : vector<2x32xf32>
    %117 = arith.divf %115, %116 : vector<2x32xf32>
    %118 = vector.extract_strided_slice %96 {offsets = [0, 64], sizes = [2, 32], strides = [1, 1]} : vector<2x96xf32> to vector<2x32xf32>
    %119 = vector.extract_strided_slice %100 {offsets = [0, 64], sizes = [2, 32], strides = [1, 1]} : vector<2x96xf32> to vector<2x32xf32>
    %120 = arith.addf %119, %17 : vector<2x32xf32>
    %121 = arith.mulf %109, %120 : vector<2x32xf32>
    %122 = arith.addf %118, %121 : vector<2x32xf32>
    %123 = math.tanh %122 : vector<2x32xf32>
    %cst_47 = arith.constant 1.000000e+00 : f32
    %124 = vector.broadcast %cst_47 : f32 to vector<2x32xf32>
    %125 = arith.subf %124, %117 : vector<2x32xf32>
    %126 = arith.mulf %125, %123 : vector<2x32xf32>
    %127 = arith.mulf %117, %57 : vector<2x32xf32>
    %128 = arith.addf %126, %127 : vector<2x32xf32>
    %129 = vector.extract_strided_slice %99 {offsets = [0, 0], sizes = [2, 32], strides = [1, 1]} : vector<2x96xf32> to vector<2x32xf32>
    %130 = vector.extract_strided_slice %101 {offsets = [0, 0], sizes = [2, 32], strides = [1, 1]} : vector<2x96xf32> to vector<2x32xf32>
    %131 = arith.addf %129, %130 : vector<2x32xf32>
    %132 = arith.negf %131 : vector<2x32xf32>
    %133 = math.exp %132 : vector<2x32xf32>
    %cst_48 = arith.constant 1.000000e+00 : f32
    %134 = vector.broadcast %cst_48 : f32 to vector<2x32xf32>
    %135 = arith.addf %134, %133 : vector<2x32xf32>
    %136 = arith.divf %134, %135 : vector<2x32xf32>
    %137 = vector.extract_strided_slice %99 {offsets = [0, 32], sizes = [2, 32], strides = [1, 1]} : vector<2x96xf32> to vector<2x32xf32>
    %138 = vector.extract_strided_slice %101 {offsets = [0, 32], sizes = [2, 32], strides = [1, 1]} : vector<2x96xf32> to vector<2x32xf32>
    %139 = arith.addf %137, %138 : vector<2x32xf32>
    %140 = arith.negf %139 : vector<2x32xf32>
    %141 = math.exp %140 : vector<2x32xf32>
    %cst_49 = arith.constant 1.000000e+00 : f32
    %142 = vector.broadcast %cst_49 : f32 to vector<2x32xf32>
    %143 = arith.addf %142, %141 : vector<2x32xf32>
    %144 = arith.divf %142, %143 : vector<2x32xf32>
    %145 = vector.extract_strided_slice %99 {offsets = [0, 64], sizes = [2, 32], strides = [1, 1]} : vector<2x96xf32> to vector<2x32xf32>
    %146 = vector.extract_strided_slice %101 {offsets = [0, 64], sizes = [2, 32], strides = [1, 1]} : vector<2x96xf32> to vector<2x32xf32>
    %147 = arith.addf %146, %20 : vector<2x32xf32>
    %148 = arith.mulf %136, %147 : vector<2x32xf32>
    %149 = arith.addf %145, %148 : vector<2x32xf32>
    %150 = math.tanh %149 : vector<2x32xf32>
    %cst_50 = arith.constant 1.000000e+00 : f32
    %151 = vector.broadcast %cst_50 : f32 to vector<2x32xf32>
    %152 = arith.subf %151, %144 : vector<2x32xf32>
    %153 = arith.mulf %152, %150 : vector<2x32xf32>
    %154 = arith.mulf %144, %84 : vector<2x32xf32>
    %155 = arith.addf %153, %154 : vector<2x32xf32>
    %156 = arith.index_cast %c1_i32 : i32 to index
    %c0_51 = arith.constant 0 : index
    %c0_52 = arith.constant 0 : index
    %157 = vector.load %arg13[%156, %c0_51, %c0_52] : memref<8x2x32xf32, #tpu.memory_space<vmem>>, vector<1x2x32xf32>
    %158 = vector.shape_cast %157 : vector<1x2x32xf32> to vector<2x32xf32>
    %159 = vector.shape_cast %128 : vector<2x32xf32> to vector<1x2x32xf32>
    tpu.vector_store %arg13[%156, %c0_51, %c0_52], %159 {strides = array<i32>} : memref<8x2x32xf32, #tpu.memory_space<vmem>>, vector<1x2x32xf32>,
    %160 = arith.index_cast %93 : i32 to index
    %c0_53 = arith.constant 0 : index
    %c0_54 = arith.constant 0 : index
    %161 = vector.load %arg14[%160, %c0_53, %c0_54] : memref<8x2x32xf32, #tpu.memory_space<vmem>>, vector<1x2x32xf32>
    %162 = vector.shape_cast %161 : vector<1x2x32xf32> to vector<2x32xf32>
    %163 = vector.shape_cast %155 : vector<2x32xf32> to vector<1x2x32xf32>
    tpu.vector_store %arg14[%160, %c0_53, %c0_54], %163 {strides = array<i32>} : memref<8x2x32xf32, #tpu.memory_space<vmem>>, vector<1x2x32xf32>,
    %c2_i32_55 = arith.constant 2 : i32
    %c7_i32_56 = arith.constant 7 : i32
    %164 = arith.subi %c7_i32_56, %c2_i32_55 : i32
    %c2_i32_57 = arith.constant 2 : i32
    %165 = arith.muli %c2_i32_55, %c2_i32_57 : i32
    %166 = arith.index_cast %165 : i32 to index
    %c0_58 = arith.constant 0 : index
    %167 = vector.load %arg11[%166, %c0_58] : memref<16x96xf32, #tpu.memory_space<vmem>>, vector<2x96xf32>
    %c2_i32_59 = arith.constant 2 : i32
    %168 = arith.muli %164, %c2_i32_59 : i32
    %169 = arith.index_cast %168 : i32 to index
    %c0_60 = arith.constant 0 : index
    %170 = vector.load %arg12[%169, %c0_60] : memref<16x96xf32, #tpu.memory_space<vmem>>, vector<2x96xf32>
    %cst_61 = arith.constant dense<0.000000e+00> : vector<2x96xf32>
    %171 = tpu.matmul %128, %13, %cst_61 {dimension_numbers = #tpu.dot_dimension_numbers<[1], [0], [0], [1], [0, 0, 1, 1], [], []>} : vector<2x32xf32>, vector<32x96xf32>, vector<2x96xf32> -> vector<2x96xf32>
    %cst_62 = arith.constant dense<0.000000e+00> : vector<2x96xf32>
    %172 = tpu.matmul %155, %14, %cst_62 {dimension_numbers = #tpu.dot_dimension_numbers<[1], [0], [0], [1], [0, 0, 1, 1], [], []>} : vector<2x32xf32>, vector<32x96xf32>, vector<2x96xf32> -> vector<2x96xf32>
    %173 = vector.extract_strided_slice %167 {offsets = [0, 0], sizes = [2, 32], strides = [1, 1]} : vector<2x96xf32> to vector<2x32xf32>
    %174 = vector.extract_strided_slice %171 {offsets = [0, 0], sizes = [2, 32], strides = [1, 1]} : vector<2x96xf32> to vector<2x32xf32>
    %175 = arith.addf %173, %174 : vector<2x32xf32>
    %176 = arith.negf %175 : vector<2x32xf32>
    %177 = math.exp %176 : vector<2x32xf32>
    %cst_63 = arith.constant 1.000000e+00 : f32
    %178 = vector.broadcast %cst_63 : f32 to vector<2x32xf32>
    %179 = arith.addf %178, %177 : vector<2x32xf32>
    %180 = arith.divf %178, %179 : vector<2x32xf32>
    %181 = vector.extract_strided_slice %167 {offsets = [0, 32], sizes = [2, 32], strides = [1, 1]} : vector<2x96xf32> to vector<2x32xf32>
    %182 = vector.extract_strided_slice %171 {offsets = [0, 32], sizes = [2, 32], strides = [1, 1]} : vector<2x96xf32> to vector<2x32xf32>
    %183 = arith.addf %181, %182 : vector<2x32xf32>
    %184 = arith.negf %183 : vector<2x32xf32>
    %185 = math.exp %184 : vector<2x32xf32>
    %cst_64 = arith.constant 1.000000e+00 : f32
    %186 = vector.broadcast %cst_64 : f32 to vector<2x32xf32>
    %187 = arith.addf %186, %185 : vector<2x32xf32>
    %188 = arith.divf %186, %187 : vector<2x32xf32>
    %189 = vector.extract_strided_slice %167 {offsets = [0, 64], sizes = [2, 32], strides = [1, 1]} : vector<2x96xf32> to vector<2x32xf32>
    %190 = vector.extract_strided_slice %171 {offsets = [0, 64], sizes = [2, 32], strides = [1, 1]} : vector<2x96xf32> to vector<2x32xf32>
    %191 = arith.addf %190, %17 : vector<2x32xf32>
    %192 = arith.mulf %180, %191 : vector<2x32xf32>
    %193 = arith.addf %189, %192 : vector<2x32xf32>
    %194 = math.tanh %193 : vector<2x32xf32>
    %cst_65 = arith.constant 1.000000e+00 : f32
    %195 = vector.broadcast %cst_65 : f32 to vector<2x32xf32>
    %196 = arith.subf %195, %188 : vector<2x32xf32>
    %197 = arith.mulf %196, %194 : vector<2x32xf32>
    %198 = arith.mulf %188, %128 : vector<2x32xf32>
    %199 = arith.addf %197, %198 : vector<2x32xf32>
    %200 = vector.extract_strided_slice %170 {offsets = [0, 0], sizes = [2, 32], strides = [1, 1]} : vector<2x96xf32> to vector<2x32xf32>
    %201 = vector.extract_strided_slice %172 {offsets = [0, 0], sizes = [2, 32], strides = [1, 1]} : vector<2x96xf32> to vector<2x32xf32>
    %202 = arith.addf %200, %201 : vector<2x32xf32>
    %203 = arith.negf %202 : vector<2x32xf32>
    %204 = math.exp %203 : vector<2x32xf32>
    %cst_66 = arith.constant 1.000000e+00 : f32
    %205 = vector.broadcast %cst_66 : f32 to vector<2x32xf32>
    %206 = arith.addf %205, %204 : vector<2x32xf32>
    %207 = arith.divf %205, %206 : vector<2x32xf32>
    %208 = vector.extract_strided_slice %170 {offsets = [0, 32], sizes = [2, 32], strides = [1, 1]} : vector<2x96xf32> to vector<2x32xf32>
    %209 = vector.extract_strided_slice %172 {offsets = [0, 32], sizes = [2, 32], strides = [1, 1]} : vector<2x96xf32> to vector<2x32xf32>
    %210 = arith.addf %208, %209 : vector<2x32xf32>
    %211 = arith.negf %210 : vector<2x32xf32>
    %212 = math.exp %211 : vector<2x32xf32>
    %cst_67 = arith.constant 1.000000e+00 : f32
    %213 = vector.broadcast %cst_67 : f32 to vector<2x32xf32>
    %214 = arith.addf %213, %212 : vector<2x32xf32>
    %215 = arith.divf %213, %214 : vector<2x32xf32>
    %216 = vector.extract_strided_slice %170 {offsets = [0, 64], sizes = [2, 32], strides = [1, 1]} : vector<2x96xf32> to vector<2x32xf32>
    %217 = vector.extract_strided_slice %172 {offsets = [0, 64], sizes = [2, 32], strides = [1, 1]} : vector<2x96xf32> to vector<2x32xf32>
    %218 = arith.addf %217, %20 : vector<2x32xf32>
    %219 = arith.mulf %207, %218 : vector<2x32xf32>
    %220 = arith.addf %216, %219 : vector<2x32xf32>
    %221 = math.tanh %220 : vector<2x32xf32>
    %cst_68 = arith.constant 1.000000e+00 : f32
    %222 = vector.broadcast %cst_68 : f32 to vector<2x32xf32>
    %223 = arith.subf %222, %215 : vector<2x32xf32>
    %224 = arith.mulf %223, %221 : vector<2x32xf32>
    %225 = arith.mulf %215, %155 : vector<2x32xf32>
    %226 = arith.addf %224, %225 : vector<2x32xf32>
    %227 = arith.index_cast %c2_i32_55 : i32 to index
    %c0_69 = arith.constant 0 : index
    %c0_70 = arith.constant 0 : index
    %228 = vector.load %arg13[%227, %c0_69, %c0_70] : memref<8x2x32xf32, #tpu.memory_space<vmem>>, vector<1x2x32xf32>
    %229 = vector.shape_cast %228 : vector<1x2x32xf32> to vector<2x32xf32>
    %230 = vector.shape_cast %199 : vector<2x32xf32> to vector<1x2x32xf32>
    tpu.vector_store %arg13[%227, %c0_69, %c0_70], %230 {strides = array<i32>} : memref<8x2x32xf32, #tpu.memory_space<vmem>>, vector<1x2x32xf32>,
    %231 = arith.index_cast %164 : i32 to index
    %c0_71 = arith.constant 0 : index
    %c0_72 = arith.constant 0 : index
    %232 = vector.load %arg14[%231, %c0_71, %c0_72] : memref<8x2x32xf32, #tpu.memory_space<vmem>>, vector<1x2x32xf32>
    %233 = vector.shape_cast %232 : vector<1x2x32xf32> to vector<2x32xf32>
    %234 = vector.shape_cast %226 : vector<2x32xf32> to vector<1x2x32xf32>
    tpu.vector_store %arg14[%231, %c0_71, %c0_72], %234 {strides = array<i32>} : memref<8x2x32xf32, #tpu.memory_space<vmem>>, vector<1x2x32xf32>,
    %c3_i32 = arith.constant 3 : i32
    %c7_i32_73 = arith.constant 7 : i32
    %235 = arith.subi %c7_i32_73, %c3_i32 : i32
    %c2_i32_74 = arith.constant 2 : i32
    %236 = arith.muli %c3_i32, %c2_i32_74 : i32
    %237 = arith.index_cast %236 : i32 to index
    %c0_75 = arith.constant 0 : index
    %238 = vector.load %arg11[%237, %c0_75] : memref<16x96xf32, #tpu.memory_space<vmem>>, vector<2x96xf32>
    %c2_i32_76 = arith.constant 2 : i32
    %239 = arith.muli %235, %c2_i32_76 : i32
    %240 = arith.index_cast %239 : i32 to index
    %c0_77 = arith.constant 0 : index
    %241 = vector.load %arg12[%240, %c0_77] : memref<16x96xf32, #tpu.memory_space<vmem>>, vector<2x96xf32>
    %cst_78 = arith.constant dense<0.000000e+00> : vector<2x96xf32>
    %242 = tpu.matmul %199, %13, %cst_78 {dimension_numbers = #tpu.dot_dimension_numbers<[1], [0], [0], [1], [0, 0, 1, 1], [], []>} : vector<2x32xf32>, vector<32x96xf32>, vector<2x96xf32> -> vector<2x96xf32>
    %cst_79 = arith.constant dense<0.000000e+00> : vector<2x96xf32>
    %243 = tpu.matmul %226, %14, %cst_79 {dimension_numbers = #tpu.dot_dimension_numbers<[1], [0], [0], [1], [0, 0, 1, 1], [], []>} : vector<2x32xf32>, vector<32x96xf32>, vector<2x96xf32> -> vector<2x96xf32>
    %244 = vector.extract_strided_slice %238 {offsets = [0, 0], sizes = [2, 32], strides = [1, 1]} : vector<2x96xf32> to vector<2x32xf32>
    %245 = vector.extract_strided_slice %242 {offsets = [0, 0], sizes = [2, 32], strides = [1, 1]} : vector<2x96xf32> to vector<2x32xf32>
    %246 = arith.addf %244, %245 : vector<2x32xf32>
    %247 = arith.negf %246 : vector<2x32xf32>
    %248 = math.exp %247 : vector<2x32xf32>
    %cst_80 = arith.constant 1.000000e+00 : f32
    %249 = vector.broadcast %cst_80 : f32 to vector<2x32xf32>
    %250 = arith.addf %249, %248 : vector<2x32xf32>
    %251 = arith.divf %249, %250 : vector<2x32xf32>
    %252 = vector.extract_strided_slice %238 {offsets = [0, 32], sizes = [2, 32], strides = [1, 1]} : vector<2x96xf32> to vector<2x32xf32>
    %253 = vector.extract_strided_slice %242 {offsets = [0, 32], sizes = [2, 32], strides = [1, 1]} : vector<2x96xf32> to vector<2x32xf32>
    %254 = arith.addf %252, %253 : vector<2x32xf32>
    %255 = arith.negf %254 : vector<2x32xf32>
    %256 = math.exp %255 : vector<2x32xf32>
    %cst_81 = arith.constant 1.000000e+00 : f32
    %257 = vector.broadcast %cst_81 : f32 to vector<2x32xf32>
    %258 = arith.addf %257, %256 : vector<2x32xf32>
    %259 = arith.divf %257, %258 : vector<2x32xf32>
    %260 = vector.extract_strided_slice %238 {offsets = [0, 64], sizes = [2, 32], strides = [1, 1]} : vector<2x96xf32> to vector<2x32xf32>
    %261 = vector.extract_strided_slice %242 {offsets = [0, 64], sizes = [2, 32], strides = [1, 1]} : vector<2x96xf32> to vector<2x32xf32>
    %262 = arith.addf %261, %17 : vector<2x32xf32>
    %263 = arith.mulf %251, %262 : vector<2x32xf32>
    %264 = arith.addf %260, %263 : vector<2x32xf32>
    %265 = math.tanh %264 : vector<2x32xf32>
    %cst_82 = arith.constant 1.000000e+00 : f32
    %266 = vector.broadcast %cst_82 : f32 to vector<2x32xf32>
    %267 = arith.subf %266, %259 : vector<2x32xf32>
    %268 = arith.mulf %267, %265 : vector<2x32xf32>
    %269 = arith.mulf %259, %199 : vector<2x32xf32>
    %270 = arith.addf %268, %269 : vector<2x32xf32>
    %271 = vector.extract_strided_slice %241 {offsets = [0, 0], sizes = [2, 32], strides = [1, 1]} : vector<2x96xf32> to vector<2x32xf32>
    %272 = vector.extract_strided_slice %243 {offsets = [0, 0], sizes = [2, 32], strides = [1, 1]} : vector<2x96xf32> to vector<2x32xf32>
    %273 = arith.addf %271, %272 : vector<2x32xf32>
    %274 = arith.negf %273 : vector<2x32xf32>
    %275 = math.exp %274 : vector<2x32xf32>
    %cst_83 = arith.constant 1.000000e+00 : f32
    %276 = vector.broadcast %cst_83 : f32 to vector<2x32xf32>
    %277 = arith.addf %276, %275 : vector<2x32xf32>
    %278 = arith.divf %276, %277 : vector<2x32xf32>
    %279 = vector.extract_strided_slice %241 {offsets = [0, 32], sizes = [2, 32], strides = [1, 1]} : vector<2x96xf32> to vector<2x32xf32>
    %280 = vector.extract_strided_slice %243 {offsets = [0, 32], sizes = [2, 32], strides = [1, 1]} : vector<2x96xf32> to vector<2x32xf32>
    %281 = arith.addf %279, %280 : vector<2x32xf32>
    %282 = arith.negf %281 : vector<2x32xf32>
    %283 = math.exp %282 : vector<2x32xf32>
    %cst_84 = arith.constant 1.000000e+00 : f32
    %284 = vector.broadcast %cst_84 : f32 to vector<2x32xf32>
    %285 = arith.addf %284, %283 : vector<2x32xf32>
    %286 = arith.divf %284, %285 : vector<2x32xf32>
    %287 = vector.extract_strided_slice %241 {offsets = [0, 64], sizes = [2, 32], strides = [1, 1]} : vector<2x96xf32> to vector<2x32xf32>
    %288 = vector.extract_strided_slice %243 {offsets = [0, 64], sizes = [2, 32], strides = [1, 1]} : vector<2x96xf32> to vector<2x32xf32>
    %289 = arith.addf %288, %20 : vector<2x32xf32>
    %290 = arith.mulf %278, %289 : vector<2x32xf32>
    %291 = arith.addf %287, %290 : vector<2x32xf32>
    %292 = math.tanh %291 : vector<2x32xf32>
    %cst_85 = arith.constant 1.000000e+00 : f32
    %293 = vector.broadcast %cst_85 : f32 to vector<2x32xf32>
    %294 = arith.subf %293, %286 : vector<2x32xf32>
    %295 = arith.mulf %294, %292 : vector<2x32xf32>
    %296 = arith.mulf %286, %226 : vector<2x32xf32>
    %297 = arith.addf %295, %296 : vector<2x32xf32>
    %298 = arith.index_cast %c3_i32 : i32 to index
    %c0_86 = arith.constant 0 : index
    %c0_87 = arith.constant 0 : index
    %299 = vector.load %arg13[%298, %c0_86, %c0_87] : memref<8x2x32xf32, #tpu.memory_space<vmem>>, vector<1x2x32xf32>
    %300 = vector.shape_cast %299 : vector<1x2x32xf32> to vector<2x32xf32>
    %301 = vector.shape_cast %270 : vector<2x32xf32> to vector<1x2x32xf32>
    tpu.vector_store %arg13[%298, %c0_86, %c0_87], %301 {strides = array<i32>} : memref<8x2x32xf32, #tpu.memory_space<vmem>>, vector<1x2x32xf32>,
    %302 = arith.index_cast %235 : i32 to index
    %c0_88 = arith.constant 0 : index
    %c0_89 = arith.constant 0 : index
    %303 = vector.load %arg14[%302, %c0_88, %c0_89] : memref<8x2x32xf32, #tpu.memory_space<vmem>>, vector<1x2x32xf32>
    %304 = vector.shape_cast %303 : vector<1x2x32xf32> to vector<2x32xf32>
    %305 = vector.shape_cast %297 : vector<2x32xf32> to vector<1x2x32xf32>
    tpu.vector_store %arg14[%302, %c0_88, %c0_89], %305 {strides = array<i32>} : memref<8x2x32xf32, #tpu.memory_space<vmem>>, vector<1x2x32xf32>,
    %c4_i32 = arith.constant 4 : i32
    %c7_i32_90 = arith.constant 7 : i32
    %306 = arith.subi %c7_i32_90, %c4_i32 : i32
    %c2_i32_91 = arith.constant 2 : i32
    %307 = arith.muli %c4_i32, %c2_i32_91 : i32
    %308 = arith.index_cast %307 : i32 to index
    %c0_92 = arith.constant 0 : index
    %309 = vector.load %arg11[%308, %c0_92] : memref<16x96xf32, #tpu.memory_space<vmem>>, vector<2x96xf32>
    %c2_i32_93 = arith.constant 2 : i32
    %310 = arith.muli %306, %c2_i32_93 : i32
    %311 = arith.index_cast %310 : i32 to index
    %c0_94 = arith.constant 0 : index
    %312 = vector.load %arg12[%311, %c0_94] : memref<16x96xf32, #tpu.memory_space<vmem>>, vector<2x96xf32>
    %cst_95 = arith.constant dense<0.000000e+00> : vector<2x96xf32>
    %313 = tpu.matmul %270, %13, %cst_95 {dimension_numbers = #tpu.dot_dimension_numbers<[1], [0], [0], [1], [0, 0, 1, 1], [], []>} : vector<2x32xf32>, vector<32x96xf32>, vector<2x96xf32> -> vector<2x96xf32>
    %cst_96 = arith.constant dense<0.000000e+00> : vector<2x96xf32>
    %314 = tpu.matmul %297, %14, %cst_96 {dimension_numbers = #tpu.dot_dimension_numbers<[1], [0], [0], [1], [0, 0, 1, 1], [], []>} : vector<2x32xf32>, vector<32x96xf32>, vector<2x96xf32> -> vector<2x96xf32>
    %315 = vector.extract_strided_slice %309 {offsets = [0, 0], sizes = [2, 32], strides = [1, 1]} : vector<2x96xf32> to vector<2x32xf32>
    %316 = vector.extract_strided_slice %313 {offsets = [0, 0], sizes = [2, 32], strides = [1, 1]} : vector<2x96xf32> to vector<2x32xf32>
    %317 = arith.addf %315, %316 : vector<2x32xf32>
    %318 = arith.negf %317 : vector<2x32xf32>
    %319 = math.exp %318 : vector<2x32xf32>
    %cst_97 = arith.constant 1.000000e+00 : f32
    %320 = vector.broadcast %cst_97 : f32 to vector<2x32xf32>
    %321 = arith.addf %320, %319 : vector<2x32xf32>
    %322 = arith.divf %320, %321 : vector<2x32xf32>
    %323 = vector.extract_strided_slice %309 {offsets = [0, 32], sizes = [2, 32], strides = [1, 1]} : vector<2x96xf32> to vector<2x32xf32>
    %324 = vector.extract_strided_slice %313 {offsets = [0, 32], sizes = [2, 32], strides = [1, 1]} : vector<2x96xf32> to vector<2x32xf32>
    %325 = arith.addf %323, %324 : vector<2x32xf32>
    %326 = arith.negf %325 : vector<2x32xf32>
    %327 = math.exp %326 : vector<2x32xf32>
    %cst_98 = arith.constant 1.000000e+00 : f32
    %328 = vector.broadcast %cst_98 : f32 to vector<2x32xf32>
    %329 = arith.addf %328, %327 : vector<2x32xf32>
    %330 = arith.divf %328, %329 : vector<2x32xf32>
    %331 = vector.extract_strided_slice %309 {offsets = [0, 64], sizes = [2, 32], strides = [1, 1]} : vector<2x96xf32> to vector<2x32xf32>
    %332 = vector.extract_strided_slice %313 {offsets = [0, 64], sizes = [2, 32], strides = [1, 1]} : vector<2x96xf32> to vector<2x32xf32>
    %333 = arith.addf %332, %17 : vector<2x32xf32>
    %334 = arith.mulf %322, %333 : vector<2x32xf32>
    %335 = arith.addf %331, %334 : vector<2x32xf32>
    %336 = math.tanh %335 : vector<2x32xf32>
    %cst_99 = arith.constant 1.000000e+00 : f32
    %337 = vector.broadcast %cst_99 : f32 to vector<2x32xf32>
    %338 = arith.subf %337, %330 : vector<2x32xf32>
    %339 = arith.mulf %338, %336 : vector<2x32xf32>
    %340 = arith.mulf %330, %270 : vector<2x32xf32>
    %341 = arith.addf %339, %340 : vector<2x32xf32>
    %342 = vector.extract_strided_slice %312 {offsets = [0, 0], sizes = [2, 32], strides = [1, 1]} : vector<2x96xf32> to vector<2x32xf32>
    %343 = vector.extract_strided_slice %314 {offsets = [0, 0], sizes = [2, 32], strides = [1, 1]} : vector<2x96xf32> to vector<2x32xf32>
    %344 = arith.addf %342, %343 : vector<2x32xf32>
    %345 = arith.negf %344 : vector<2x32xf32>
    %346 = math.exp %345 : vector<2x32xf32>
    %cst_100 = arith.constant 1.000000e+00 : f32
    %347 = vector.broadcast %cst_100 : f32 to vector<2x32xf32>
    %348 = arith.addf %347, %346 : vector<2x32xf32>
    %349 = arith.divf %347, %348 : vector<2x32xf32>
    %350 = vector.extract_strided_slice %312 {offsets = [0, 32], sizes = [2, 32], strides = [1, 1]} : vector<2x96xf32> to vector<2x32xf32>
    %351 = vector.extract_strided_slice %314 {offsets = [0, 32], sizes = [2, 32], strides = [1, 1]} : vector<2x96xf32> to vector<2x32xf32>
    %352 = arith.addf %350, %351 : vector<2x32xf32>
    %353 = arith.negf %352 : vector<2x32xf32>
    %354 = math.exp %353 : vector<2x32xf32>
    %cst_101 = arith.constant 1.000000e+00 : f32
    %355 = vector.broadcast %cst_101 : f32 to vector<2x32xf32>
    %356 = arith.addf %355, %354 : vector<2x32xf32>
    %357 = arith.divf %355, %356 : vector<2x32xf32>
    %358 = vector.extract_strided_slice %312 {offsets = [0, 64], sizes = [2, 32], strides = [1, 1]} : vector<2x96xf32> to vector<2x32xf32>
    %359 = vector.extract_strided_slice %314 {offsets = [0, 64], sizes = [2, 32], strides = [1, 1]} : vector<2x96xf32> to vector<2x32xf32>
    %360 = arith.addf %359, %20 : vector<2x32xf32>
    %361 = arith.mulf %349, %360 : vector<2x32xf32>
    %362 = arith.addf %358, %361 : vector<2x32xf32>
    %363 = math.tanh %362 : vector<2x32xf32>
    %cst_102 = arith.constant 1.000000e+00 : f32
    %364 = vector.broadcast %cst_102 : f32 to vector<2x32xf32>
    %365 = arith.subf %364, %357 : vector<2x32xf32>
    %366 = arith.mulf %365, %363 : vector<2x32xf32>
    %367 = arith.mulf %357, %297 : vector<2x32xf32>
    %368 = arith.addf %366, %367 : vector<2x32xf32>
    %369 = arith.index_cast %c4_i32 : i32 to index
    %c0_103 = arith.constant 0 : index
    %c0_104 = arith.constant 0 : index
    %370 = vector.load %arg13[%369, %c0_103, %c0_104] : memref<8x2x32xf32, #tpu.memory_space<vmem>>, vector<1x2x32xf32>
    %371 = vector.shape_cast %370 : vector<1x2x32xf32> to vector<2x32xf32>
    %372 = vector.shape_cast %341 : vector<2x32xf32> to vector<1x2x32xf32>
    tpu.vector_store %arg13[%369, %c0_103, %c0_104], %372 {strides = array<i32>} : memref<8x2x32xf32, #tpu.memory_space<vmem>>, vector<1x2x32xf32>,
    %373 = arith.index_cast %306 : i32 to index
    %c0_105 = arith.constant 0 : index
    %c0_106 = arith.constant 0 : index
    %374 = vector.load %arg14[%373, %c0_105, %c0_106] : memref<8x2x32xf32, #tpu.memory_space<vmem>>, vector<1x2x32xf32>
    %375 = vector.shape_cast %374 : vector<1x2x32xf32> to vector<2x32xf32>
    %376 = vector.shape_cast %368 : vector<2x32xf32> to vector<1x2x32xf32>
    tpu.vector_store %arg14[%373, %c0_105, %c0_106], %376 {strides = array<i32>} : memref<8x2x32xf32, #tpu.memory_space<vmem>>, vector<1x2x32xf32>,
    %c5_i32 = arith.constant 5 : i32
    %c7_i32_107 = arith.constant 7 : i32
    %377 = arith.subi %c7_i32_107, %c5_i32 : i32
    %c2_i32_108 = arith.constant 2 : i32
    %378 = arith.muli %c5_i32, %c2_i32_108 : i32
    %379 = arith.index_cast %378 : i32 to index
    %c0_109 = arith.constant 0 : index
    %380 = vector.load %arg11[%379, %c0_109] : memref<16x96xf32, #tpu.memory_space<vmem>>, vector<2x96xf32>
    %c2_i32_110 = arith.constant 2 : i32
    %381 = arith.muli %377, %c2_i32_110 : i32
    %382 = arith.index_cast %381 : i32 to index
    %c0_111 = arith.constant 0 : index
    %383 = vector.load %arg12[%382, %c0_111] : memref<16x96xf32, #tpu.memory_space<vmem>>, vector<2x96xf32>
    %cst_112 = arith.constant dense<0.000000e+00> : vector<2x96xf32>
    %384 = tpu.matmul %341, %13, %cst_112 {dimension_numbers = #tpu.dot_dimension_numbers<[1], [0], [0], [1], [0, 0, 1, 1], [], []>} : vector<2x32xf32>, vector<32x96xf32>, vector<2x96xf32> -> vector<2x96xf32>
    %cst_113 = arith.constant dense<0.000000e+00> : vector<2x96xf32>
    %385 = tpu.matmul %368, %14, %cst_113 {dimension_numbers = #tpu.dot_dimension_numbers<[1], [0], [0], [1], [0, 0, 1, 1], [], []>} : vector<2x32xf32>, vector<32x96xf32>, vector<2x96xf32> -> vector<2x96xf32>
    %386 = vector.extract_strided_slice %380 {offsets = [0, 0], sizes = [2, 32], strides = [1, 1]} : vector<2x96xf32> to vector<2x32xf32>
    %387 = vector.extract_strided_slice %384 {offsets = [0, 0], sizes = [2, 32], strides = [1, 1]} : vector<2x96xf32> to vector<2x32xf32>
    %388 = arith.addf %386, %387 : vector<2x32xf32>
    %389 = arith.negf %388 : vector<2x32xf32>
    %390 = math.exp %389 : vector<2x32xf32>
    %cst_114 = arith.constant 1.000000e+00 : f32
    %391 = vector.broadcast %cst_114 : f32 to vector<2x32xf32>
    %392 = arith.addf %391, %390 : vector<2x32xf32>
    %393 = arith.divf %391, %392 : vector<2x32xf32>
    %394 = vector.extract_strided_slice %380 {offsets = [0, 32], sizes = [2, 32], strides = [1, 1]} : vector<2x96xf32> to vector<2x32xf32>
    %395 = vector.extract_strided_slice %384 {offsets = [0, 32], sizes = [2, 32], strides = [1, 1]} : vector<2x96xf32> to vector<2x32xf32>
    %396 = arith.addf %394, %395 : vector<2x32xf32>
    %397 = arith.negf %396 : vector<2x32xf32>
    %398 = math.exp %397 : vector<2x32xf32>
    %cst_115 = arith.constant 1.000000e+00 : f32
    %399 = vector.broadcast %cst_115 : f32 to vector<2x32xf32>
    %400 = arith.addf %399, %398 : vector<2x32xf32>
    %401 = arith.divf %399, %400 : vector<2x32xf32>
    %402 = vector.extract_strided_slice %380 {offsets = [0, 64], sizes = [2, 32], strides = [1, 1]} : vector<2x96xf32> to vector<2x32xf32>
    %403 = vector.extract_strided_slice %384 {offsets = [0, 64], sizes = [2, 32], strides = [1, 1]} : vector<2x96xf32> to vector<2x32xf32>
    %404 = arith.addf %403, %17 : vector<2x32xf32>
    %405 = arith.mulf %393, %404 : vector<2x32xf32>
    %406 = arith.addf %402, %405 : vector<2x32xf32>
    %407 = math.tanh %406 : vector<2x32xf32>
    %cst_116 = arith.constant 1.000000e+00 : f32
    %408 = vector.broadcast %cst_116 : f32 to vector<2x32xf32>
    %409 = arith.subf %408, %401 : vector<2x32xf32>
    %410 = arith.mulf %409, %407 : vector<2x32xf32>
    %411 = arith.mulf %401, %341 : vector<2x32xf32>
    %412 = arith.addf %410, %411 : vector<2x32xf32>
    %413 = vector.extract_strided_slice %383 {offsets = [0, 0], sizes = [2, 32], strides = [1, 1]} : vector<2x96xf32> to vector<2x32xf32>
    %414 = vector.extract_strided_slice %385 {offsets = [0, 0], sizes = [2, 32], strides = [1, 1]} : vector<2x96xf32> to vector<2x32xf32>
    %415 = arith.addf %413, %414 : vector<2x32xf32>
    %416 = arith.negf %415 : vector<2x32xf32>
    %417 = math.exp %416 : vector<2x32xf32>
    %cst_117 = arith.constant 1.000000e+00 : f32
    %418 = vector.broadcast %cst_117 : f32 to vector<2x32xf32>
    %419 = arith.addf %418, %417 : vector<2x32xf32>
    %420 = arith.divf %418, %419 : vector<2x32xf32>
    %421 = vector.extract_strided_slice %383 {offsets = [0, 32], sizes = [2, 32], strides = [1, 1]} : vector<2x96xf32> to vector<2x32xf32>
    %422 = vector.extract_strided_slice %385 {offsets = [0, 32], sizes = [2, 32], strides = [1, 1]} : vector<2x96xf32> to vector<2x32xf32>
    %423 = arith.addf %421, %422 : vector<2x32xf32>
    %424 = arith.negf %423 : vector<2x32xf32>
    %425 = math.exp %424 : vector<2x32xf32>
    %cst_118 = arith.constant 1.000000e+00 : f32
    %426 = vector.broadcast %cst_118 : f32 to vector<2x32xf32>
    %427 = arith.addf %426, %425 : vector<2x32xf32>
    %428 = arith.divf %426, %427 : vector<2x32xf32>
    %429 = vector.extract_strided_slice %383 {offsets = [0, 64], sizes = [2, 32], strides = [1, 1]} : vector<2x96xf32> to vector<2x32xf32>
    %430 = vector.extract_strided_slice %385 {offsets = [0, 64], sizes = [2, 32], strides = [1, 1]} : vector<2x96xf32> to vector<2x32xf32>
    %431 = arith.addf %430, %20 : vector<2x32xf32>
    %432 = arith.mulf %420, %431 : vector<2x32xf32>
    %433 = arith.addf %429, %432 : vector<2x32xf32>
    %434 = math.tanh %433 : vector<2x32xf32>
    %cst_119 = arith.constant 1.000000e+00 : f32
    %435 = vector.broadcast %cst_119 : f32 to vector<2x32xf32>
    %436 = arith.subf %435, %428 : vector<2x32xf32>
    %437 = arith.mulf %436, %434 : vector<2x32xf32>
    %438 = arith.mulf %428, %368 : vector<2x32xf32>
    %439 = arith.addf %437, %438 : vector<2x32xf32>
    %440 = arith.index_cast %c5_i32 : i32 to index
    %c0_120 = arith.constant 0 : index
    %c0_121 = arith.constant 0 : index
    %441 = vector.load %arg13[%440, %c0_120, %c0_121] : memref<8x2x32xf32, #tpu.memory_space<vmem>>, vector<1x2x32xf32>
    %442 = vector.shape_cast %441 : vector<1x2x32xf32> to vector<2x32xf32>
    %443 = vector.shape_cast %412 : vector<2x32xf32> to vector<1x2x32xf32>
    tpu.vector_store %arg13[%440, %c0_120, %c0_121], %443 {strides = array<i32>} : memref<8x2x32xf32, #tpu.memory_space<vmem>>, vector<1x2x32xf32>,
    %444 = arith.index_cast %377 : i32 to index
    %c0_122 = arith.constant 0 : index
    %c0_123 = arith.constant 0 : index
    %445 = vector.load %arg14[%444, %c0_122, %c0_123] : memref<8x2x32xf32, #tpu.memory_space<vmem>>, vector<1x2x32xf32>
    %446 = vector.shape_cast %445 : vector<1x2x32xf32> to vector<2x32xf32>
    %447 = vector.shape_cast %439 : vector<2x32xf32> to vector<1x2x32xf32>
    tpu.vector_store %arg14[%444, %c0_122, %c0_123], %447 {strides = array<i32>} : memref<8x2x32xf32, #tpu.memory_space<vmem>>, vector<1x2x32xf32>,
    %c6_i32 = arith.constant 6 : i32
    %c7_i32_124 = arith.constant 7 : i32
    %448 = arith.subi %c7_i32_124, %c6_i32 : i32
    %c2_i32_125 = arith.constant 2 : i32
    %449 = arith.muli %c6_i32, %c2_i32_125 : i32
    %450 = arith.index_cast %449 : i32 to index
    %c0_126 = arith.constant 0 : index
    %451 = vector.load %arg11[%450, %c0_126] : memref<16x96xf32, #tpu.memory_space<vmem>>, vector<2x96xf32>
    %c2_i32_127 = arith.constant 2 : i32
    %452 = arith.muli %448, %c2_i32_127 : i32
    %453 = arith.index_cast %452 : i32 to index
    %c0_128 = arith.constant 0 : index
    %454 = vector.load %arg12[%453, %c0_128] : memref<16x96xf32, #tpu.memory_space<vmem>>, vector<2x96xf32>
    %cst_129 = arith.constant dense<0.000000e+00> : vector<2x96xf32>
    %455 = tpu.matmul %412, %13, %cst_129 {dimension_numbers = #tpu.dot_dimension_numbers<[1], [0], [0], [1], [0, 0, 1, 1], [], []>} : vector<2x32xf32>, vector<32x96xf32>, vector<2x96xf32> -> vector<2x96xf32>
    %cst_130 = arith.constant dense<0.000000e+00> : vector<2x96xf32>
    %456 = tpu.matmul %439, %14, %cst_130 {dimension_numbers = #tpu.dot_dimension_numbers<[1], [0], [0], [1], [0, 0, 1, 1], [], []>} : vector<2x32xf32>, vector<32x96xf32>, vector<2x96xf32> -> vector<2x96xf32>
    %457 = vector.extract_strided_slice %451 {offsets = [0, 0], sizes = [2, 32], strides = [1, 1]} : vector<2x96xf32> to vector<2x32xf32>
    %458 = vector.extract_strided_slice %455 {offsets = [0, 0], sizes = [2, 32], strides = [1, 1]} : vector<2x96xf32> to vector<2x32xf32>
    %459 = arith.addf %457, %458 : vector<2x32xf32>
    %460 = arith.negf %459 : vector<2x32xf32>
    %461 = math.exp %460 : vector<2x32xf32>
    %cst_131 = arith.constant 1.000000e+00 : f32
    %462 = vector.broadcast %cst_131 : f32 to vector<2x32xf32>
    %463 = arith.addf %462, %461 : vector<2x32xf32>
    %464 = arith.divf %462, %463 : vector<2x32xf32>
    %465 = vector.extract_strided_slice %451 {offsets = [0, 32], sizes = [2, 32], strides = [1, 1]} : vector<2x96xf32> to vector<2x32xf32>
    %466 = vector.extract_strided_slice %455 {offsets = [0, 32], sizes = [2, 32], strides = [1, 1]} : vector<2x96xf32> to vector<2x32xf32>
    %467 = arith.addf %465, %466 : vector<2x32xf32>
    %468 = arith.negf %467 : vector<2x32xf32>
    %469 = math.exp %468 : vector<2x32xf32>
    %cst_132 = arith.constant 1.000000e+00 : f32
    %470 = vector.broadcast %cst_132 : f32 to vector<2x32xf32>
    %471 = arith.addf %470, %469 : vector<2x32xf32>
    %472 = arith.divf %470, %471 : vector<2x32xf32>
    %473 = vector.extract_strided_slice %451 {offsets = [0, 64], sizes = [2, 32], strides = [1, 1]} : vector<2x96xf32> to vector<2x32xf32>
    %474 = vector.extract_strided_slice %455 {offsets = [0, 64], sizes = [2, 32], strides = [1, 1]} : vector<2x96xf32> to vector<2x32xf32>
    %475 = arith.addf %474, %17 : vector<2x32xf32>
    %476 = arith.mulf %464, %475 : vector<2x32xf32>
    %477 = arith.addf %473, %476 : vector<2x32xf32>
    %478 = math.tanh %477 : vector<2x32xf32>
    %cst_133 = arith.constant 1.000000e+00 : f32
    %479 = vector.broadcast %cst_133 : f32 to vector<2x32xf32>
    %480 = arith.subf %479, %472 : vector<2x32xf32>
    %481 = arith.mulf %480, %478 : vector<2x32xf32>
    %482 = arith.mulf %472, %412 : vector<2x32xf32>
    %483 = arith.addf %481, %482 : vector<2x32xf32>
    %484 = vector.extract_strided_slice %454 {offsets = [0, 0], sizes = [2, 32], strides = [1, 1]} : vector<2x96xf32> to vector<2x32xf32>
    %485 = vector.extract_strided_slice %456 {offsets = [0, 0], sizes = [2, 32], strides = [1, 1]} : vector<2x96xf32> to vector<2x32xf32>
    %486 = arith.addf %484, %485 : vector<2x32xf32>
    %487 = arith.negf %486 : vector<2x32xf32>
    %488 = math.exp %487 : vector<2x32xf32>
    %cst_134 = arith.constant 1.000000e+00 : f32
    %489 = vector.broadcast %cst_134 : f32 to vector<2x32xf32>
    %490 = arith.addf %489, %488 : vector<2x32xf32>
    %491 = arith.divf %489, %490 : vector<2x32xf32>
    %492 = vector.extract_strided_slice %454 {offsets = [0, 32], sizes = [2, 32], strides = [1, 1]} : vector<2x96xf32> to vector<2x32xf32>
    %493 = vector.extract_strided_slice %456 {offsets = [0, 32], sizes = [2, 32], strides = [1, 1]} : vector<2x96xf32> to vector<2x32xf32>
    %494 = arith.addf %492, %493 : vector<2x32xf32>
    %495 = arith.negf %494 : vector<2x32xf32>
    %496 = math.exp %495 : vector<2x32xf32>
    %cst_135 = arith.constant 1.000000e+00 : f32
    %497 = vector.broadcast %cst_135 : f32 to vector<2x32xf32>
    %498 = arith.addf %497, %496 : vector<2x32xf32>
    %499 = arith.divf %497, %498 : vector<2x32xf32>
    %500 = vector.extract_strided_slice %454 {offsets = [0, 64], sizes = [2, 32], strides = [1, 1]} : vector<2x96xf32> to vector<2x32xf32>
    %501 = vector.extract_strided_slice %456 {offsets = [0, 64], sizes = [2, 32], strides = [1, 1]} : vector<2x96xf32> to vector<2x32xf32>
    %502 = arith.addf %501, %20 : vector<2x32xf32>
    %503 = arith.mulf %491, %502 : vector<2x32xf32>
    %504 = arith.addf %500, %503 : vector<2x32xf32>
    %505 = math.tanh %504 : vector<2x32xf32>
    %cst_136 = arith.constant 1.000000e+00 : f32
    %506 = vector.broadcast %cst_136 : f32 to vector<2x32xf32>
    %507 = arith.subf %506, %499 : vector<2x32xf32>
    %508 = arith.mulf %507, %505 : vector<2x32xf32>
    %509 = arith.mulf %499, %439 : vector<2x32xf32>
    %510 = arith.addf %508, %509 : vector<2x32xf32>
    %511 = arith.index_cast %c6_i32 : i32 to index
    %c0_137 = arith.constant 0 : index
    %c0_138 = arith.constant 0 : index
    %512 = vector.load %arg13[%511, %c0_137, %c0_138] : memref<8x2x32xf32, #tpu.memory_space<vmem>>, vector<1x2x32xf32>
    %513 = vector.shape_cast %512 : vector<1x2x32xf32> to vector<2x32xf32>
    %514 = vector.shape_cast %483 : vector<2x32xf32> to vector<1x2x32xf32>
    tpu.vector_store %arg13[%511, %c0_137, %c0_138], %514 {strides = array<i32>} : memref<8x2x32xf32, #tpu.memory_space<vmem>>, vector<1x2x32xf32>,
    %515 = arith.index_cast %448 : i32 to index
    %c0_139 = arith.constant 0 : index
    %c0_140 = arith.constant 0 : index
    %516 = vector.load %arg14[%515, %c0_139, %c0_140] : memref<8x2x32xf32, #tpu.memory_space<vmem>>, vector<1x2x32xf32>
    %517 = vector.shape_cast %516 : vector<1x2x32xf32> to vector<2x32xf32>
    %518 = vector.shape_cast %510 : vector<2x32xf32> to vector<1x2x32xf32>
    tpu.vector_store %arg14[%515, %c0_139, %c0_140], %518 {strides = array<i32>} : memref<8x2x32xf32, #tpu.memory_space<vmem>>, vector<1x2x32xf32>,
    %c7_i32_141 = arith.constant 7 : i32
    %c7_i32_142 = arith.constant 7 : i32
    %519 = arith.subi %c7_i32_142, %c7_i32_141 : i32
    %c2_i32_143 = arith.constant 2 : i32
    %520 = arith.muli %c7_i32_141, %c2_i32_143 : i32
    %521 = arith.index_cast %520 : i32 to index
    %c0_144 = arith.constant 0 : index
    %522 = vector.load %arg11[%521, %c0_144] : memref<16x96xf32, #tpu.memory_space<vmem>>, vector<2x96xf32>
    %c2_i32_145 = arith.constant 2 : i32
    %523 = arith.muli %519, %c2_i32_145 : i32
    %524 = arith.index_cast %523 : i32 to index
    %c0_146 = arith.constant 0 : index
    %525 = vector.load %arg12[%524, %c0_146] : memref<16x96xf32, #tpu.memory_space<vmem>>, vector<2x96xf32>
    %cst_147 = arith.constant dense<0.000000e+00> : vector<2x96xf32>
    %526 = tpu.matmul %483, %13, %cst_147 {dimension_numbers = #tpu.dot_dimension_numbers<[1], [0], [0], [1], [0, 0, 1, 1], [], []>} : vector<2x32xf32>, vector<32x96xf32>, vector<2x96xf32> -> vector<2x96xf32>
    %cst_148 = arith.constant dense<0.000000e+00> : vector<2x96xf32>
    %527 = tpu.matmul %510, %14, %cst_148 {dimension_numbers = #tpu.dot_dimension_numbers<[1], [0], [0], [1], [0, 0, 1, 1], [], []>} : vector<2x32xf32>, vector<32x96xf32>, vector<2x96xf32> -> vector<2x96xf32>
    %528 = vector.extract_strided_slice %522 {offsets = [0, 0], sizes = [2, 32], strides = [1, 1]} : vector<2x96xf32> to vector<2x32xf32>
    %529 = vector.extract_strided_slice %526 {offsets = [0, 0], sizes = [2, 32], strides = [1, 1]} : vector<2x96xf32> to vector<2x32xf32>
    %530 = arith.addf %528, %529 : vector<2x32xf32>
    %531 = arith.negf %530 : vector<2x32xf32>
    %532 = math.exp %531 : vector<2x32xf32>
    %cst_149 = arith.constant 1.000000e+00 : f32
    %533 = vector.broadcast %cst_149 : f32 to vector<2x32xf32>
    %534 = arith.addf %533, %532 : vector<2x32xf32>
    %535 = arith.divf %533, %534 : vector<2x32xf32>
    %536 = vector.extract_strided_slice %522 {offsets = [0, 32], sizes = [2, 32], strides = [1, 1]} : vector<2x96xf32> to vector<2x32xf32>
    %537 = vector.extract_strided_slice %526 {offsets = [0, 32], sizes = [2, 32], strides = [1, 1]} : vector<2x96xf32> to vector<2x32xf32>
    %538 = arith.addf %536, %537 : vector<2x32xf32>
    %539 = arith.negf %538 : vector<2x32xf32>
    %540 = math.exp %539 : vector<2x32xf32>
    %cst_150 = arith.constant 1.000000e+00 : f32
    %541 = vector.broadcast %cst_150 : f32 to vector<2x32xf32>
    %542 = arith.addf %541, %540 : vector<2x32xf32>
    %543 = arith.divf %541, %542 : vector<2x32xf32>
    %544 = vector.extract_strided_slice %522 {offsets = [0, 64], sizes = [2, 32], strides = [1, 1]} : vector<2x96xf32> to vector<2x32xf32>
    %545 = vector.extract_strided_slice %526 {offsets = [0, 64], sizes = [2, 32], strides = [1, 1]} : vector<2x96xf32> to vector<2x32xf32>
    %546 = arith.addf %545, %17 : vector<2x32xf32>
    %547 = arith.mulf %535, %546 : vector<2x32xf32>
    %548 = arith.addf %544, %547 : vector<2x32xf32>
    %549 = math.tanh %548 : vector<2x32xf32>
    %cst_151 = arith.constant 1.000000e+00 : f32
    %550 = vector.broadcast %cst_151 : f32 to vector<2x32xf32>
    %551 = arith.subf %550, %543 : vector<2x32xf32>
    %552 = arith.mulf %551, %549 : vector<2x32xf32>
    %553 = arith.mulf %543, %483 : vector<2x32xf32>
    %554 = arith.addf %552, %553 : vector<2x32xf32>
    %555 = vector.extract_strided_slice %525 {offsets = [0, 0], sizes = [2, 32], strides = [1, 1]} : vector<2x96xf32> to vector<2x32xf32>
    %556 = vector.extract_strided_slice %527 {offsets = [0, 0], sizes = [2, 32], strides = [1, 1]} : vector<2x96xf32> to vector<2x32xf32>
    %557 = arith.addf %555, %556 : vector<2x32xf32>
    %558 = arith.negf %557 : vector<2x32xf32>
    %559 = math.exp %558 : vector<2x32xf32>
    %cst_152 = arith.constant 1.000000e+00 : f32
    %560 = vector.broadcast %cst_152 : f32 to vector<2x32xf32>
    %561 = arith.addf %560, %559 : vector<2x32xf32>
    %562 = arith.divf %560, %561 : vector<2x32xf32>
    %563 = vector.extract_strided_slice %525 {offsets = [0, 32], sizes = [2, 32], strides = [1, 1]} : vector<2x96xf32> to vector<2x32xf32>
    %564 = vector.extract_strided_slice %527 {offsets = [0, 32], sizes = [2, 32], strides = [1, 1]} : vector<2x96xf32> to vector<2x32xf32>
    %565 = arith.addf %563, %564 : vector<2x32xf32>
    %566 = arith.negf %565 : vector<2x32xf32>
    %567 = math.exp %566 : vector<2x32xf32>
    %cst_153 = arith.constant 1.000000e+00 : f32
    %568 = vector.broadcast %cst_153 : f32 to vector<2x32xf32>
    %569 = arith.addf %568, %567 : vector<2x32xf32>
    %570 = arith.divf %568, %569 : vector<2x32xf32>
    %571 = vector.extract_strided_slice %525 {offsets = [0, 64], sizes = [2, 32], strides = [1, 1]} : vector<2x96xf32> to vector<2x32xf32>
    %572 = vector.extract_strided_slice %527 {offsets = [0, 64], sizes = [2, 32], strides = [1, 1]} : vector<2x96xf32> to vector<2x32xf32>
    %573 = arith.addf %572, %20 : vector<2x32xf32>
    %574 = arith.mulf %562, %573 : vector<2x32xf32>
    %575 = arith.addf %571, %574 : vector<2x32xf32>
    %576 = math.tanh %575 : vector<2x32xf32>
    %cst_154 = arith.constant 1.000000e+00 : f32
    %577 = vector.broadcast %cst_154 : f32 to vector<2x32xf32>
    %578 = arith.subf %577, %570 : vector<2x32xf32>
    %579 = arith.mulf %578, %576 : vector<2x32xf32>
    %580 = arith.mulf %570, %510 : vector<2x32xf32>
    %581 = arith.addf %579, %580 : vector<2x32xf32>
    %582 = arith.index_cast %c7_i32_141 : i32 to index
    %c0_155 = arith.constant 0 : index
    %c0_156 = arith.constant 0 : index
    %583 = vector.load %arg13[%582, %c0_155, %c0_156] : memref<8x2x32xf32, #tpu.memory_space<vmem>>, vector<1x2x32xf32>
    %584 = vector.shape_cast %583 : vector<1x2x32xf32> to vector<2x32xf32>
    %585 = vector.shape_cast %554 : vector<2x32xf32> to vector<1x2x32xf32>
    tpu.vector_store %arg13[%582, %c0_155, %c0_156], %585 {strides = array<i32>} : memref<8x2x32xf32, #tpu.memory_space<vmem>>, vector<1x2x32xf32>,
    %586 = arith.index_cast %519 : i32 to index
    %c0_157 = arith.constant 0 : index
    %c0_158 = arith.constant 0 : index
    %587 = vector.load %arg14[%586, %c0_157, %c0_158] : memref<8x2x32xf32, #tpu.memory_space<vmem>>, vector<1x2x32xf32>
    %588 = vector.shape_cast %587 : vector<1x2x32xf32> to vector<2x32xf32>
    %589 = vector.shape_cast %581 : vector<2x32xf32> to vector<1x2x32xf32>
    tpu.vector_store %arg14[%586, %c0_157, %c0_158], %589 {strides = array<i32>} : memref<8x2x32xf32, #tpu.memory_space<vmem>>, vector<1x2x32xf32>,
    %c8_i32 = arith.constant 8 : i32
    %c0_159 = arith.constant 0 : index
    %c0_160 = arith.constant 0 : index
    %c0_161 = arith.constant 0 : index
    %590 = vector.load %arg13[%c0_159, %c0_160, %c0_161] : memref<8x2x32xf32, #tpu.memory_space<vmem>>, vector<8x2x32xf32>
    %c0_162 = arith.constant 0 : index
    %c0_163 = arith.constant 0 : index
    %c0_164 = arith.constant 0 : index
    %591 = vector.load %arg10[%c0_162, %c0_163, %c0_164] : memref<8x2x64xf32, #tpu.memory_space<vmem>>, vector<8x2x32xf32>
    tpu.vector_store %arg10[%c0_162, %c0_163, %c0_164], %590 {strides = array<i32>} : memref<8x2x64xf32, #tpu.memory_space<vmem>>, vector<8x2x32xf32>,
    %c0_165 = arith.constant 0 : index
    %c0_166 = arith.constant 0 : index
    %c0_167 = arith.constant 0 : index
    %592 = vector.load %arg14[%c0_165, %c0_166, %c0_167] : memref<8x2x32xf32, #tpu.memory_space<vmem>>, vector<8x2x32xf32>
    %c0_168 = arith.constant 0 : index
    %c0_169 = arith.constant 0 : index
    %c32 = arith.constant 32 : index
    %593 = vector.load %arg10[%c0_168, %c0_169, %c32] : memref<8x2x64xf32, #tpu.memory_space<vmem>>, vector<8x2x32xf32>
    tpu.vector_store %arg10[%c0_168, %c0_169, %c32], %592 {strides = array<i32>} : memref<8x2x64xf32, #tpu.memory_space<vmem>>, vector<8x2x32xf32>,
    return
  }
  func.func @transform_0(%arg0: i32) -> (i32, i32) {
    %c0_i32 = arith.constant 0 : i32
    %c0_i32_0 = arith.constant 0 : i32
    %c0_i32_1 = arith.constant 0 : i32
    return %c0_i32, %c0_i32_0 : i32, i32
  }
  func.func @transform_1(%arg0: i32) -> (i32, i32) {
    %c0_i32 = arith.constant 0 : i32
    %c0_i32_0 = arith.constant 0 : i32
    %c0_i32_1 = arith.constant 0 : i32
    return %c0_i32, %c0_i32_0 : i32, i32
  }
  func.func @transform_2(%arg0: i32) -> (i32, i32) {
    %c0_i32 = arith.constant 0 : i32
    %c0_i32_0 = arith.constant 0 : i32
    %c0_i32_1 = arith.constant 0 : i32
    return %c0_i32, %c0_i32_0 : i32, i32
  }
  func.func @transform_3(%arg0: i32) -> (i32, i32) {
    %c0_i32 = arith.constant 0 : i32
    %c0_i32_0 = arith.constant 0 : i32
    %c0_i32_1 = arith.constant 0 : i32
    return %c0_i32, %c0_i32_0 : i32, i32
  }
  func.func @transform_4(%arg0: i32) -> (i32, i32) {
    %c0_i32 = arith.constant 0 : i32
    %c0_i32_0 = arith.constant 0 : i32
    %c0_i32_1 = arith.constant 0 : i32
    return %c0_i32, %c0_i32_0 : i32, i32
  }
  func.func @transform_5(%arg0: i32) -> (i32, i32) {
    %c0_i32 = arith.constant 0 : i32
    %c0_i32_0 = arith.constant 0 : i32
    %c0_i32_1 = arith.constant 0 : i32
    return %c0_i32, %c0_i32_0 : i32, i32
  }
  func.func @transform_6(%arg0: i32) -> (i32, i32) {
    %c0_i32 = arith.constant 0 : i32
    %c0_i32_0 = arith.constant 0 : i32
    %c0_i32_1 = arith.constant 0 : i32
    return %c0_i32, %c0_i32_0 : i32, i32
  }
  func.func @transform_7(%arg0: i32) -> (i32, i32) {
    %c0_i32 = arith.constant 0 : i32
    %c0_i32_0 = arith.constant 0 : i32
    %c0_i32_1 = arith.constant 0 : i32
    return %c0_i32, %c0_i32_0 : i32, i32
  }
  func.func @transform_8(%arg0: i32) -> (i32, i32) {
    %c0_i32 = arith.constant 0 : i32
    %c0_i32_0 = arith.constant 0 : i32
    %c0_i32_1 = arith.constant 0 : i32
    return %c0_i32, %c0_i32_0 : i32, i32
  }
  func.func @transform_9(%arg0: i32) -> (i32, i32, i32) {
    %c0_i32 = arith.constant 0 : i32
    %c0_i32_0 = arith.constant 0 : i32
    %c0_i32_1 = arith.constant 0 : i32
    %c0_i32_2 = arith.constant 0 : i32
    return %c0_i32, %c0_i32_0, %c0_i32_1 : i32, i32, i32
  }
}

</mosaic_0001>

<bundles_post_ra>
// kernel: forecasting_bigru_forward.3
= control target key start
LH: loop header
LB: loop body
LE: loop exit
PB: predicated region body
PF: predicated region fallthrough
CT: control target
= control target key end

     0   :  { %v1706_v3 = vmov 0.0   ;;  %s2073_s0 = inlined_call_operand.vmem [shape: f32[16,64], index: 0, kind: input, shape index: {}]   ;;  %s2074_s1 = inlined_call_operand.vmem [shape: f32[64,96], index: 1, kind: input, shape index: {}]   ;;  %s2075_s2 = inlined_call_operand.vmem [shape: f32[32,96], index: 2, kind: input, shape index: {}]   ;;  %s2076_s3 = inlined_call_operand.vmem [shape: f32[1,96], index: 3, kind: input, shape index: {}]   ;;  %s2077_s4 = inlined_call_operand.vmem [shape: f32[1,32], index: 4, kind: input, shape index: {}]   ;;  %s2078_s5 = inlined_call_operand.vmem [shape: f32[64,96], index: 5, kind: input, shape index: {}]   ;;  %s2079_s6 = inlined_call_operand.vmem [shape: f32[1,96], index: 6, kind: input, shape index: {}]   ;;  %s2080_s7 = inlined_call_operand.vmem [shape: f32[1,32], index: 7, kind: input, shape index: {}]   ;;  %s2081_s8 = inlined_call_operand.vmem [shape: f32[64,10], index: 8, kind: input, shape index: {}]   ;;  %s2082_s9 = inlined_call_operand.vmem [shape: f32[1,10], index: 9, kind: input, shape index: {}]   ;;  %s2083_s10 = inlined_call_operand.vmem [shape: f32[10,4], index: 10, kind: input, shape index: {}]   ;;  %s2084_s11 = inlined_call_operand.vmem [shape: f32[1,4], index: 11, kind: input, shape index: {}]   ;;  %s2085_s12 = inlined_call_operand.hbm [shape: f32[2,4], index: 12, kind: output, shape index: {}]  }
   0x1   :  { %v51_v0 = vld [vmem:[%s2074_s1 + $0x38] sm:$0xff]  ;;  %v50_v2 = vld [vmem:[%s2074_s1 + $0x30] sm:$0xff]  ;;  %1489 = vmatprep.subr.mxu1 %v1706_v3  ;;  %v49_v5 = vld [vmem:[%s2074_s1 + $0x28] sm:$0xff] }
   0x2   :  { %v1782_v1 = vld [vmem:[%s2075_s2 + $0x18] sm:$0xff]  ;;  %1470 = vmatprep.subr.mxu0 %v51_v0  ;;  %v1791_v4 = vld [vmem:[%s2075_s2 + $0x10] sm:$0xff]  ;;  %v1801_v6 = vld [vmem:[%s2075_s2 + $0x8] sm:$0xff] }
   0x3   :  { %1471 = vmatpush3.msra.mxu0 %v51_v0  ;;  %1490 = vmatpush3.msra.mxu1 %v1782_v1  ;;  %v48_v7 = vld [vmem:[%s2074_s1 + $0x20] sm:$0xff] }
   0x4   :  { %1472 = vmatprep.subr.mxu0 %v50_v2  ;;  %1491 = vmatprep.subr.mxu1 %v1706_v3  ;;  %v1811_v8 = vld [vmem:[%s2075_s2] sm:$0xff] }
   0x5   :  { %1473 = vmatpush3.msra.mxu0 %v50_v2  ;;  %1492 = vmatpush3.msra.mxu1 %v1791_v4 }
   0x6   :  { %1474 = vmatprep.subr.mxu0 %v49_v5  ;;  %1493 = vmatprep.subr.mxu1 %v1706_v3 }
   0x7   :  { %17 = vsyncpa [#allocation4], 0  ;;  %1475 = vmatpush3.msra.mxu0 %v49_v5  ;;  %1494 = vmatpush3.msra.mxu1 %v1801_v6  ;;  %v47_v9 = vld [vmem:[%s2074_s1 + $0x18] sm:$0xff]  ;;  %v46_v10 = vld [vmem:[%s2074_s1 + $0x10] sm:$0xff]  ;;  %vm59_vm0 = vcmask 523264   ;;  %vm1707_vm1 = vmmov 0  }
   0x8   :  { %1476 = vmatprep.subr.mxu0 %v48_v7  ;;  %1495 = vmatprep.subr.mxu1 %v1706_v3  ;;  %v42_v11 = vld [vmem:[%s2073_s0] sm:$0xff]  ;;  %v45_v13 = vld [vmem:[%s2074_s1 + $0x8] sm:$0xff]  ;;  %s1708_s30 = smov 64   ;;  %vm141_vm2 = vcmask 785408   ;;  %vm155_vm3 = vcmask 261120   ;;  %vm1279_vm4 = vcmask 1041408  }
   0x9   :  { %1477 = vmatpush3.msra.mxu0 %v48_v7  ;;  %1496 = vmatpush3.msra.mxu1 %v1811_v8  ;;  %v1372_v12 = vld [vmem:[%s2077_s4] ss:$0 sm:$0xff]  ;;  %v43_v15 = vld [vmem:[%s2073_s0 + $0x8] sm:$0xff]  ;;  %vm1275_vm5 = vcmask 80896   ;;  %vm1353_vm6 = vcmask 25600  }
   0xa   :  { %1497 = vmatprep.mubr.msk.f32.mxu1 %vm1707_vm1, %v1706_v3  ;;  %1478 = vmatprep.subr.mxu0 %v47_v9  ;;  %v44_v14 = vld [vmem:[%s2074_s1] sm:$0xff]  ;;  %s1710_s1 = smov [#allocation3]  }
   0xb   :  { %1498 = vmatmul.mubr.f32.vlgmr.msra.gmra.mxu1 %v1706_v3  ;;  %1479 = vmatpush3.msra.mxu0 %v47_v9  ;;  %v1369_v21 = vld [vmem:[%s2076_s3] ss:$0 sm:$0xff]  ;;  %s1709_s3 = smov 96  }
   0xc   :  { %1480 = vmatprep.subr.mxu0 %v46_v10  ;;  %1486 = vmatprep.mubr.msk.f32.mxu0 %vm59_vm0, %v42_v11 }
   0xd   :  { %1481 = vmatpush3.msra.mxu0 %v46_v10  ;;  %236 = vrot.lane.b32.xlu0 %v1372_v12, %s1708_s30 }
   0xe   :  { %1482 = vmatprep.subr.mxu0 %v45_v13  ;;  %1500 = vmatprep.subr.mxu1 %v1706_v3 }
   0xf   :  { %1483 = vmatpush3.msra.mxu0 %v45_v13  ;;  %1501 = vmatpush3.msra.mxu1 %v1782_v1 }
  0x10   :  { %1484 = vmatprep.subr.mxu0 %v44_v14  ;;  %1502 = vmatprep.subr.mxu1 %v1706_v3 }
  0x11   :  { %1485 = vmatpush3.msra.mxu0 %v44_v14  ;;  %1503 = vmatpush3.msra.mxu1 %v1791_v4 }
  0x12   :  { %1487 = vmatmul.mubr.msk.f32.vlgmr.msra.gmra.mxu0 %vm59_vm0, %v43_v15  ;;  %1504 = vmatprep.subr.mxu1 %v1706_v3 }
  0x13   :  { %1505 = vmatpush3.msra.mxu1 %v1801_v6  ;;  %1508 = vmatprep.mubr.msk.f32.mxu1 %vm1707_vm1, %v1706_v3 }
  0x14   :  { %1506 = vmatprep.subr.mxu1 %v1706_v3  ;;  %1511 = vmatprep.subr.mxu0 %v1706_v3 }
  0x15   :  { %1507 = vmatpush3.msra.mxu1 %v1811_v8  ;;  %1512 = vmatpush3.msra.mxu0 %v1782_v1 }
  0x16   :  { %1513 = vmatprep.subr.mxu0 %v1706_v3  ;;  %1519 = vmatprep.mubr.msk.f32.mxu0 %vm1707_vm1, %v1706_v3 }
  0x17   :  { %1514 = vmatpush3.msra.mxu0 %v1791_v4  ;;  %1522 = vmatprep.subr.mxu1 %v1706_v3 }
  0x18   :  { %1515 = vmatprep.subr.mxu0 %v1706_v3 }
  0x19   :  { %1516 = vmatpush3.msra.mxu0 %v1801_v6 }
  0x1a   :  { %1517 = vmatprep.subr.mxu0 %v1706_v3 }
  0x1b   :  { %1518 = vmatpush3.msra.mxu0 %v1811_v8 }
  0x1c   :  { %1533 = vmatprep.subr.mxu0 %v1706_v3 }
  0x7f   :  { %v1865_v16 = vpop.permute.xlu0 %236 }
  0xcb   :  { %v225_v17 = vpop.f32.mrf.mxu1 }
  0xcc   :  { %v239_v18 = vadd.f32 %v1865_v16, %v225_v17 }
  0xcd   :  { %v1499_v19 = vpop.f32.mrf.mxu1 }
  0xce   :  { %241 = vrot.lane.b32.xlu0 %v239_v18, %s1708_s30 }
  0xd2   :  { %v1488_v20 = vpop.f32.mrf.mxu0 }
  0xd3   :  { %v138_v22 = vadd.f32 %v1488_v20, %v1369_v21 }
  0xd4   :  { %v132_v23 = vpop.f32.mrf.mxu0 }
  0xd5   :  { %143 = vst.msk [vmem:[#allocation2 + $0x8] sm:$0xff] %vm141_vm2, %v138_v22  ;;  %v133_v24 = vadd.f32 %v1369_v21, %v132_v23 }
  0xd7   :  { %142 = vst.msk [vmem:[#allocation2] sm:$0xff] %vm141_vm2, %v133_v24 }
  0xde   :  { %v154_v25 = vld [vmem:[#allocation2] sm:$0x3]  ;;  %v259_v45 = vld [vmem:[#allocation2 + $0x2] sm:$0x3]  ;;  %v362_v2 = vld [vmem:[#allocation2 + $0x4] sm:$0x3] }
  0xdf   :  { %v229_v26 = vadd.f32 %v225_v17, %v154_v25 }
  0xe1   :  { %v1373_v27 = vmul.f32 -1.442695, %v229_v26 }
  0xe3   :  { %1630 = vpow2.f32 %v1373_v27  ;;  %v465_v27 = vld [vmem:[#allocation2 + $0x6] sm:$0x3] }
  0xf0   :  { %v1631_v28 = vpop.eup %1630 }
  0xf1   :  { %v233_v29 = vadd.f32 1.0, %v1631_v28 }
  0xf3   :  { %1632 = vrcp.f32 %v233_v29 }
 0x100   :  { %v1633_v30 = vpop.eup %1632 }
 0x101   :  { %v251_v36 = vsub.f32 1.0, %v1633_v30  ;;  %v257_v38 = vmul.f32 0.0, %v1633_v30 }
 0x140   :  { %v242_v31 = vpop.permute.xlu0 %241 }
 0x141   :  { %v244_v32 = vmul.f32 %v1633_v30, %v242_v31 }
 0x143   :  { %246 = vrot.lane.b32.xlu1 %v244_v32, %s1708_s30 }
 0x1b5   :  { %v247_v33 = vpop.permute.xlu1 %246 }
 0x1b6   :  { %v249_v34 = vadd.f32 %v247_v33, %v154_v25 }
 0x1b8   :  { %1634 = vtanh.f32 %v249_v34 }
 0x1c5   :  { %v1635_v35 = vpop.eup %1634 }
 0x1c6   :  { %253 = vrot.lane.b32.xlu1 %v1635_v35, %s1709_s3 }
 0x238   :  { %v254_v37 = vpop.permute.xlu1 %253 }
 0x239   :  { %v256_v39 = vmul.f32 %v254_v37, %v251_v36 }
 0x23b   :  { %v258_v40 = vadd.f32 %v257_v38, %v256_v39 }
 0x23d   :  { %261 = vrot.lane.b32.xlu0 %v258_v40, %s1709_s3 }
 0x2af   :  { %v262_v41 = vpop.permute.xlu0 %261 }
 0x2b0   :  { %1509 = vmatmul.mubr.msk.f32.vlgmr.msra.gmra.mxu1 %vm155_vm3, %v262_v41 }
 0x2b1   :  { %1523 = vmatpush3.msra.mxu1 %v1782_v1  ;;  %1530 = vmatprep.mubr.msk.f32.mxu1 %vm1707_vm1, %v1706_v3 }
 0x2b2   :  { %1524 = vmatprep.subr.mxu1 %v1706_v3 }
 0x2b3   :  { %1525 = vmatpush3.msra.mxu1 %v1791_v4 }
 0x2b4   :  { %1526 = vmatprep.subr.mxu1 %v1706_v3 }
 0x2b5   :  { %1527 = vmatpush3.msra.mxu1 %v1801_v6 }
 0x2b6   :  { %1528 = vmatprep.subr.mxu1 %v1706_v3 }
 0x2b7   :  { %1529 = vmatpush3.msra.mxu1 %v1811_v8 }
 0x2b8   :  { %1544 = vmatprep.subr.mxu1 %v1706_v3 }
 0x370   :  { %v331_v42 = vpop.f32.mrf.mxu1 }
 0x371   :  { %v342_v43 = vadd.f32 %v331_v42, %v1865_v16  ;;  %v335_v46 = vadd.f32 %v331_v42, %v259_v45 }
 0x372   :  { %v1510_v44 = vpop.f32.mrf.mxu1 }
 0x373   :  { %344 = vrot.lane.b32.xlu1 %v342_v43, %s1708_s30  ;;  %v1375_v47 = vmul.f32 -1.442695, %v335_v46 }
 0x375   :  { %1636 = vpow2.f32 %v1375_v47  ;;  %v568_v47 = vld [vmem:[#allocation2 + $0x8] sm:$0x3] }
 0x382   :  { %v1637_v48 = vpop.eup %1636 }
 0x383   :  { %v339_v49 = vadd.f32 1.0, %v1637_v48 }
 0x385   :  { %1638 = vrcp.f32 %v339_v49 }
 0x392   :  { %v1639_v50 = vpop.eup %1638 }
 0x393   :  { %v354_v56 = vsub.f32 1.0, %v1639_v50  ;;  %v360_v58 = vmul.f32 %v1639_v50, %v258_v40 }
 0x3e5   :  { %v345_v51 = vpop.permute.xlu1 %344 }
 0x3e6   :  { %v347_v52 = vmul.f32 %v1639_v50, %v345_v51 }
 0x3e8   :  { %349 = vrot.lane.b32.xlu0 %v347_v52, %s1708_s30 }
 0x45a   :  { %v350_v53 = vpop.permute.xlu0 %349 }
 0x45b   :  { %v352_v54 = vadd.f32 %v350_v53, %v259_v45 }
 0x45d   :  { %1640 = vtanh.f32 %v352_v54 }
 0x46a   :  { %v1641_v55 = vpop.eup %1640 }
 0x46b   :  { %356 = vrot.lane.b32.xlu1 %v1641_v55, %s1709_s3 }
 0x4dd   :  { %v357_v57 = vpop.permute.xlu1 %356 }
 0x4de   :  { %v359_v59 = vmul.f32 %v357_v57, %v354_v56 }
 0x4e0   :  { %v361_v60 = vadd.f32 %v360_v58, %v359_v59 }
 0x4e2   :  { %364 = vrot.lane.b32.xlu0 %v361_v60, %s1709_s3 }
 0x554   :  { %v365_v61 = vpop.permute.xlu0 %364 }
 0x555   :  { %1520 = vmatmul.mubr.msk.f32.vlgmr.msra.gmra.mxu0 %vm155_vm3, %v365_v61 }
 0x556   :  { %1534 = vmatpush3.msra.mxu0 %v1782_v1  ;;  %1541 = vmatprep.mubr.msk.f32.mxu0 %vm1707_vm1, %v1706_v3 }
 0x557   :  { %1535 = vmatprep.subr.mxu0 %v1706_v3 }
 0x558   :  { %1536 = vmatpush3.msra.mxu0 %v1791_v4 }
 0x559   :  { %1537 = vmatprep.subr.mxu0 %v1706_v3 }
 0x55a   :  { %1538 = vmatpush3.msra.mxu0 %v1801_v6 }
 0x55b   :  { %1539 = vmatprep.subr.mxu0 %v1706_v3 }
 0x55c   :  { %1540 = vmatpush3.msra.mxu0 %v1811_v8 }
 0x55d   :  { %1555 = vmatprep.subr.mxu0 %v1706_v3 }
 0x615   :  { %v434_v62 = vpop.f32.mrf.mxu0 }
 0x616   :  { %v445_v63 = vadd.f32 %v434_v62, %v1865_v16  ;;  %v438_v5 = vadd.f32 %v434_v62, %v362_v2 }
 0x617   :  { %v1521_v0 = vpop.f32.mrf.mxu0 }
 0x618   :  { %447 = vrot.lane.b32.xlu1 %v445_v63, %s1708_s30  ;;  %v1377_v7 = vmul.f32 -1.442695, %v438_v5  ;;  %v671_v5 = vld [vmem:[#allocation2 + $0xa] sm:$0x3] }
 0x61a   :  { %1642 = vpow2.f32 %v1377_v7 }
 0x627   :  { %v1643_v9 = vpop.eup %1642 }
 0x628   :  { %v442_v10 = vadd.f32 1.0, %v1643_v9 }
 0x62a   :  { %1644 = vrcp.f32 %v442_v10 }
 0x637   :  { %v1645_v11 = vpop.eup %1644 }
 0x638   :  { %v457_v18 = vsub.f32 1.0, %v1645_v11  ;;  %v463_v20 = vmul.f32 %v1645_v11, %v361_v60 }
 0x68a   :  { %v448_v12 = vpop.permute.xlu1 %447 }
 0x68b   :  { %v450_v13 = vmul.f32 %v1645_v11, %v448_v12 }
 0x68d   :  { %452 = vrot.lane.b32.xlu0 %v450_v13, %s1708_s30 }
 0x6ff   :  { %v453_v14 = vpop.permute.xlu0 %452 }
 0x700   :  { %v455_v15 = vadd.f32 %v453_v14, %v362_v2 }
 0x702   :  { %1646 = vtanh.f32 %v455_v15 }
 0x70f   :  { %v1647_v17 = vpop.eup %1646 }
 0x710   :  { %459 = vrot.lane.b32.xlu1 %v1647_v17, %s1709_s3 }
 0x782   :  { %v460_v19 = vpop.permute.xlu1 %459 }
 0x783   :  { %v462_v21 = vmul.f32 %v460_v19, %v457_v18 }
 0x785   :  { %v464_v22 = vadd.f32 %v463_v20, %v462_v21 }
 0x787   :  { %467 = vrot.lane.b32.xlu0 %v464_v22, %s1709_s3 }
 0x7f9   :  { %v468_v23 = vpop.permute.xlu0 %467 }
 0x7fa   :  { %1531 = vmatmul.mubr.msk.f32.vlgmr.msra.gmra.mxu1 %vm155_vm3, %v468_v23 }
 0x7fb   :  { %1545 = vmatpush3.msra.mxu1 %v1782_v1  ;;  %1552 = vmatprep.mubr.msk.f32.mxu1 %vm1707_vm1, %v1706_v3 }
 0x7fc   :  { %1546 = vmatprep.subr.mxu1 %v1706_v3 }
 0x7fd   :  { %1547 = vmatpush3.msra.mxu1 %v1791_v4 }
 0x7fe   :  { %1548 = vmatprep.subr.mxu1 %v1706_v3 }
 0x7ff   :  { %1549 = vmatpush3.msra.mxu1 %v1801_v6 }
 0x800   :  { %1550 = vmatprep.subr.mxu1 %v1706_v3 }
 0x801   :  { %1551 = vmatpush3.msra.mxu1 %v1811_v8 }
 0x802   :  { %1566 = vmatprep.subr.mxu1 %v1706_v3 }
 0x8ba   :  { %v537_v24 = vpop.f32.mrf.mxu1 }
 0x8bb   :  { %v548_v25 = vadd.f32 %v537_v24, %v1865_v16  ;;  %v541_v28 = vadd.f32 %v537_v24, %v465_v27 }
 0x8bc   :  { %v1532_v26 = vpop.f32.mrf.mxu1 }
 0x8bd   :  { %550 = vrot.lane.b32.xlu1 %v548_v25, %s1708_s30  ;;  %v1379_v29 = vmul.f32 -1.442695, %v541_v28  ;;  %v774_v25 = vld [vmem:[#allocation2 + $0xc] sm:$0x3] }
 0x8bf   :  { %1648 = vpow2.f32 %v1379_v29 }
 0x8cc   :  { %v1649_v30 = vpop.eup %1648 }
 0x8cd   :  { %v545_v31 = vadd.f32 1.0, %v1649_v30 }
 0x8cf   :  { %1650 = vrcp.f32 %v545_v31 }
 0x8dc   :  { %v1651_v32 = vpop.eup %1650 }
 0x8dd   :  { %v560_v38 = vsub.f32 1.0, %v1651_v32  ;;  %v566_v40 = vmul.f32 %v1651_v32, %v464_v22 }
 0x92f   :  { %v551_v33 = vpop.permute.xlu1 %550 }
 0x930   :  { %v553_v34 = vmul.f32 %v1651_v32, %v551_v33  ;;  %v988_v33 = vld [vmem:[%s2078_s5 + $0x38] sm:$0xff] }
 0x932   :  { %555 = vrot.lane.b32.xlu0 %v553_v34, %s1708_s30  ;;  %v987_v34 = vld [vmem:[%s2078_s5 + $0x30] sm:$0xff] }
 0x9a4   :  { %v556_v35 = vpop.permute.xlu0 %555 }
 0x9a5   :  { %v558_v36 = vadd.f32 %v556_v35, %v465_v27  ;;  %v986_v35 = vld [vmem:[%s2078_s5 + $0x28] sm:$0xff] }
 0x9a7   :  { %1652 = vtanh.f32 %v558_v36  ;;  %v985_v36 = vld [vmem:[%s2078_s5 + $0x20] sm:$0xff] }
 0x9b4   :  { %v1653_v37 = vpop.eup %1652 }
 0x9b5   :  { %562 = vrot.lane.b32.xlu1 %v1653_v37, %s1709_s3  ;;  %v984_v37 = vld [vmem:[%s2078_s5 + $0x18] sm:$0xff] }
 0xa27   :  { %v563_v39 = vpop.permute.xlu1 %562 }
 0xa28   :  { %v565_v41 = vmul.f32 %v563_v39, %v560_v38  ;;  %v983_v38 = vld [vmem:[%s2078_s5 + $0x10] sm:$0xff]  ;;  %v982_v39 = vld [vmem:[%s2078_s5 + $0x8] sm:$0xff] }
 0xa2a   :  { %v567_v42 = vadd.f32 %v566_v40, %v565_v41  ;;  %v981_v40 = vld [vmem:[%s2078_s5] sm:$0xff]  ;;  %v980_v41 = vld [vmem:[%s2073_s0 + $0xe] sm:$0x3]  ;;  %s1361_s0 = sshll.u32 %s1710_s1, 4  ;;  %s1362_s0 = int_to_ptr.vmem [resolvable:$true] %s1361_s0 }
 0xa2b   :  { %p1689_p1 = scmp.lt.s32.totalorder %s1362_s0, %s1362_s0 }
 0xa2c   :  { %570 = vrot.lane.b32.xlu0 %v567_v42, %s1709_s3 }
 0xa9e   :  { %v571_v43 = vpop.permute.xlu0 %570 }
 0xa9f   :  { %1542 = vmatmul.mubr.msk.f32.vlgmr.msra.gmra.mxu0 %vm155_vm3, %v571_v43 }
 0xaa0   :  { %1556 = vmatpush3.msra.mxu0 %v1782_v1  ;;  %1563 = vmatprep.mubr.msk.f32.mxu0 %vm1707_vm1, %v1706_v3 }
 0xaa1   :  { %1557 = vmatprep.subr.mxu0 %v1706_v3 }
 0xaa2   :  { %1558 = vmatpush3.msra.mxu0 %v1791_v4 }
 0xaa3   :  { %1559 = vmatprep.subr.mxu0 %v1706_v3 }
 0xaa4   :  { %1560 = vmatpush3.msra.mxu0 %v1801_v6 }
 0xaa5   :  { %1561 = vmatprep.subr.mxu0 %v1706_v3 }
 0xaa6   :  { %1562 = vmatpush3.msra.mxu0 %v1811_v8 }
 0xaa7   :  { %1577 = vmatprep.subr.mxu0 %v1706_v3 }
 0xb5f   :  { %v640_v44 = vpop.f32.mrf.mxu0 }
 0xb60   :  { %v651_v45 = vadd.f32 %v640_v44, %v1865_v16  ;;  %v644_v48 = vadd.f32 %v640_v44, %v568_v47 }
 0xb61   :  { %v1543_v46 = vpop.f32.mrf.mxu0 }
 0xb62   :  { %653 = vrot.lane.b32.xlu1 %v651_v45, %s1708_s30  ;;  %v1381_v49 = vmul.f32 -1.442695, %v644_v48  ;;  %v1388_v45 = vld [vmem:[%s2079_s6] ss:$0 sm:$0xff] }
 0xb64   :  { %1654 = vpow2.f32 %v1381_v49 }
 0xb71   :  { %v1655_v50 = vpop.eup %1654 }
 0xb72   :  { %v648_v51 = vadd.f32 1.0, %v1655_v50 }
 0xb74   :  { %1656 = vrcp.f32 %v648_v51 }
 0xb81   :  { %v1657_v52 = vpop.eup %1656 }
 0xb82   :  { %v663_v58 = vsub.f32 1.0, %v1657_v52  ;;  %v669_v60 = vmul.f32 %v1657_v52, %v567_v42 }
 0xbd4   :  { %v654_v53 = vpop.permute.xlu1 %653 }
 0xbd5   :  { %v656_v54 = vmul.f32 %v1657_v52, %v654_v53 }
 0xbd7   :  { %658 = vrot.lane.b32.xlu0 %v656_v54, %s1708_s30 }
 0xc49   :  { %v659_v55 = vpop.permute.xlu0 %658 }
 0xc4a   :  { %v661_v56 = vadd.f32 %v659_v55, %v568_v47 }
 0xc4c   :  { %1658 = vtanh.f32 %v661_v56 }
 0xc59   :  { %v1659_v57 = vpop.eup %1658 }
 0xc5a   :  { %665 = vrot.lane.b32.xlu1 %v1659_v57, %s1709_s3  ;;  %v1390_v57 = vld [vmem:[%s2080_s7] ss:$0 sm:$0xff] }
 0xccc   :  { %v666_v59 = vpop.permute.xlu1 %665 }
 0xccd   :  { %v668_v61 = vmul.f32 %v666_v59, %v663_v58 }
 0xccf   :  { %v670_v62 = vadd.f32 %v669_v60, %v668_v61 }
 0xcd1   :  { %673 = vrot.lane.b32.xlu0 %v670_v62, %s1709_s3 }
 0xd43   :  { %v674_v63 = vpop.permute.xlu0 %673 }
 0xd44   :  { %1553 = vmatmul.mubr.msk.f32.vlgmr.msra.gmra.mxu1 %vm155_vm3, %v674_v63 }
 0xd45   :  { %1567 = vmatpush3.msra.mxu1 %v1782_v1  ;;  %1574 = vmatprep.mubr.msk.f32.mxu1 %vm1707_vm1, %v1706_v3 }
 0xd46   :  { %1568 = vmatprep.subr.mxu1 %v1706_v3 }
 0xd47   :  { %1569 = vmatpush3.msra.mxu1 %v1791_v4 }
 0xd48   :  { %1570 = vmatprep.subr.mxu1 %v1706_v3 }
 0xd49   :  { %1571 = vmatpush3.msra.mxu1 %v1801_v6 }
 0xd4a   :  { %1572 = vmatprep.subr.mxu1 %v1706_v3 }
 0xd4b   :  { %1573 = vmatpush3.msra.mxu1 %v1811_v8 }
 0xd4c   :  { %1596 = vmatprep.subr.mxu1 %v1706_v3 }
 0xe04   :  { %v743_v0 = vpop.f32.mrf.mxu1 }
 0xe05   :  { %v754_v1 = vadd.f32 %v743_v0, %v1865_v16  ;;  %v747_v7 = vadd.f32 %v743_v0, %v671_v5 }
 0xe06   :  { %v1554_v2 = vpop.f32.mrf.mxu1 }
 0xe07   :  { %756 = vrot.lane.b32.xlu1 %v754_v1, %s1708_s30  ;;  %v1383_v9 = vmul.f32 -1.442695, %v747_v7 }
 0xe09   :  { %1660 = vpow2.f32 %v1383_v9  ;;  %v1106_v9 = vld [vmem:[%s2081_s8 + $0x38] sm:$0xff] }
 0xe16   :  { %v1661_v4 = vpop.eup %1660 }
 0xe17   :  { %v751_v10 = vadd.f32 1.0, %v1661_v4  ;;  %v1105_v4 = vld [vmem:[%s2081_s8 + $0x30] sm:$0xff] }
 0xe19   :  { %1662 = vrcp.f32 %v751_v10  ;;  %v1104_v10 = vld [vmem:[%s2081_s8 + $0x28] sm:$0xff] }
 0xe26   :  { %v1663_v6 = vpop.eup %1662 }
 0xe27   :  { %v766_v15 = vsub.f32 1.0, %v1663_v6  ;;  %v772_v18 = vmul.f32 %v1663_v6, %v670_v62 }
 0xe79   :  { %v757_v11 = vpop.permute.xlu1 %756 }
 0xe7a   :  { %v759_v12 = vmul.f32 %v1663_v6, %v757_v11  ;;  %v1103_v6 = vld [vmem:[%s2081_s8 + $0x20] sm:$0xff] }
 0xe7c   :  { %761 = vrot.lane.b32.xlu0 %v759_v12, %s1708_s30 }
 0xeee   :  { %v762_v8 = vpop.permute.xlu0 %761 }
 0xeef   :  { %v764_v13 = vadd.f32 %v762_v8, %v671_v5 }
 0xef1   :  { %1664 = vtanh.f32 %v764_v13  ;;  %v877_v13 = vld [vmem:[#allocation2 + $0xe] sm:$0x3] }
 0xefe   :  { %v1665_v14 = vpop.eup %1664 }
 0xeff   :  { %768 = vrot.lane.b32.xlu1 %v1665_v14, %s1709_s3 }
 0xf71   :  { %v769_v17 = vpop.permute.xlu1 %768 }
 0xf72   :  { %v771_v19 = vmul.f32 %v769_v17, %v766_v15 }
 0xf74   :  { %v773_v20 = vadd.f32 %v772_v18, %v771_v19 }
 0xf76   :  { %776 = vrot.lane.b32.xlu0 %v773_v20, %s1709_s3 }
 0xfe8   :  { %v777_v21 = vpop.permute.xlu0 %776 }
 0xfe9   :  { %1564 = vmatmul.mubr.msk.f32.vlgmr.msra.gmra.mxu0 %vm155_vm3, %v777_v21 }
 0xfea   :  { %1593 = vmatprep.mubr.msk.f32.mxu0 %vm1707_vm1, %v1706_v3  ;;  %1578 = vmatpush3.msra.mxu0 %v988_v33 }
 0xfeb   :  { %1579 = vmatprep.subr.mxu0 %v1706_v3 }
 0xfec   :  { %1580 = vmatpush3.msra.mxu0 %v987_v34 }
 0xfed   :  { %1581 = vmatprep.subr.mxu0 %v1706_v3 }
 0xfee   :  { %1582 = vmatpush3.msra.mxu0 %v986_v35 }
 0xfef   :  { %1583 = vmatprep.subr.mxu0 %v1706_v3 }
 0xff0   :  { %1584 = vmatpush3.msra.mxu0 %v985_v36 }
 0xff1   :  { %1585 = vmatprep.subr.mxu0 %v1706_v3 }
 0xff2   :  { %1586 = vmatpush3.msra.mxu0 %v984_v37  ;;  %v1267_v37 = vld [vmem:[%s2083_s10 + $0x8] sm:$0x3] }
 0xff3   :  { %1587 = vmatprep.subr.mxu0 %v1706_v3 }
 0xff4   :  { %1588 = vmatpush3.msra.mxu0 %v983_v38  ;;  %v1266_v38 = vld [vmem:[%s2083_s10] sm:$0xff]  ;;  %s1684_s10 = scalar_lea.vmem %s1362_s0, 32 }
 0xff5   :  { %1589 = vmatprep.subr.mxu0 %v1706_v3  ;;  %p1685_p0 = scmp.ne.s32.totalorder %s1362_s0, %s1684_s10  ;;  %p1690_p2 = scmp.lt.s32.totalorder %s1684_s10, %s1684_s10 }
 0xff6   :  { %1590 = vmatpush3.msra.mxu0 %v982_v39 }
 0xff7   :  { %1591 = vmatprep.subr.mxu0 %v1706_v3  ;;  %p1691_p3 = por %p1690_p2, %p1689_p1 }
 0xff8   :  { %1592 = vmatpush3.msra.mxu0 %v981_v40  ;;  %v1394_v40 = vld [vmem:[%s2082_s9] ss:$0 sm:$0xff] }
 0xff9   :  { %1594 = vmatmul.mubr.msk.f32.vlgmr.msra.gmra.mxu0 %vm59_vm0, %v980_v41  ;;  %1618 = vmatprep.subr.mxu0 %v1706_v3  ;;  %p1692_p4 = pnand %p1691_p3, %p1685_p0 }
 0xffa   :  { %1622 = vmatprep.mubr.msk.f32.mxu0 %vm1707_vm1, %v1706_v3  ;;  %1619 = vmatpush3.msk.msra.mxu0 %vm1279_vm4, %v1267_v37 }
 0xffb   :  { %1620 = vmatprep.subr.mxu0 %v1706_v3 }
 0xffc   :  { %1621 = vmatpush3.msra.mxu0 %v1266_v38 }
0x10a9   :  { %v846_v22 = vpop.f32.mrf.mxu0 }
0x10aa   :  { %v857_v23 = vadd.f32 %v846_v22, %v1865_v16  ;;  %v850_v26 = vadd.f32 %v846_v22, %v774_v25 }
0x10ab   :  { %v1565_v24 = vpop.f32.mrf.mxu0 }
0x10ac   :  { %859 = vrot.lane.b32.xlu1 %v857_v23, %s1708_s30  ;;  %v1385_v27 = vmul.f32 -1.442695, %v850_v26  ;;  %v1102_v24 = vld [vmem:[%s2081_s8 + $0x18] sm:$0xff]  ;;  %v1100_v26 = vld [vmem:[%s2081_s8 + $0x8] sm:$0xff] }
0x10ae   :  { %1666 = vpow2.f32 %v1385_v27  ;;  %v1099_v27 = vld [vmem:[%s2081_s8] sm:$0xff] }
0x10b9   :  { %v1065_v46 = vpop.f32.mrf.mxu0 }
0x10ba   :  { %v1066_v47 = vadd.f32 %v1388_v45, %v1065_v46 }
0x10bb   :  { %v1667_v28 = vpop.eup %1666  ;;  %v1595_v48 = vpop.f32.mrf.mxu0 }
0x10bc   :  { %v854_v29 = vadd.f32 1.0, %v1667_v28  ;;  %v1391_v49 = vmul.f32 -1.442695, %v1066_v47 }
0x10be   :  { %1668 = vrcp.f32 %v854_v29 }
0x10cb   :  { %v1669_v30 = vpop.eup %1668 }
0x10cc   :  { %v869_v50 = vsub.f32 1.0, %v1669_v30  ;;  %v875_v52 = vmul.f32 %v1669_v30, %v773_v20 }
0x111e   :  { %v860_v31 = vpop.permute.xlu1 %859 }
0x111f   :  { %v862_v32 = vmul.f32 %v1669_v30, %v860_v31 }
0x1121   :  { %864 = vrot.lane.b32.xlu0 %v862_v32, %s1708_s30 }
0x1193   :  { %v865_v42 = vpop.permute.xlu0 %864 }
0x1194   :  { %v867_v43 = vadd.f32 %v865_v42, %v774_v25  ;;  %v1101_v25 = vld [vmem:[%s2081_s8 + $0x10] sm:$0xff] }
0x1196   :  { %1670 = vtanh.f32 %v867_v43 }
0x1197   :  { %1672 = vpow2.f32 %v1391_v49 }
0x11a3   :  { %v1671_v44 = vpop.eup %1670 }
0x11a4   :  { %871 = vrot.lane.b32.xlu1 %v1671_v44, %s1709_s3  ;;  %v1673_v55 = vpop.eup %1672 }
0x11a5   :  { %v1080_v56 = vadd.f32 1.0, %v1673_v55 }
0x11a7   :  { %1674 = vrcp.f32 %v1080_v56 }
0x11b4   :  { %v1675_v58 = vpop.eup %1674 }
0x11b5   :  { %v1084_v59 = vmul.f32 %v1675_v58, %v1390_v57  ;;  %v1091_v0 = vsub.f32 1.0, %v1675_v58  ;;  %v1097_v1 = vmul.f32 0.0, %v1675_v58 }
0x1216   :  { %v872_v51 = vpop.permute.xlu1 %871 }
0x1217   :  { %v874_v53 = vmul.f32 %v872_v51, %v869_v50 }
0x1219   :  { %v2003_v54 = vadd.f32 %v875_v52, %v874_v53 }
0x121b   :  { %879 = vrot.lane.b32.xlu0 %v2003_v54, %s1709_s3 }
0x121f   :  { %1086 = vrot.lane.b32.xlu0 %v1084_v59, %s1708_s30 }
0x128d   :  { %v880_v60 = vpop.permute.xlu0 %879 }
0x128e   :  { %1575 = vmatmul.mubr.msk.f32.vlgmr.msra.gmra.mxu1 %vm155_vm3, %v880_v60 }
0x128f   :  { %1604 = vmatprep.mubr.msk.f32.mxu1 %vm1707_vm1, %v1706_v3  ;;  %1597 = vmatpush3.msra.mxu1 %v1106_v9 }
0x1290   :  { %1598 = vmatprep.subr.mxu1 %v1706_v3 }
0x1291   :  { %v1087_v61 = vpop.permute.xlu0 %1086  ;;  %1599 = vmatpush3.msra.mxu1 %v1105_v4 }
0x1292   :  { %v1089_v62 = vadd.f32 %v1087_v61, %v1066_v47  ;;  %1600 = vmatprep.subr.mxu1 %v1706_v3 }
0x1293   :  { %1601 = vmatpush3.msra.mxu1 %v1104_v10 }
0x1294   :  { %1676 = vtanh.f32 %v1089_v62  ;;  %1602 = vmatprep.subr.mxu1 %v1706_v3 }
0x1295   :  { %1603 = vmatpush3.msra.mxu1 %v1103_v6 }
0x1296   :  { %1607 = vmatprep.subr.mxu1 %v1706_v3 }
0x12a1   :  { %v1677_v63 = vpop.eup %1676 }
0x12a2   :  { %1093 = vrot.lane.b32.xlu0 %v1677_v63, %s1709_s3 }
0x1314   :  { %v1094_v2 = vpop.permute.xlu0 %1093 }
0x1315   :  { %v1096_v5 = vmul.f32 %v1094_v2, %v1091_v0 }
0x1317   :  { %v1098_v7 = vadd.f32 %v1097_v1, %v1096_v5 }
0x1319   :  { %1108 = vrot.lane.b32.xlu0 %v1098_v7, %s1709_s3 }
0x134e   :  { %v949_v11 = vpop.f32.mrf.mxu1 }
0x134f   :  { %v960_v12 = vadd.f32 %v949_v11, %v1865_v16  ;;  %v953_v14 = vadd.f32 %v949_v11, %v877_v13 }
0x1350   :  { %v1576_v8 = vpop.f32.mrf.mxu1 }
0x1351   :  { %962 = vrot.lane.b32.xlu1 %v960_v12, %s1708_s30  ;;  %v1387_v15 = vmul.f32 -1.442695, %v953_v14 }
0x1353   :  { %1678 = vpow2.f32 %v1387_v15 }
0x1360   :  { %v1679_v18 = vpop.eup %1678 }
0x1361   :  { %v957_v19 = vadd.f32 1.0, %v1679_v18 }
0x1363   :  { %1680 = vrcp.f32 %v957_v19 }
0x1370   :  { %v1681_v20 = vpop.eup %1680 }
0x1371   :  { %v972_v31 = vsub.f32 1.0, %v1681_v20  ;;  %v978_v33 = vmul.f32 %v1681_v20, %v2003_v54 }
0x138b   :  { %v1109_v17 = vpop.permute.xlu0 %1108 }
0x138c   :  { %1605 = vmatmul.mubr.msk.f32.vlgmr.msra.gmra.mxu1 %vm155_vm3, %v1109_v17 }
0x138d   :  { %1615 = vmatprep.mubr.msk.f32.mxu1 %vm1707_vm1, %v1706_v3  ;;  %1608 = vmatpush3.msra.mxu1 %v1102_v24 }
0x138e   :  { %1609 = vmatprep.subr.mxu1 %v1706_v3 }
0x138f   :  { %1610 = vmatpush3.msra.mxu1 %v1101_v25 }
0x1390   :  { %1611 = vmatprep.subr.mxu1 %v1706_v3 }
0x1391   :  { %1612 = vmatpush3.msra.mxu1 %v1100_v26 }
0x1392   :  { %1613 = vmatprep.subr.mxu1 %v1706_v3  ;;  %v1395_v3 = vld [vmem:[%s2084_s11] ss:$0 sm:$0xff] }
0x1393   :  { %1614 = vmatpush3.msra.mxu1 %v1099_v27 }
0x13c3   :  { %v963_v21 = vpop.permute.xlu1 %962 }
0x13c4   :  { %v965_v22 = vmul.f32 %v1681_v20, %v963_v21 }
0x13c6   :  { %967 = vrot.lane.b32.xlu1 %v965_v22, %s1708_s30 }
0x1438   :  { %v968_v16 = vpop.permute.xlu1 %967 }
0x1439   :  { %v970_v23 = vadd.f32 %v968_v16, %v877_v13 }
0x143b   :  { %1682 = vtanh.f32 %v970_v23 }
0x1448   :  { %v1683_v28 = vpop.eup %1682 }
0x1449   :  { %974 = vrot.lane.b32.xlu1 %v1683_v28, %s1709_s3 }
0x144c   :  { %v1178_v29 = vpop.f32.mrf.mxu1 }
0x144e   :  { %v1606_v30 = vpop.f32.mrf.mxu1 }
0x14bb   :  { %v975_v32 = vpop.permute.xlu1 %974 }
0x14bc   :  { %v977_v34 = vmul.f32 %v975_v32, %v972_v31 }
0x14be   :  { %v979_v35 = vadd.f32 %v978_v33, %v977_v34 }
0x14c0   :  { %1183 = vrot.lane.b32.xlu1 %v979_v35, %s1709_s3 }
0x1532   :  { %v1184_v36 = vpop.permute.xlu1 %1183 }
0x1533   :  { %1616 = vmatmul.mubr.msk.f32.vlgmr.msra.gmra.mxu1 %vm155_vm3, %v1184_v36 }
0x15f3   :  { %v1253_v39 = vpop.f32.mrf.mxu1 }
0x15f4   :  { %v1254_v41 = vadd.f32 %v1253_v39, %v1178_v29 }
0x15f5   :  { %v1617_v42 = vpop.f32.mrf.mxu1 }
0x15f6   :  { %v1264_v43 = vadd.f32 %v1394_v40, %v1254_v41 }
0x15f8   :  { %v1265_v44 = vmax.f32 %v1264_v43, 0.0 }
0x15fa   :  { %1623 = vmatmul.mubr.msk.f32.vlgmr.msra.gmra.mxu0 %vm1275_vm5, %v1265_v44 }
0x16ba   :  { %v1349_v45 = vpop.f32.mrf.mxu0 }
0x16bb   :  { %v1350_v46 = vadd.f32 %v1395_v3, %v1349_v45 }
0x16bc   :  { %v1624_v47 = vpop.f32.mrf.mxu0 }
0x16bd   :  { %1354 = vst.msk [vmem:[#allocation3] sm:$0x3] %vm1353_vm6, %v1350_v46 }
0x16be   :  { %1695 = shalt.err (!%p1692_p4)
}
0x16bf   :  { %1364 = dma.vmem_to_hbm [thread:$0]  %s1362_s0, 32, %s2085_s12, [#allocation4]  }
0x16c0   :  { %1704 = dma.done.wait [#allocation4], 32  }
0x16c1   :  { %1705 = vsyncadd [#allocation4], 4294967264 }
0x16c2   :  { %1368 = vsyncpa [#allocation4], 1 }

// kernel: forecasting_bigru_forward.2
= control target key start
LH: loop header
LB: loop body
LE: loop exit
PB: predicated region body
PF: predicated region fallthrough
CT: control target
= control target key end

     0   :  { %14 = vsyncpa [#allocation7], 0  ;;  %s2469_s30 = smov [#allocation6]   ;;  %s3012_s0 = inlined_call_operand.vmem [shape: f32[16,16], index: 0, kind: input, shape index: {}]   ;;  %s3013_s1 = inlined_call_operand.vmem [shape: f32[16,96], index: 1, kind: input, shape index: {}]   ;;  %s3014_s2 = inlined_call_operand.vmem [shape: f32[32,96], index: 2, kind: input, shape index: {}]   ;;  %s3015_s3 = inlined_call_operand.vmem [shape: f32[1,96], index: 3, kind: input, shape index: {}]   ;;  %s3016_s4 = inlined_call_operand.vmem [shape: f32[1,32], index: 4, kind: input, shape index: {}]   ;;  %s3017_s5 = inlined_call_operand.hbm [shape: f32[16,96], index: 5, kind: input, shape index: {}]   ;;  %s3018_s6 = inlined_call_operand.vmem [shape: f32[32,96], index: 6, kind: input, shape index: {}]   ;;  %s3019_s7 = inlined_call_operand.vmem [shape: f32[1,96], index: 7, kind: input, shape index: {}]   ;;  %s3020_s8 = inlined_call_operand.vmem [shape: f32[1,32], index: 8, kind: input, shape index: {}]   ;;  %s3021_s9 = inlined_call_operand.vmem [shape: f32[8,2,64], index: 9, kind: output, shape index: {}]  }
   0x1   :  { %s30_s10 = sshll.u32 %s2469_s30, 4  ;;  %s31_s10 = int_to_ptr.vmem [resolvable:$true] %s30_s10 }
   0x2   :  { %s2455_s11 = scalar_lea.vmem %s31_s10, 256  ;;  %p2460_p1 = scmp.lt.s32.totalorder %s31_s10, %s31_s10 }
   0x3   :  { %p2456_p0 = scmp.ne.s32.totalorder %s31_s10, %s2455_s11  ;;  %p2461_p2 = scmp.lt.s32.totalorder %s2455_s11, %s2455_s11 }
   0x5   :  { %p2462_p3 = por %p2461_p2, %p2460_p1 }
   0x7   :  { %p2463_p4 = pnand %p2462_p3, %p2456_p0 }
   0x9   :  { %2466 = shalt.err (!%p2463_p4)
}
   0xa   :  { %s2470_s12 = smov 128   ;;  %s2471_s13 = smov 8  }
   0xb   :  { %36 = dma.hbm_to_vmem [thread:$0]  %s3017_s5, 256, %s31_s10, [#allocation7], %s2470_s12, %s2470_s12, %s2471_s13  }
   0xc   :  { %2467 = dma.done.wait [#allocation7], 256  }
   0xd   :  { %2468 = vsyncadd [#allocation7], 4294967040  ;;  %vm57_vm0 = vcmask 130048   ;;  %v143_v0 = vld [vmem:[#allocation6 + $0x8] sm:$0xff]  ;;  %v142_v1 = vld [vmem:[#allocation6] sm:$0xff]  ;;  %v2472_v7 = vmov 0.0  }
   0xe   :  { %v46_v2 = vld [vmem:[%s3012_s0] sm:$0xff]  ;;  %2152 = vmatprep.subr.mxu1 %v143_v0  ;;  %v49_v3 = vld [vmem:[%s3013_s1 + $0x8] sm:$0xff]  ;;  %v2546_v6 = vld [vmem:[%s3018_s6 + $0x18] sm:$0xff]  ;;  %vm2473_vm1 = vmmov 0   ;;  %s2474_s18 = smov 64   ;;  %vm139_vm2 = vcmask 785408  }
   0xf   :  { %2156 = vmatprep.mubr.msk.f32.mxu1 %vm57_vm0, %v46_v2  ;;  %2153 = vmatpush3.msra.mxu1 %v143_v0  ;;  %v47_v4 = vld [vmem:[%s3012_s0 + $0x8] sm:$0xff]  ;;  %v48_v5 = vld [vmem:[%s3013_s1] sm:$0xff]  ;;  %v2553_v8 = vld [vmem:[%s3018_s6 + $0x10] sm:$0xff]  ;;  %vm458_vm3 = vcmask 254976   ;;  %vm250_vm4 = vcmask 261120   ;;  %s2476_s23 = smov 32  }
  0x10   :  { %2145 = vmatprep.subr.mxu0 %v49_v3  ;;  %2154 = vmatprep.subr.mxu1 %v142_v1  ;;  %v2561_v9 = vld [vmem:[%s3014_s2 + $0x18] sm:$0xff]  ;;  %v2566_v10 = vld [vmem:[%s3018_s6 + $0x8] sm:$0xff]  ;;  %v2575_v11 = vld [vmem:[%s3014_s2 + $0x10] sm:$0xff]  ;;  %vm2005_vm5 = vcmask 517376  }
  0x11   :  { %2146 = vmatpush3.msra.mxu0 %v49_v3  ;;  %2155 = vmatpush3.msra.mxu1 %v142_v1  ;;  %v2580_v12 = vld [vmem:[%s3018_s6] sm:$0xff]  ;;  %v2589_v13 = vld [vmem:[%s3014_s2 + $0x8] sm:$0xff] }
  0x12   :  { %2147 = vmatprep.subr.mxu0 %v48_v5  ;;  %2157 = vmatmul.mubr.msk.f32.vlgmr.msra.gmra.mxu1 %vm57_vm0, %v47_v4  ;;  %v2599_v14 = vld [vmem:[%s3014_s2] sm:$0xff] }
  0x13   :  { %2170 = vmatprep.subr.mxu1 %v2472_v7  ;;  %2148 = vmatpush3.msra.mxu0 %v48_v5  ;;  %v2026_v15 = vld [vmem:[%s3020_s8] ss:$0 sm:$0xff] }
  0x14   :  { %2171 = vmatpush3.msra.mxu1 %v2546_v6  ;;  %2149 = vmatprep.mubr.msk.f32.mxu0 %vm57_vm0, %v46_v2  ;;  %v2025_v16 = vld [vmem:[%s3016_s4] ss:$0 sm:$0xff] }
  0x15   :  { %2172 = vmatprep.subr.mxu1 %v2472_v7  ;;  %2159 = vmatprep.subr.mxu0 %v2472_v7  ;;  %v2022_v17 = vld [vmem:[%s3019_s7] ss:$0 sm:$0xff] }
  0x16   :  { %2173 = vmatpush3.msra.mxu1 %v2553_v8  ;;  %2150 = vmatmul.mubr.msk.f32.vlgmr.msra.gmra.mxu0 %vm57_vm0, %v47_v4  ;;  %v2019_v24 = vld [vmem:[%s3015_s3] ss:$0 sm:$0xff]  ;;  %s2475_s3 = smov 96  }
  0x17   :  { %2174 = vmatprep.subr.mxu1 %v2472_v7  ;;  %2160 = vmatpush3.msra.mxu0 %v2561_v9 }
  0x18   :  { %2175 = vmatpush3.msra.mxu1 %v2566_v10  ;;  %2161 = vmatprep.subr.mxu0 %v2472_v7 }
  0x19   :  { %2176 = vmatprep.subr.mxu1 %v2472_v7  ;;  %2162 = vmatpush3.msra.mxu0 %v2575_v11 }
  0x1a   :  { %2177 = vmatpush3.msra.mxu1 %v2580_v12  ;;  %2178 = vmatprep.mubr.msk.f32.mxu1 %vm2473_vm1, %v2472_v7 }
  0x1b   :  { %2163 = vmatprep.subr.mxu0 %v2472_v7  ;;  %2179 = vmatmul.mubr.f32.vlgmr.msra.gmra.mxu1 %v2472_v7 }
  0x1c   :  { %2164 = vmatpush3.msra.mxu0 %v2589_v13  ;;  %2167 = vmatprep.mubr.msk.f32.mxu0 %vm2473_vm1, %v2472_v7 }
  0x1d   :  { %2165 = vmatprep.subr.mxu0 %v2472_v7  ;;  %431 = vrot.lane.b32.xlu0 %v2026_v15, %s2474_s18 }
  0x1e   :  { %2166 = vmatpush3.msra.mxu0 %v2599_v14  ;;  %2192 = vmatprep.subr.mxu1 %v2472_v7 }
  0x1f   :  { %2168 = vmatmul.mubr.f32.vlgmr.msra.gmra.mxu0 %v2472_v7  ;;  %2193 = vmatpush3.msra.mxu1 %v2546_v6 }
  0x20   :  { %2181 = vmatprep.subr.mxu0 %v2472_v7  ;;  %2194 = vmatprep.subr.mxu1 %v2472_v7 }
  0x21   :  { %2182 = vmatpush3.msra.mxu0 %v2561_v9  ;;  %401 = vrot.lane.b32.xlu0 %v2025_v16, %s2474_s18 }
  0x22   :  { %2195 = vmatpush3.msra.mxu1 %v2553_v8  ;;  %2183 = vmatprep.subr.mxu0 %v2472_v7 }
  0x23   :  { %2196 = vmatprep.subr.mxu1 %v2472_v7  ;;  %2200 = vmatprep.mubr.msk.f32.mxu1 %vm2473_vm1, %v2472_v7 }
  0x24   :  { %2197 = vmatpush3.msra.mxu1 %v2566_v10  ;;  %2184 = vmatpush3.msra.mxu0 %v2575_v11 }
  0x25   :  { %2198 = vmatprep.subr.mxu1 %v2472_v7  ;;  %2185 = vmatprep.subr.mxu0 %v2472_v7 }
  0x26   :  { %2199 = vmatpush3.msra.mxu1 %v2580_v12  ;;  %2186 = vmatpush3.msra.mxu0 %v2589_v13 }
  0x27   :  { %2189 = vmatprep.mubr.msk.f32.mxu0 %vm2473_vm1, %v2472_v7  ;;  %2187 = vmatprep.subr.mxu0 %v2472_v7 }
  0x28   :  { %2214 = vmatprep.subr.mxu1 %v2472_v7  ;;  %2188 = vmatpush3.msra.mxu0 %v2599_v14 }
  0x29   :  { %2203 = vmatprep.subr.mxu0 %v2472_v7 }
  0x8f   :  { %v2641_v22 = vpop.permute.xlu0 %431 }
  0x93   :  { %v2647_v30 = vpop.permute.xlu0 %401 }
  0xd2   :  { %v2158_v18 = vpop.f32.mrf.mxu1 }
  0xd3   :  { %v223_v19 = vadd.f32 %v2158_v18, %v2022_v17 }
  0xd4   :  { %v217_v20 = vpop.f32.mrf.mxu1 }
  0xd5   :  { %227 = vst.msk [vmem:[#allocation3 + $0x8] sm:$0xff] %vm139_vm2, %v223_v19  ;;  %v218_v21 = vadd.f32 %v2022_v17, %v217_v20 }
  0xd6   :  { %v2151_v23 = vpop.f32.mrf.mxu0 }
  0xd7   :  { %226 = vst.msk [vmem:[#allocation3] sm:$0xff] %vm139_vm2, %v218_v21  ;;  %v136_v25 = vadd.f32 %v2151_v23, %v2019_v24 }
  0xd8   :  { %v130_v26 = vpop.f32.mrf.mxu0 }
  0xd9   :  { %141 = vst.msk [vmem:[#allocation2 + $0x8] sm:$0xff] %vm139_vm2, %v136_v25  ;;  %v131_v27 = vadd.f32 %v2019_v24, %v130_v26 }
  0xdb   :  { %v390_v28 = vpop.f32.mrf.mxu1  ;;  %140 = vst.msk [vmem:[#allocation2] sm:$0xff] %vm139_vm2, %v131_v27 }
  0xdc   :  { %v434_v29 = vadd.f32 %v2641_v22, %v390_v28  ;;  %v249_v35 = vld [vmem:[#allocation3 + $0xe] sm:$0x3]  ;;  %v467_v21 = vld [vmem:[#allocation3 + $0xc] sm:$0x3] }
  0xdd   :  { %v2180_v31 = vpop.f32.mrf.mxu1  ;;  %v424_v37 = vadd.f32 %v390_v28, %v249_v35 }
  0xde   :  { %436 = vrot.lane.b32.xlu1 %v434_v29, %s2474_s18 }
  0xdf   :  { %v320_v32 = vpop.f32.mrf.mxu0  ;;  %v2028_v39 = vmul.f32 -1.442695, %v424_v37 }
  0xe0   :  { %v404_v33 = vadd.f32 %v2647_v30, %v320_v32 }
  0xe1   :  { %v2169_v34 = vpop.f32.mrf.mxu0  ;;  %2343 = vpow2.f32 %v2028_v39 }
  0xe2   :  { %406 = vrot.lane.b32.xlu1 %v404_v33, %s2474_s18  ;;  %v248_v36 = vld [vmem:[#allocation2] sm:$0x3]  ;;  %v466_v24 = vld [vmem:[#allocation2 + $0x2] sm:$0x3] }
  0xe3   :  { %v394_v38 = vadd.f32 %v320_v32, %v248_v36 }
  0xe5   :  { %v2027_v40 = vmul.f32 -1.442695, %v394_v38 }
  0xe7   :  { %2345 = vpow2.f32 %v2027_v40 }
  0xee   :  { %v2344_v41 = vpop.eup %2343 }
  0xef   :  { %v428_v43 = vadd.f32 1.0, %v2344_v41 }
  0xf1   :  { %2347 = vrcp.f32 %v428_v43 }
  0xf4   :  { %v2346_v42 = vpop.eup %2345 }
  0xf5   :  { %v398_v44 = vadd.f32 1.0, %v2346_v42 }
  0xf7   :  { %2349 = vrcp.f32 %v398_v44 }
  0xfe   :  { %v2348_v45 = vpop.eup %2347 }
  0xff   :  { %v446_v57 = vsub.f32 1.0, %v2348_v45  ;;  %v452_v59 = vmul.f32 0.0, %v2348_v45 }
 0x104   :  { %v2350_v48 = vpop.eup %2349 }
 0x105   :  { %v416_v62 = vsub.f32 1.0, %v2350_v48  ;;  %v422_v0 = vmul.f32 0.0, %v2350_v48 }
 0x150   :  { %v437_v46 = vpop.permute.xlu1 %436 }
 0x151   :  { %v439_v47 = vmul.f32 %v2348_v45, %v437_v46 }
 0x153   :  { %441 = vrot.lane.b32.xlu0 %v439_v47, %s2474_s18 }
 0x154   :  { %v407_v49 = vpop.permute.xlu1 %406 }
 0x155   :  { %v409_v50 = vmul.f32 %v2350_v48, %v407_v49 }
 0x157   :  { %411 = vrot.lane.b32.xlu1 %v409_v50, %s2474_s18 }
 0x1c5   :  { %v442_v51 = vpop.permute.xlu0 %441 }
 0x1c6   :  { %v444_v52 = vadd.f32 %v442_v51, %v249_v35 }
 0x1c8   :  { %2351 = vtanh.f32 %v444_v52 }
 0x1c9   :  { %v412_v53 = vpop.permute.xlu1 %411 }
 0x1ca   :  { %v414_v54 = vadd.f32 %v412_v53, %v248_v36 }
 0x1cc   :  { %2353 = vtanh.f32 %v414_v54 }
 0x1d5   :  { %v2352_v55 = vpop.eup %2351 }
 0x1d6   :  { %448 = vrot.lane.b32.xlu0 %v2352_v55, %s2475_s3 }
 0x1d9   :  { %v2354_v56 = vpop.eup %2353 }
 0x1da   :  { %418 = vrot.lane.b32.xlu1 %v2354_v56, %s2475_s3 }
 0x248   :  { %v449_v58 = vpop.permute.xlu0 %448 }
 0x249   :  { %v451_v60 = vmul.f32 %v449_v58, %v446_v57 }
 0x24b   :  { %v2656_v61 = vadd.f32 %v452_v59, %v451_v60 }
 0x24c   :  { %v419_v63 = vpop.permute.xlu1 %418 }
 0x24d   :  { %v421_v1 = vmul.f32 %v419_v63, %v416_v62  ;;  %461 = vrot.lane.b32.xlu0 %v2656_v61, %s2475_s3 }
 0x24f   :  { %v2660_v2 = vadd.f32 %v422_v0, %v421_v1  ;;  %v679_v0 = vld [vmem:[#allocation3 + $0xa] sm:$0x3] }
 0x251   :  { %455 = vrot.lane.b32.xlu1 %v2660_v2, %s2475_s3 }
 0x2bf   :  { %v462_v3 = vpop.permute.xlu0 %461 }
 0x2c0   :  { %465 = vst.msk [vmem:[#allocation5 + $0xe] sm:$0x3] %vm458_vm3, %v462_v3  ;;  %2201 = vmatmul.mubr.msk.f32.vlgmr.msra.gmra.mxu1 %vm250_vm4, %v462_v3 }
 0x2c1   :  { %2215 = vmatpush3.msra.mxu1 %v2546_v6  ;;  %2222 = vmatprep.mubr.msk.f32.mxu1 %vm2473_vm1, %v2472_v7 }
 0x2c2   :  { %2216 = vmatprep.subr.mxu1 %v2472_v7 }
 0x2c3   :  { %v456_v4 = vpop.permute.xlu1 %455  ;;  %2217 = vmatpush3.msra.mxu1 %v2553_v8 }
 0x2c4   :  { %459 = vst.msk [vmem:[#allocation4] sm:$0x3] %vm458_vm3, %v456_v4  ;;  %2190 = vmatmul.mubr.msk.f32.vlgmr.msra.gmra.mxu0 %vm250_vm4, %v456_v4  ;;  %2218 = vmatprep.subr.mxu1 %v2472_v7 }
 0x2c5   :  { %2204 = vmatpush3.msra.mxu0 %v2561_v9  ;;  %2219 = vmatpush3.msra.mxu1 %v2566_v10 }
 0x2c6   :  { %2205 = vmatprep.subr.mxu0 %v2472_v7  ;;  %2220 = vmatprep.subr.mxu1 %v2472_v7 }
 0x2c7   :  { %2221 = vmatpush3.msra.mxu1 %v2580_v12  ;;  %2206 = vmatpush3.msra.mxu0 %v2575_v11 }
 0x2c8   :  { %2207 = vmatprep.subr.mxu0 %v2472_v7  ;;  %2211 = vmatprep.mubr.msk.f32.mxu0 %vm2473_vm1, %v2472_v7 }
 0x2c9   :  { %2208 = vmatpush3.msra.mxu0 %v2589_v13  ;;  %2236 = vmatprep.subr.mxu1 %v2472_v7 }
 0x2ca   :  { %2209 = vmatprep.subr.mxu0 %v2472_v7 }
 0x2cb   :  { %2210 = vmatpush3.msra.mxu0 %v2599_v14  ;;  %v1949_v5 = vld [vmem:[#allocation4] sm:$0x3] }
 0x2cc   :  { %2225 = vmatprep.subr.mxu0 %v2472_v7  ;;  %1957 = vst.msk [vmem:[%s3021_s9] sm:$0x3] %vm458_vm3, %v1949_v5 }
 0x380   :  { %v608_v15 = vpop.f32.mrf.mxu1 }
 0x381   :  { %v646_v16 = vadd.f32 %v608_v15, %v2641_v22  ;;  %v639_v23 = vadd.f32 %v608_v15, %v467_v21 }
 0x382   :  { %v2202_v17 = vpop.f32.mrf.mxu1 }
 0x383   :  { %648 = vrot.lane.b32.xlu0 %v646_v16, %s2474_s18  ;;  %v2032_v25 = vmul.f32 -1.442695, %v639_v23 }
 0x384   :  { %v536_v18 = vpop.f32.mrf.mxu0 }
 0x385   :  { %v619_v19 = vadd.f32 %v536_v18, %v2647_v30  ;;  %v612_v26 = vadd.f32 %v536_v18, %v466_v24  ;;  %2355 = vpow2.f32 %v2032_v25 }
 0x386   :  { %v2191_v20 = vpop.f32.mrf.mxu0 }
 0x387   :  { %621 = vrot.lane.b32.xlu1 %v619_v19, %s2474_s18  ;;  %v2031_v27 = vmul.f32 -1.442695, %v612_v26 }
 0x389   :  { %2357 = vpow2.f32 %v2031_v27 }
 0x392   :  { %v2356_v28 = vpop.eup %2355 }
 0x393   :  { %v643_v29 = vadd.f32 1.0, %v2356_v28 }
 0x395   :  { %2359 = vrcp.f32 %v643_v29 }
 0x396   :  { %v2358_v31 = vpop.eup %2357 }
 0x397   :  { %v616_v32 = vadd.f32 1.0, %v2358_v31 }
 0x399   :  { %2361 = vrcp.f32 %v616_v32 }
 0x3a2   :  { %v2360_v33 = vpop.eup %2359 }
 0x3a3   :  { %v658_v45 = vsub.f32 1.0, %v2360_v33  ;;  %v664_v47 = vmul.f32 %v2360_v33, %v2656_v61 }
 0x3a6   :  { %v2362_v36 = vpop.eup %2361 }
 0x3a7   :  { %v631_v50 = vsub.f32 1.0, %v2362_v36  ;;  %v637_v52 = vmul.f32 %v2362_v36, %v2660_v2  ;;  %v678_v2 = vld [vmem:[#allocation2 + $0x4] sm:$0x3] }
 0x3f5   :  { %v649_v34 = vpop.permute.xlu0 %648 }
 0x3f6   :  { %v651_v35 = vmul.f32 %v2360_v33, %v649_v34 }
 0x3f8   :  { %653 = vrot.lane.b32.xlu0 %v651_v35, %s2474_s18 }
 0x3f9   :  { %v622_v37 = vpop.permute.xlu1 %621 }
 0x3fa   :  { %v624_v38 = vmul.f32 %v2362_v36, %v622_v37 }
 0x3fc   :  { %626 = vrot.lane.b32.xlu1 %v624_v38, %s2474_s18 }
 0x46a   :  { %v654_v39 = vpop.permute.xlu0 %653 }
 0x46b   :  { %v656_v40 = vadd.f32 %v654_v39, %v467_v21 }
 0x46d   :  { %2363 = vtanh.f32 %v656_v40 }
 0x46e   :  { %v627_v41 = vpop.permute.xlu1 %626 }
 0x46f   :  { %v629_v42 = vadd.f32 %v627_v41, %v466_v24 }
 0x471   :  { %2365 = vtanh.f32 %v629_v42 }
 0x47a   :  { %v2364_v43 = vpop.eup %2363 }
 0x47b   :  { %660 = vrot.lane.b32.xlu0 %v2364_v43, %s2475_s3 }
 0x47e   :  { %v2366_v44 = vpop.eup %2365 }
 0x47f   :  { %633 = vrot.lane.b32.xlu1 %v2366_v44, %s2475_s3 }
 0x4ed   :  { %v661_v46 = vpop.permute.xlu0 %660 }
 0x4ee   :  { %v663_v48 = vmul.f32 %v661_v46, %v658_v45 }
 0x4f0   :  { %v2701_v49 = vadd.f32 %v664_v47, %v663_v48 }
 0x4f1   :  { %v634_v51 = vpop.permute.xlu1 %633 }
 0x4f2   :  { %v636_v53 = vmul.f32 %v634_v51, %v631_v50  ;;  %673 = vrot.lane.b32.xlu0 %v2701_v49, %s2475_s3 }
 0x4f4   :  { %v2706_v54 = vadd.f32 %v637_v52, %v636_v53  ;;  %v891_v52 = vld [vmem:[#allocation3 + $0x8] sm:$0x3] }
 0x4f6   :  { %667 = vrot.lane.b32.xlu1 %v2706_v54, %s2475_s3 }
 0x564   :  { %v674_v55 = vpop.permute.xlu0 %673 }
 0x565   :  { %677 = vst.msk [vmem:[#allocation5 + $0xc] sm:$0x3] %vm458_vm3, %v674_v55  ;;  %2223 = vmatmul.mubr.msk.f32.vlgmr.msra.gmra.mxu1 %vm250_vm4, %v674_v55 }
 0x566   :  { %2237 = vmatpush3.msra.mxu1 %v2546_v6  ;;  %2244 = vmatprep.mubr.msk.f32.mxu1 %vm2473_vm1, %v2472_v7 }
 0x567   :  { %2238 = vmatprep.subr.mxu1 %v2472_v7 }
 0x568   :  { %v668_v56 = vpop.permute.xlu1 %667  ;;  %2239 = vmatpush3.msra.mxu1 %v2553_v8 }
 0x569   :  { %671 = vst.msk [vmem:[#allocation4 + $0x2] sm:$0x3] %vm458_vm3, %v668_v56  ;;  %2212 = vmatmul.mubr.msk.f32.vlgmr.msra.gmra.mxu0 %vm250_vm4, %v668_v56  ;;  %2240 = vmatprep.subr.mxu1 %v2472_v7 }
 0x56a   :  { %2226 = vmatpush3.msra.mxu0 %v2561_v9  ;;  %2241 = vmatpush3.msra.mxu1 %v2566_v10 }
 0x56b   :  { %2227 = vmatprep.subr.mxu0 %v2472_v7  ;;  %2242 = vmatprep.subr.mxu1 %v2472_v7 }
 0x56c   :  { %2243 = vmatpush3.msra.mxu1 %v2580_v12  ;;  %2228 = vmatpush3.msra.mxu0 %v2575_v11 }
 0x56d   :  { %2229 = vmatprep.subr.mxu0 %v2472_v7  ;;  %2233 = vmatprep.mubr.msk.f32.mxu0 %vm2473_vm1, %v2472_v7 }
 0x56e   :  { %2230 = vmatpush3.msra.mxu0 %v2589_v13  ;;  %2258 = vmatprep.subr.mxu1 %v2472_v7 }
 0x56f   :  { %2231 = vmatprep.subr.mxu0 %v2472_v7 }
 0x570   :  { %2232 = vmatpush3.msra.mxu0 %v2599_v14  ;;  %v1950_v57 = vld [vmem:[#allocation4 + $0x2] sm:$0x3] }
 0x571   :  { %2247 = vmatprep.subr.mxu0 %v2472_v7  ;;  %1958 = vst.msk [vmem:[%s3021_s9 + $0x2] sm:$0x3] %vm458_vm3, %v1950_v57 }
 0x625   :  { %v820_v58 = vpop.f32.mrf.mxu1 }
 0x626   :  { %v858_v59 = vadd.f32 %v820_v58, %v2641_v22  ;;  %v851_v1 = vadd.f32 %v820_v58, %v679_v0 }
 0x627   :  { %v2224_v60 = vpop.f32.mrf.mxu1 }
 0x628   :  { %860 = vrot.lane.b32.xlu0 %v858_v59, %s2474_s18  ;;  %v2036_v3 = vmul.f32 -1.442695, %v851_v1 }
 0x629   :  { %v748_v61 = vpop.f32.mrf.mxu0 }
 0x62a   :  { %v831_v62 = vadd.f32 %v748_v61, %v2647_v30  ;;  %v824_v4 = vadd.f32 %v748_v61, %v678_v2  ;;  %2367 = vpow2.f32 %v2036_v3 }
 0x62b   :  { %v2213_v63 = vpop.f32.mrf.mxu0 }
 0x62c   :  { %833 = vrot.lane.b32.xlu1 %v831_v62, %s2474_s18  ;;  %v2035_v5 = vmul.f32 -1.442695, %v824_v4 }
 0x62e   :  { %2369 = vpow2.f32 %v2035_v5 }
 0x637   :  { %v2368_v15 = vpop.eup %2367 }
 0x638   :  { %v855_v16 = vadd.f32 1.0, %v2368_v15 }
 0x63a   :  { %2371 = vrcp.f32 %v855_v16 }
 0x63b   :  { %v2370_v17 = vpop.eup %2369 }
 0x63c   :  { %v828_v18 = vadd.f32 1.0, %v2370_v17 }
 0x63e   :  { %2373 = vrcp.f32 %v828_v18 }
 0x647   :  { %v2372_v19 = vpop.eup %2371 }
 0x648   :  { %v870_v33 = vsub.f32 1.0, %v2372_v19  ;;  %v876_v35 = vmul.f32 %v2372_v19, %v2701_v49 }
 0x64b   :  { %v2374_v23 = vpop.eup %2373 }
 0x64c   :  { %v843_v38 = vsub.f32 1.0, %v2374_v23  ;;  %v849_v40 = vmul.f32 %v2374_v23, %v2706_v54  ;;  %v890_v54 = vld [vmem:[#allocation2 + $0x6] sm:$0x3] }
 0x69a   :  { %v861_v20 = vpop.permute.xlu0 %860 }
 0x69b   :  { %v863_v21 = vmul.f32 %v2372_v19, %v861_v20 }
 0x69d   :  { %865 = vrot.lane.b32.xlu0 %v863_v21, %s2474_s18 }
 0x69e   :  { %v834_v24 = vpop.permute.xlu1 %833 }
 0x69f   :  { %v836_v25 = vmul.f32 %v2374_v23, %v834_v24 }
 0x6a1   :  { %838 = vrot.lane.b32.xlu1 %v836_v25, %s2474_s18 }
 0x70f   :  { %v866_v26 = vpop.permute.xlu0 %865 }
 0x710   :  { %v868_v27 = vadd.f32 %v866_v26, %v679_v0 }
 0x712   :  { %2375 = vtanh.f32 %v868_v27 }
 0x713   :  { %v839_v28 = vpop.permute.xlu1 %838 }
 0x714   :  { %v841_v29 = vadd.f32 %v839_v28, %v678_v2 }
 0x716   :  { %2377 = vtanh.f32 %v841_v29 }
 0x71f   :  { %v2376_v31 = vpop.eup %2375 }
 0x720   :  { %872 = vrot.lane.b32.xlu0 %v2376_v31, %s2475_s3 }
 0x723   :  { %v2378_v32 = vpop.eup %2377 }
 0x724   :  { %845 = vrot.lane.b32.xlu1 %v2378_v32, %s2475_s3 }
 0x792   :  { %v873_v34 = vpop.permute.xlu0 %872 }
 0x793   :  { %v875_v36 = vmul.f32 %v873_v34, %v870_v33 }
 0x795   :  { %v2747_v37 = vadd.f32 %v876_v35, %v875_v36 }
 0x796   :  { %v846_v39 = vpop.permute.xlu1 %845 }
 0x797   :  { %v848_v41 = vmul.f32 %v846_v39, %v843_v38  ;;  %885 = vrot.lane.b32.xlu0 %v2747_v37, %s2475_s3 }
 0x799   :  { %v2752_v42 = vadd.f32 %v849_v40, %v848_v41  ;;  %v1103_v40 = vld [vmem:[#allocation3 + $0x6] sm:$0x3] }
 0x79b   :  { %879 = vrot.lane.b32.xlu1 %v2752_v42, %s2475_s3 }
 0x809   :  { %v886_v43 = vpop.permute.xlu0 %885 }
 0x80a   :  { %889 = vst.msk [vmem:[#allocation5 + $0xa] sm:$0x3] %vm458_vm3, %v886_v43  ;;  %2245 = vmatmul.mubr.msk.f32.vlgmr.msra.gmra.mxu1 %vm250_vm4, %v886_v43 }
 0x80b   :  { %2259 = vmatpush3.msra.mxu1 %v2546_v6  ;;  %2266 = vmatprep.mubr.msk.f32.mxu1 %vm2473_vm1, %v2472_v7 }
 0x80c   :  { %2260 = vmatprep.subr.mxu1 %v2472_v7 }
 0x80d   :  { %v880_v44 = vpop.permute.xlu1 %879  ;;  %2261 = vmatpush3.msra.mxu1 %v2553_v8 }
 0x80e   :  { %883 = vst.msk [vmem:[#allocation4 + $0x4] sm:$0x3] %vm458_vm3, %v880_v44  ;;  %2234 = vmatmul.mubr.msk.f32.vlgmr.msra.gmra.mxu0 %vm250_vm4, %v880_v44  ;;  %2262 = vmatprep.subr.mxu1 %v2472_v7 }
 0x80f   :  { %2248 = vmatpush3.msra.mxu0 %v2561_v9  ;;  %2263 = vmatpush3.msra.mxu1 %v2566_v10 }
 0x810   :  { %2249 = vmatprep.subr.mxu0 %v2472_v7  ;;  %2264 = vmatprep.subr.mxu1 %v2472_v7 }
 0x811   :  { %2265 = vmatpush3.msra.mxu1 %v2580_v12  ;;  %2250 = vmatpush3.msra.mxu0 %v2575_v11 }
 0x812   :  { %2251 = vmatprep.subr.mxu0 %v2472_v7  ;;  %2255 = vmatprep.mubr.msk.f32.mxu0 %vm2473_vm1, %v2472_v7 }
 0x813   :  { %2252 = vmatpush3.msra.mxu0 %v2589_v13  ;;  %2280 = vmatprep.subr.mxu1 %v2472_v7 }
 0x814   :  { %2253 = vmatprep.subr.mxu0 %v2472_v7 }
 0x815   :  { %2254 = vmatpush3.msra.mxu0 %v2599_v14  ;;  %v1951_v45 = vld [vmem:[#allocation4 + $0x4] sm:$0x3] }
 0x816   :  { %2269 = vmatprep.subr.mxu0 %v2472_v7  ;;  %1959 = vst.msk [vmem:[%s3021_s9 + $0x4] sm:$0x3] %vm458_vm3, %v1951_v45 }
 0x8ca   :  { %v1032_v46 = vpop.f32.mrf.mxu1 }
 0x8cb   :  { %v1070_v47 = vadd.f32 %v1032_v46, %v2641_v22  ;;  %v1063_v53 = vadd.f32 %v1032_v46, %v891_v52 }
 0x8cc   :  { %v2246_v48 = vpop.f32.mrf.mxu1 }
 0x8cd   :  { %1072 = vrot.lane.b32.xlu0 %v1070_v47, %s2474_s18  ;;  %v2040_v55 = vmul.f32 -1.442695, %v1063_v53 }
 0x8ce   :  { %v960_v49 = vpop.f32.mrf.mxu0 }
 0x8cf   :  { %v1043_v50 = vadd.f32 %v960_v49, %v2647_v30  ;;  %v1036_v56 = vadd.f32 %v960_v49, %v890_v54  ;;  %2379 = vpow2.f32 %v2040_v55 }
 0x8d0   :  { %v2235_v51 = vpop.f32.mrf.mxu0 }
 0x8d1   :  { %1045 = vrot.lane.b32.xlu1 %v1043_v50, %s2474_s18  ;;  %v2039_v57 = vmul.f32 -1.442695, %v1036_v56 }
 0x8d3   :  { %2381 = vpow2.f32 %v2039_v57 }
 0x8dc   :  { %v2380_v58 = vpop.eup %2379 }
 0x8dd   :  { %v1067_v59 = vadd.f32 1.0, %v2380_v58 }
 0x8df   :  { %2383 = vrcp.f32 %v1067_v59 }
 0x8e0   :  { %v2382_v60 = vpop.eup %2381 }
 0x8e1   :  { %v1040_v61 = vadd.f32 1.0, %v2382_v60 }
 0x8e3   :  { %2385 = vrcp.f32 %v1040_v61 }
 0x8ec   :  { %v2384_v62 = vpop.eup %2383 }
 0x8ed   :  { %v1082_v19 = vsub.f32 1.0, %v2384_v62  ;;  %v1088_v21 = vmul.f32 %v2384_v62, %v2747_v37 }
 0x8f0   :  { %v2386_v1 = vpop.eup %2385 }
 0x8f1   :  { %v1055_v25 = vsub.f32 1.0, %v2386_v1  ;;  %v1061_v27 = vmul.f32 %v2386_v1, %v2752_v42  ;;  %v1102_v42 = vld [vmem:[#allocation2 + $0x8] sm:$0x3] }
 0x93f   :  { %v1073_v63 = vpop.permute.xlu0 %1072 }
 0x940   :  { %v1075_v0 = vmul.f32 %v2384_v62, %v1073_v63 }
 0x942   :  { %1077 = vrot.lane.b32.xlu0 %v1075_v0, %s2474_s18 }
 0x943   :  { %v1046_v2 = vpop.permute.xlu1 %1045 }
 0x944   :  { %v1048_v3 = vmul.f32 %v2386_v1, %v1046_v2 }
 0x946   :  { %1050 = vrot.lane.b32.xlu1 %v1048_v3, %s2474_s18 }
 0x9b4   :  { %v1078_v4 = vpop.permute.xlu0 %1077 }
 0x9b5   :  { %v1080_v5 = vadd.f32 %v1078_v4, %v891_v52 }
 0x9b7   :  { %2387 = vtanh.f32 %v1080_v5 }
 0x9b8   :  { %v1051_v15 = vpop.permute.xlu1 %1050 }
 0x9b9   :  { %v1053_v16 = vadd.f32 %v1051_v15, %v890_v54 }
 0x9bb   :  { %2389 = vtanh.f32 %v1053_v16 }
 0x9c4   :  { %v2388_v17 = vpop.eup %2387 }
 0x9c5   :  { %1084 = vrot.lane.b32.xlu0 %v2388_v17, %s2475_s3 }
 0x9c8   :  { %v2390_v18 = vpop.eup %2389 }
 0x9c9   :  { %1057 = vrot.lane.b32.xlu1 %v2390_v18, %s2475_s3 }
 0xa37   :  { %v1085_v20 = vpop.permute.xlu0 %1084 }
 0xa38   :  { %v1087_v23 = vmul.f32 %v1085_v20, %v1082_v19  ;;  %v1314_v20 = vld [vmem:[#allocation2 + $0xa] sm:$0x3] }
 0xa3a   :  { %v2793_v24 = vadd.f32 %v1088_v21, %v1087_v23 }
 0xa3b   :  { %v1058_v26 = vpop.permute.xlu1 %1057 }
 0xa3c   :  { %v1060_v28 = vmul.f32 %v1058_v26, %v1055_v25  ;;  %1097 = vrot.lane.b32.xlu0 %v2793_v24, %s2475_s3 }
 0xa3e   :  { %v2798_v29 = vadd.f32 %v1061_v27, %v1060_v28 }
 0xa40   :  { %1091 = vrot.lane.b32.xlu1 %v2798_v29, %s2475_s3 }
 0xaae   :  { %v1098_v31 = vpop.permute.xlu0 %1097 }
 0xaaf   :  { %1101 = vst.msk [vmem:[#allocation5 + $0x8] sm:$0x3] %vm458_vm3, %v1098_v31  ;;  %2267 = vmatmul.mubr.msk.f32.vlgmr.msra.gmra.mxu1 %vm250_vm4, %v1098_v31 }
 0xab0   :  { %2281 = vmatpush3.msra.mxu1 %v2546_v6  ;;  %2288 = vmatprep.mubr.msk.f32.mxu1 %vm2473_vm1, %v2472_v7 }
 0xab1   :  { %2282 = vmatprep.subr.mxu1 %v2472_v7 }
 0xab2   :  { %v1092_v32 = vpop.permute.xlu1 %1091  ;;  %2283 = vmatpush3.msra.mxu1 %v2553_v8 }
 0xab3   :  { %1095 = vst.msk [vmem:[#allocation4 + $0x6] sm:$0x3] %vm458_vm3, %v1092_v32  ;;  %2256 = vmatmul.mubr.msk.f32.vlgmr.msra.gmra.mxu0 %vm250_vm4, %v1092_v32  ;;  %2284 = vmatprep.subr.mxu1 %v2472_v7 }
 0xab4   :  { %2270 = vmatpush3.msra.mxu0 %v2561_v9  ;;  %2285 = vmatpush3.msra.mxu1 %v2566_v10 }
 0xab5   :  { %2271 = vmatprep.subr.mxu0 %v2472_v7  ;;  %2286 = vmatprep.subr.mxu1 %v2472_v7 }
 0xab6   :  { %2287 = vmatpush3.msra.mxu1 %v2580_v12  ;;  %2272 = vmatpush3.msra.mxu0 %v2575_v11 }
 0xab7   :  { %2273 = vmatprep.subr.mxu0 %v2472_v7  ;;  %2277 = vmatprep.mubr.msk.f32.mxu0 %vm2473_vm1, %v2472_v7 }
 0xab8   :  { %2274 = vmatpush3.msra.mxu0 %v2589_v13  ;;  %2302 = vmatprep.subr.mxu1 %v2472_v7 }
 0xab9   :  { %2275 = vmatprep.subr.mxu0 %v2472_v7 }
 0xaba   :  { %2276 = vmatpush3.msra.mxu0 %v2599_v14  ;;  %v1952_v33 = vld [vmem:[#allocation4 + $0x6] sm:$0x3] }
 0xabb   :  { %2291 = vmatprep.subr.mxu0 %v2472_v7  ;;  %1960 = vst.msk [vmem:[%s3021_s9 + $0x6] sm:$0x3] %vm458_vm3, %v1952_v33 }
 0xb6f   :  { %v1244_v34 = vpop.f32.mrf.mxu1 }
 0xb70   :  { %v1282_v35 = vadd.f32 %v1244_v34, %v2641_v22  ;;  %v1275_v41 = vadd.f32 %v1244_v34, %v1103_v40 }
 0xb71   :  { %v2268_v36 = vpop.f32.mrf.mxu1 }
 0xb72   :  { %1284 = vrot.lane.b32.xlu0 %v1282_v35, %s2474_s18  ;;  %v2044_v43 = vmul.f32 -1.442695, %v1275_v41 }
 0xb73   :  { %v1172_v37 = vpop.f32.mrf.mxu0 }
 0xb74   :  { %v1255_v38 = vadd.f32 %v1172_v37, %v2647_v30  ;;  %v1248_v44 = vadd.f32 %v1172_v37, %v1102_v42  ;;  %2391 = vpow2.f32 %v2044_v43 }
 0xb75   :  { %v2257_v39 = vpop.f32.mrf.mxu0 }
 0xb76   :  { %1257 = vrot.lane.b32.xlu1 %v1255_v38, %s2474_s18  ;;  %v2043_v45 = vmul.f32 -1.442695, %v1248_v44 }
 0xb78   :  { %2393 = vpow2.f32 %v2043_v45 }
 0xb81   :  { %v2392_v46 = vpop.eup %2391 }
 0xb82   :  { %v1279_v47 = vadd.f32 1.0, %v2392_v46 }
 0xb84   :  { %2395 = vrcp.f32 %v1279_v47 }
 0xb85   :  { %v2394_v48 = vpop.eup %2393 }
 0xb86   :  { %v1252_v49 = vadd.f32 1.0, %v2394_v48 }
 0xb88   :  { %2397 = vrcp.f32 %v1252_v49 }
 0xb91   :  { %v2396_v50 = vpop.eup %2395 }
 0xb92   :  { %v1294_v62 = vsub.f32 1.0, %v2396_v50  ;;  %v1300_v0 = vmul.f32 %v2396_v50, %v2793_v24 }
 0xb95   :  { %v2398_v53 = vpop.eup %2397 }
 0xb96   :  { %v1267_v3 = vsub.f32 1.0, %v2398_v53  ;;  %v1273_v5 = vmul.f32 %v2398_v53, %v2798_v29 }
 0xbe4   :  { %v1285_v51 = vpop.permute.xlu0 %1284 }
 0xbe5   :  { %v1287_v52 = vmul.f32 %v2396_v50, %v1285_v51 }
 0xbe7   :  { %1289 = vrot.lane.b32.xlu0 %v1287_v52, %s2474_s18 }
 0xbe8   :  { %v1258_v54 = vpop.permute.xlu1 %1257 }
 0xbe9   :  { %v1260_v55 = vmul.f32 %v2398_v53, %v1258_v54  ;;  %v2439_v53 = vld [vmem:[%s3018_s6 + $0x18] sm:$0xff] }
 0xbeb   :  { %1262 = vrot.lane.b32.xlu1 %v1260_v55, %s2474_s18  ;;  %v2440_v55 = vld [vmem:[%s3018_s6 + $0x10] sm:$0xff] }
 0xc59   :  { %v1290_v56 = vpop.permute.xlu0 %1289 }
 0xc5a   :  { %v1292_v57 = vadd.f32 %v1290_v56, %v1103_v40  ;;  %v2441_v56 = vld [vmem:[%s3014_s2 + $0x18] sm:$0xff] }
 0xc5c   :  { %2399 = vtanh.f32 %v1292_v57  ;;  %v2442_v57 = vld [vmem:[%s3018_s6 + $0x8] sm:$0xff] }
 0xc5d   :  { %v1263_v58 = vpop.permute.xlu1 %1262 }
 0xc5e   :  { %v1265_v59 = vadd.f32 %v1263_v58, %v1102_v42  ;;  %v2443_v58 = vld [vmem:[%s3018_s6] sm:$0xff] }
 0xc60   :  { %2401 = vtanh.f32 %v1265_v59  ;;  %v2444_v59 = vld [vmem:[%s3014_s2 + $0x10] sm:$0xff] }
 0xc69   :  { %v2400_v60 = vpop.eup %2399 }
 0xc6a   :  { %1296 = vrot.lane.b32.xlu0 %v2400_v60, %s2475_s3  ;;  %v2445_v60 = vld [vmem:[%s3014_s2 + $0x8] sm:$0xff] }
 0xc6d   :  { %v2402_v61 = vpop.eup %2401 }
 0xc6e   :  { %1269 = vrot.lane.b32.xlu1 %v2402_v61, %s2475_s3  ;;  %v2446_v61 = vld [vmem:[%s3014_s2] sm:$0xff] }
 0xcdc   :  { %v1297_v63 = vpop.permute.xlu0 %1296 }
 0xcdd   :  { %v1299_v1 = vmul.f32 %v1297_v63, %v1294_v62 }
 0xcdf   :  { %v2839_v2 = vadd.f32 %v1300_v0, %v1299_v1 }
 0xce0   :  { %v1270_v4 = vpop.permute.xlu1 %1269 }
 0xce1   :  { %v1272_v15 = vmul.f32 %v1270_v4, %v1267_v3  ;;  %1309 = vrot.lane.b32.xlu0 %v2839_v2, %s2475_s3  ;;  %v1527_v4 = vld [vmem:[#allocation3 + $0x2] sm:$0x3] }
 0xce3   :  { %v2844_v16 = vadd.f32 %v1273_v5, %v1272_v15  ;;  %v1526_v15 = vld [vmem:[#allocation2 + $0xc] sm:$0x3] }
 0xce5   :  { %1303 = vrot.lane.b32.xlu1 %v2844_v16, %s2475_s3 }
 0xd53   :  { %v1310_v17 = vpop.permute.xlu0 %1309 }
 0xd54   :  { %1313 = vst.msk [vmem:[#allocation5 + $0x6] sm:$0x3] %vm458_vm3, %v1310_v17  ;;  %2289 = vmatmul.mubr.msk.f32.vlgmr.msra.gmra.mxu1 %vm250_vm4, %v1310_v17 }
 0xd55   :  { %2303 = vmatpush3.msra.mxu1 %v2546_v6  ;;  %2310 = vmatprep.mubr.msk.f32.mxu1 %vm2473_vm1, %v2472_v7 }
 0xd56   :  { %2304 = vmatprep.subr.mxu1 %v2472_v7 }
 0xd57   :  { %v1304_v18 = vpop.permute.xlu1 %1303  ;;  %2305 = vmatpush3.msra.mxu1 %v2553_v8 }
 0xd58   :  { %1307 = vst.msk [vmem:[#allocation4 + $0x8] sm:$0x3] %vm458_vm3, %v1304_v18  ;;  %2278 = vmatmul.mubr.msk.f32.vlgmr.msra.gmra.mxu0 %vm250_vm4, %v1304_v18  ;;  %2306 = vmatprep.subr.mxu1 %v2472_v7 }
 0xd59   :  { %2292 = vmatpush3.msra.mxu0 %v2561_v9  ;;  %2307 = vmatpush3.msra.mxu1 %v2566_v10 }
 0xd5a   :  { %2293 = vmatprep.subr.mxu0 %v2472_v7  ;;  %2308 = vmatprep.subr.mxu1 %v2472_v7 }
 0xd5b   :  { %2309 = vmatpush3.msra.mxu1 %v2580_v12  ;;  %2294 = vmatpush3.msra.mxu0 %v2575_v11 }
 0xd5c   :  { %2295 = vmatprep.subr.mxu0 %v2472_v7  ;;  %2299 = vmatprep.mubr.msk.f32.mxu0 %vm2473_vm1, %v2472_v7 }
 0xd5d   :  { %2296 = vmatpush3.msra.mxu0 %v2589_v13  ;;  %2324 = vmatprep.subr.mxu1 %v2472_v7 }
 0xd5e   :  { %2297 = vmatprep.subr.mxu0 %v2472_v7 }
 0xd5f   :  { %2298 = vmatpush3.msra.mxu0 %v2599_v14  ;;  %v1953_v6 = vld [vmem:[#allocation4 + $0x8] sm:$0x3]  ;;  %v1315_v14 = vld [vmem:[#allocation3 + $0x4] sm:$0x3] }
 0xd60   :  { %2313 = vmatprep.subr.mxu0 %v2472_v7  ;;  %1961 = vst.msk [vmem:[%s3021_s9 + $0x8] sm:$0x3] %vm458_vm3, %v1953_v6 }
 0xe14   :  { %v1456_v8 = vpop.f32.mrf.mxu1 }
 0xe15   :  { %v1494_v9 = vadd.f32 %v1456_v8, %v2641_v22  ;;  %v1487_v19 = vadd.f32 %v1456_v8, %v1315_v14 }
 0xe16   :  { %v2290_v10 = vpop.f32.mrf.mxu1 }
 0xe17   :  { %1496 = vrot.lane.b32.xlu0 %v1494_v9, %s2474_s18  ;;  %v2048_v21 = vmul.f32 -1.442695, %v1487_v19 }
 0xe18   :  { %v1384_v11 = vpop.f32.mrf.mxu0 }
 0xe19   :  { %v1467_v12 = vadd.f32 %v1384_v11, %v2647_v30  ;;  %v1460_v23 = vadd.f32 %v1384_v11, %v1314_v20  ;;  %2403 = vpow2.f32 %v2048_v21 }
 0xe1a   :  { %v2279_v13 = vpop.f32.mrf.mxu0 }
 0xe1b   :  { %1469 = vrot.lane.b32.xlu1 %v1467_v12, %s2474_s18  ;;  %v2047_v24 = vmul.f32 -1.442695, %v1460_v23 }
 0xe1d   :  { %2405 = vpow2.f32 %v2047_v24 }
 0xe26   :  { %v2404_v25 = vpop.eup %2403 }
 0xe27   :  { %v1491_v26 = vadd.f32 1.0, %v2404_v25 }
 0xe29   :  { %2407 = vrcp.f32 %v1491_v26 }
 0xe2a   :  { %v2406_v27 = vpop.eup %2405 }
 0xe2b   :  { %v1464_v28 = vadd.f32 1.0, %v2406_v27 }
 0xe2d   :  { %2409 = vrcp.f32 %v1464_v28 }
 0xe36   :  { %v2408_v29 = vpop.eup %2407 }
 0xe37   :  { %v1506_v42 = vsub.f32 1.0, %v2408_v29  ;;  %v1512_v44 = vmul.f32 %v2408_v29, %v2839_v2 }
 0xe3a   :  { %v2410_v33 = vpop.eup %2409 }
 0xe3b   :  { %v1479_v47 = vsub.f32 1.0, %v2410_v33  ;;  %v1485_v49 = vmul.f32 %v2410_v33, %v2844_v16 }
 0xe89   :  { %v1497_v31 = vpop.permute.xlu0 %1496 }
 0xe8a   :  { %v1499_v32 = vmul.f32 %v2408_v29, %v1497_v31 }
 0xe8c   :  { %1501 = vrot.lane.b32.xlu0 %v1499_v32, %s2474_s18 }
 0xe8d   :  { %v1470_v34 = vpop.permute.xlu1 %1469 }
 0xe8e   :  { %v1472_v35 = vmul.f32 %v2410_v33, %v1470_v34 }
 0xe90   :  { %1474 = vrot.lane.b32.xlu1 %v1472_v35, %s2474_s18 }
 0xefe   :  { %v1502_v36 = vpop.permute.xlu0 %1501 }
 0xeff   :  { %v1504_v37 = vadd.f32 %v1502_v36, %v1315_v14 }
 0xf01   :  { %2411 = vtanh.f32 %v1504_v37 }
 0xf02   :  { %v1475_v38 = vpop.permute.xlu1 %1474 }
 0xf03   :  { %v1477_v39 = vadd.f32 %v1475_v38, %v1314_v20 }
 0xf05   :  { %2413 = vtanh.f32 %v1477_v39 }
 0xf0e   :  { %v2412_v40 = vpop.eup %2411 }
 0xf0f   :  { %1508 = vrot.lane.b32.xlu0 %v2412_v40, %s2475_s3 }
 0xf12   :  { %v2414_v41 = vpop.eup %2413 }
 0xf13   :  { %1481 = vrot.lane.b32.xlu1 %v2414_v41, %s2475_s3 }
 0xf81   :  { %v1509_v43 = vpop.permute.xlu0 %1508 }
 0xf82   :  { %v1511_v45 = vmul.f32 %v1509_v43, %v1506_v42 }
 0xf84   :  { %v2885_v46 = vadd.f32 %v1512_v44, %v1511_v45 }
 0xf85   :  { %v1482_v48 = vpop.permute.xlu1 %1481 }
 0xf86   :  { %v1484_v50 = vmul.f32 %v1482_v48, %v1479_v47  ;;  %1521 = vrot.lane.b32.xlu0 %v2885_v46, %s2475_s3  ;;  %v1739_v48 = vld [vmem:[#allocation3] sm:$0x3] }
 0xf88   :  { %v2890_v51 = vadd.f32 %v1485_v49, %v1484_v50  ;;  %v1738_v50 = vld [vmem:[#allocation2 + $0xe] sm:$0x3] }
 0xf8a   :  { %1515 = vrot.lane.b32.xlu1 %v2890_v51, %s2475_s3 }
 0xff8   :  { %v1522_v52 = vpop.permute.xlu0 %1521 }
 0xff9   :  { %1525 = vst.msk [vmem:[#allocation5 + $0x4] sm:$0x3] %vm458_vm3, %v1522_v52  ;;  %2311 = vmatmul.mubr.msk.f32.vlgmr.msra.gmra.mxu1 %vm250_vm4, %v1522_v52 }
 0xffa   :  { %2325 = vmatpush3.msra.mxu1 %v2439_v53  ;;  %2332 = vmatprep.mubr.msk.f32.mxu1 %vm2473_vm1, %v2472_v7 }
 0xffb   :  { %2326 = vmatprep.subr.mxu1 %v2472_v7 }
 0xffc   :  { %v1516_v54 = vpop.permute.xlu1 %1515  ;;  %2327 = vmatpush3.msra.mxu1 %v2440_v55 }
 0xffd   :  { %1519 = vst.msk [vmem:[#allocation4 + $0xa] sm:$0x3] %vm458_vm3, %v1516_v54  ;;  %2300 = vmatmul.mubr.msk.f32.vlgmr.msra.gmra.mxu0 %vm250_vm4, %v1516_v54  ;;  %2328 = vmatprep.subr.mxu1 %v2472_v7 }
 0xffe   :  { %2314 = vmatpush3.msra.mxu0 %v2441_v56  ;;  %2329 = vmatpush3.msra.mxu1 %v2442_v57 }
 0xfff   :  { %2315 = vmatprep.subr.mxu0 %v2472_v7  ;;  %2330 = vmatprep.subr.mxu1 %v2472_v7 }
0x1000   :  { %2331 = vmatpush3.msra.mxu1 %v2443_v58  ;;  %2316 = vmatpush3.msra.mxu0 %v2444_v59 }
0x1001   :  { %2317 = vmatprep.subr.mxu0 %v2472_v7  ;;  %2321 = vmatprep.mubr.msk.f32.mxu0 %vm2473_vm1, %v2472_v7 }
0x1002   :  { %2318 = vmatpush3.msra.mxu0 %v2445_v60 }
0x1003   :  { %2319 = vmatprep.subr.mxu0 %v2472_v7 }
0x1004   :  { %2320 = vmatpush3.msra.mxu0 %v2446_v61  ;;  %v1954_v62 = vld [vmem:[#allocation4 + $0xa] sm:$0x3] }
0x1005   :  { %1962 = vst.msk [vmem:[%s3021_s9 + $0xa] sm:$0x3] %vm458_vm3, %v1954_v62 }
0x10b9   :  { %v1668_v63 = vpop.f32.mrf.mxu1 }
0x10ba   :  { %v1706_v0 = vadd.f32 %v1668_v63, %v2641_v22  ;;  %v1699_v5 = vadd.f32 %v1668_v63, %v1527_v4 }
0x10bb   :  { %v2312_v1 = vpop.f32.mrf.mxu1 }
0x10bc   :  { %1708 = vrot.lane.b32.xlu0 %v1706_v0, %s2474_s18  ;;  %v2052_v16 = vmul.f32 -1.442695, %v1699_v5 }
0x10bd   :  { %v1596_v2 = vpop.f32.mrf.mxu0 }
0x10be   :  { %v1679_v7 = vadd.f32 %v1596_v2, %v2647_v30  ;;  %v1672_v17 = vadd.f32 %v1596_v2, %v1526_v15  ;;  %2415 = vpow2.f32 %v2052_v16 }
0x10bf   :  { %v2301_v3 = vpop.f32.mrf.mxu0 }
0x10c0   :  { %1681 = vrot.lane.b32.xlu1 %v1679_v7, %s2474_s18  ;;  %v2051_v18 = vmul.f32 -1.442695, %v1672_v17 }
0x10c2   :  { %2417 = vpow2.f32 %v2051_v18 }
0x10cb   :  { %v2416_v6 = vpop.eup %2415 }
0x10cc   :  { %v1703_v8 = vadd.f32 1.0, %v2416_v6 }
0x10ce   :  { %2419 = vrcp.f32 %v1703_v8 }
0x10cf   :  { %v2418_v9 = vpop.eup %2417 }
0x10d0   :  { %v1676_v10 = vadd.f32 1.0, %v2418_v9 }
0x10d2   :  { %2421 = vrcp.f32 %v1676_v10 }
0x10db   :  { %v2420_v11 = vpop.eup %2419 }
0x10dc   :  { %v1718_v28 = vsub.f32 1.0, %v2420_v11  ;;  %v1724_v31 = vmul.f32 %v2420_v11, %v2885_v46 }
0x10df   :  { %v2422_v14 = vpop.eup %2421 }
0x10e0   :  { %v1691_v34 = vsub.f32 1.0, %v2422_v14  ;;  %v1697_v36 = vmul.f32 %v2422_v14, %v2890_v51 }
0x112e   :  { %v1709_v12 = vpop.permute.xlu0 %1708 }
0x112f   :  { %v1711_v13 = vmul.f32 %v2420_v11, %v1709_v12  ;;  %v1967_v12 = vld [vmem:[#allocation5 + $0x4] sm:$0x3] }
0x1131   :  { %1713 = vrot.lane.b32.xlu0 %v1711_v13, %s2474_s18  ;;  %v1969_v13 = vld [vmem:[#allocation5 + $0x8] sm:$0x3] }
0x1132   :  { %v1682_v19 = vpop.permute.xlu1 %1681 }
0x1133   :  { %v1684_v20 = vmul.f32 %v2422_v14, %v1682_v19  ;;  %v1968_v14 = vld [vmem:[#allocation5 + $0x6] sm:$0x3]  ;;  %v1970_v19 = vld [vmem:[#allocation5 + $0xa] sm:$0x3] }
0x1135   :  { %1686 = vrot.lane.b32.xlu1 %v1684_v20, %s2474_s18  ;;  %v1972_v20 = vld [vmem:[#allocation5 + $0xe] sm:$0x3] }
0x11a3   :  { %v1714_v21 = vpop.permute.xlu0 %1713 }
0x11a4   :  { %v1716_v23 = vadd.f32 %v1714_v21, %v1527_v4 }
0x11a6   :  { %2423 = vtanh.f32 %v1716_v23 }
0x11a7   :  { %v1687_v24 = vpop.permute.xlu1 %1686 }
0x11a8   :  { %v1689_v25 = vadd.f32 %v1687_v24, %v1526_v15 }
0x11aa   :  { %2425 = vtanh.f32 %v1689_v25 }
0x11b3   :  { %v2424_v26 = vpop.eup %2423 }
0x11b4   :  { %1720 = vrot.lane.b32.xlu0 %v2424_v26, %s2475_s3 }
0x11b7   :  { %v2426_v27 = vpop.eup %2425 }
0x11b8   :  { %1693 = vrot.lane.b32.xlu1 %v2426_v27, %s2475_s3 }
0x1226   :  { %v1721_v29 = vpop.permute.xlu0 %1720 }
0x1227   :  { %v1723_v32 = vmul.f32 %v1721_v29, %v1718_v28  ;;  %v1971_v29 = vld [vmem:[#allocation5 + $0xc] sm:$0x3] }
0x1229   :  { %v1725_v33 = vadd.f32 %v1724_v31, %v1723_v32 }
0x122a   :  { %v1694_v35 = vpop.permute.xlu1 %1693 }
0x122b   :  { %v1696_v37 = vmul.f32 %v1694_v35, %v1691_v34  ;;  %1733 = vrot.lane.b32.xlu0 %v1725_v33, %s2475_s3 }
0x122d   :  { %v1698_v38 = vadd.f32 %v1697_v36, %v1696_v37 }
0x122f   :  { %1727 = vrot.lane.b32.xlu1 %v1698_v38, %s2475_s3 }
0x129d   :  { %v1734_v39 = vpop.permute.xlu0 %1733 }
0x129e   :  { %1737 = vst.msk [vmem:[#allocation5 + $0x2] sm:$0x3] %vm458_vm3, %v1734_v39  ;;  %2333 = vmatmul.mubr.msk.f32.vlgmr.msra.gmra.mxu1 %vm250_vm4, %v1734_v39 }
0x12a1   :  { %v1728_v40 = vpop.permute.xlu1 %1727 }
0x12a2   :  { %1731 = vst.msk [vmem:[#allocation4 + $0xc] sm:$0x3] %vm458_vm3, %v1728_v40  ;;  %2322 = vmatmul.mubr.msk.f32.vlgmr.msra.gmra.mxu0 %vm250_vm4, %v1728_v40 }
0x12a5   :  { %v1966_v3 = vld [vmem:[#allocation5 + $0x2] sm:$0x3] }
0x12a9   :  { %v1955_v41 = vld [vmem:[#allocation4 + $0xc] sm:$0x3] }
0x12aa   :  { %1963 = vst.msk [vmem:[%s3021_s9 + $0xc] sm:$0x3] %vm458_vm3, %v1955_v41 }
0x135e   :  { %v1880_v42 = vpop.f32.mrf.mxu1 }
0x135f   :  { %v1918_v43 = vadd.f32 %v1880_v42, %v2641_v22  ;;  %v1911_v49 = vadd.f32 %v1880_v42, %v1739_v48 }
0x1360   :  { %v2334_v44 = vpop.f32.mrf.mxu1 }
0x1361   :  { %1920 = vrot.lane.b32.xlu0 %v1918_v43, %s2474_s18  ;;  %v2056_v51 = vmul.f32 -1.442695, %v1911_v49 }
0x1362   :  { %v1808_v45 = vpop.f32.mrf.mxu0 }
0x1363   :  { %v1891_v46 = vadd.f32 %v1808_v45, %v2647_v30  ;;  %v1884_v52 = vadd.f32 %v1808_v45, %v1738_v50  ;;  %2427 = vpow2.f32 %v2056_v51 }
0x1364   :  { %v2323_v47 = vpop.f32.mrf.mxu0 }
0x1365   :  { %1893 = vrot.lane.b32.xlu1 %v1891_v46, %s2474_s18  ;;  %v2055_v53 = vmul.f32 -1.442695, %v1884_v52 }
0x1367   :  { %2429 = vpow2.f32 %v2055_v53 }
0x1370   :  { %v2428_v54 = vpop.eup %2427 }
0x1371   :  { %v1915_v55 = vadd.f32 1.0, %v2428_v54 }
0x1373   :  { %2431 = vrcp.f32 %v1915_v55 }
0x1374   :  { %v2430_v22 = vpop.eup %2429 }
0x1375   :  { %v1888_v56 = vadd.f32 1.0, %v2430_v22 }
0x1377   :  { %2433 = vrcp.f32 %v1888_v56 }
0x1380   :  { %v2432_v57 = vpop.eup %2431 }
0x1381   :  { %v1930_v4 = vsub.f32 1.0, %v2432_v57  ;;  %v1936_v15 = vmul.f32 %v2432_v57, %v1725_v33 }
0x1384   :  { %v2434_v59 = vpop.eup %2433 }
0x1385   :  { %v1903_v18 = vsub.f32 1.0, %v2434_v59  ;;  %v1909_v8 = vmul.f32 %v2434_v59, %v1698_v38 }
0x13d3   :  { %v1921_v58 = vpop.permute.xlu0 %1920 }
0x13d4   :  { %v1923_v30 = vmul.f32 %v2432_v57, %v1921_v58 }
0x13d6   :  { %1925 = vrot.lane.b32.xlu0 %v1923_v30, %s2474_s18 }
0x13d7   :  { %v1894_v60 = vpop.permute.xlu1 %1893 }
0x13d8   :  { %v1896_v61 = vmul.f32 %v2434_v59, %v1894_v60 }
0x13da   :  { %1898 = vrot.lane.b32.xlu1 %v1896_v61, %s2474_s18 }
0x1448   :  { %v1926_v62 = vpop.permute.xlu0 %1925 }
0x1449   :  { %v1928_v63 = vadd.f32 %v1926_v62, %v1739_v48 }
0x144b   :  { %2435 = vtanh.f32 %v1928_v63 }
0x144c   :  { %v1899_v0 = vpop.permute.xlu1 %1898 }
0x144d   :  { %v1901_v1 = vadd.f32 %v1899_v0, %v1738_v50 }
0x144f   :  { %2437 = vtanh.f32 %v1901_v1 }
0x1458   :  { %v2436_v2 = vpop.eup %2435 }
0x1459   :  { %1932 = vrot.lane.b32.xlu0 %v2436_v2, %s2475_s3 }
0x145c   :  { %v2438_v7 = vpop.eup %2437 }
0x145d   :  { %1905 = vrot.lane.b32.xlu1 %v2438_v7, %s2475_s3 }
0x1461   :  { %1983 = vrot.lane.b32.xlu1 %v1966_v3, %s2476_s23 }
0x14cb   :  { %v1933_v5 = vpop.permute.xlu0 %1932 }
0x14cc   :  { %v1935_v16 = vmul.f32 %v1933_v5, %v1930_v4 }
0x14ce   :  { %v1937_v17 = vadd.f32 %v1936_v15, %v1935_v16 }
0x14cf   :  { %v1906_v6 = vpop.permute.xlu1 %1905 }
0x14d0   :  { %v1908_v9 = vmul.f32 %v1906_v6, %v1903_v18  ;;  %1945 = vrot.lane.b32.xlu0 %v1937_v17, %s2475_s3 }
0x14d2   :  { %v1910_v10 = vadd.f32 %v1909_v8, %v1908_v9 }
0x14d3   :  { %v1984_v11 = vpop.permute.xlu1 %1983 }
0x14d4   :  { %2007 = vst.msk [vmem:[%s3021_s9 + $0x2] sm:$0x3] %vm2005_vm5, %v1984_v11  ;;  %1985 = vrot.lane.b32.xlu0 %v1967_v12, %s2476_s23  ;;  %1939 = vrot.lane.b32.xlu1 %v1910_v10, %s2475_s3 }
0x14d8   :  { %1989 = vrot.lane.b32.xlu0 %v1969_v13, %s2476_s23  ;;  %1987 = vrot.lane.b32.xlu1 %v1968_v14, %s2476_s23 }
0x14dc   :  { %1991 = vrot.lane.b32.xlu1 %v1970_v19, %s2476_s23 }
0x14e0   :  { %1995 = vrot.lane.b32.xlu1 %v1972_v20, %s2476_s23 }
0x1542   :  { %v1946_v21 = vpop.permute.xlu0 %1945 }
0x1543   :  { %1948 = vst.msk [vmem:[#allocation5] sm:$0x3] %vm458_vm3, %v1946_v21 }
0x1546   :  { %v1986_v23 = vpop.permute.xlu0 %1985  ;;  %v1940_v24 = vpop.permute.xlu1 %1939 }
0x1547   :  { %2008 = vst.msk [vmem:[%s3021_s9 + $0x4] sm:$0x3] %vm2005_vm5, %v1986_v23 }
0x1548   :  { %1943 = vst.msk [vmem:[#allocation4 + $0xe] sm:$0x3] %vm458_vm3, %v1940_v24 }
0x154a   :  { %v1990_v25 = vpop.permute.xlu0 %1989  ;;  %v1988_v26 = vpop.permute.xlu1 %1987  ;;  %v1965_v27 = vld [vmem:[#allocation5] sm:$0x3] }
0x154b   :  { %2010 = vst.msk [vmem:[%s3021_s9 + $0x8] sm:$0x3] %vm2005_vm5, %v1990_v25  ;;  %2009 = vst.msk [vmem:[%s3021_s9 + $0x6] sm:$0x3] %vm2005_vm5, %v1988_v26  ;;  %1981 = vrot.lane.b32.xlu0 %v1965_v27, %s2476_s23 }
0x154e   :  { %v1992_v28 = vpop.permute.xlu1 %1991 }
0x154f   :  { %v1956_v31 = vld [vmem:[#allocation4 + $0xe] sm:$0x3]  ;;  %2011 = vst.msk [vmem:[%s3021_s9 + $0xa] sm:$0x3] %vm2005_vm5, %v1992_v28  ;;  %1993 = vrot.lane.b32.xlu0 %v1971_v29, %s2476_s23 }
0x1550   :  { %1964 = vst.msk [vmem:[%s3021_s9 + $0xe] sm:$0x3] %vm458_vm3, %v1956_v31 }
0x1552   :  { %v1996_v32 = vpop.permute.xlu1 %1995 }
0x1553   :  { %2013 = vst.msk [vmem:[%s3021_s9 + $0xe] sm:$0x3] %vm2005_vm5, %v1996_v32 }
0x15bd   :  { %v1982_v33 = vpop.permute.xlu0 %1981 }
0x15be   :  { %2006 = vst.msk [vmem:[%s3021_s9] sm:$0x3] %vm2005_vm5, %v1982_v33 }
0x15c1   :  { %v1994_v34 = vpop.permute.xlu0 %1993 }
0x15c2   :  { %2012 = vst.msk [vmem:[%s3021_s9 + $0xc] sm:$0x3] %vm2005_vm5, %v1994_v34 }
0x15c3   :  { %2018 = vsyncpa [#allocation7], 1 }

</bundles_post_ra>
